<compile_context>
chip_gen: v5e
topology: v5e:2x2
jax: 0.10.0
libtpu: 0.0.40
codegen_flags: <defaults>
</compile_context>

<pallas_src>
import functools

import jax
import jax.numpy as jnp
from jax import lax
from jax.experimental import pallas as pl
from jax.experimental.pallas import tpu as pltpu


def _round_up(v, m):
    return ((v + m - 1) // m) * m


@functools.lru_cache(maxsize=None)
def _vmem_limit_bytes():
    """Generation-aware VMEM limit: ~3/4 of physical capacity, safe fallback."""
    try:
        cap = int(pltpu.get_tpu_info().vmem_capacity_bytes)
    except Exception:  # older API / interpret mode -> safe-everywhere default
        cap = 64 * 1024 * 1024
    return min((cap * 3) // 4, 100 * 1024 * 1024)


# -----------------------------------------------------------------------------
# Fused Conv2d(k=5, s=2, p=2) + bias + LeakyReLU kernel (im2col built in VMEM)
# -----------------------------------------------------------------------------
def _conv5x5s2_kernel(x_ref, w_ref, b_ref, o_ref, *, oh, ow, neg_slope):
    """One sample per grid step.

    x_ref: (Hpad, Wd, 2*Ci)  spatially zero-padded, width-to-depth packed input
    w_ref: (15, 2*Ci, OCp)   per-tap weight blocks, tap index = 3*ki + kj//2,
                             row within a tap = (kj % 2) * Ci + c
    b_ref: (1, OCp)          f32 bias (padded entries are exactly 0)
    o_ref: (OH, OW, OCp)     bf16 output
    """
    ocp = o_ref.shape[-1]

    def compute_row(oy):
        acc = jnp.zeros((ow, ocp), jnp.float32)
        for ki in range(5):                       # static -> unrolled
            row = x_ref[2 * oy + ki]              # (Wd, 2*Ci)
            for t in range(3):                    # covers kj in {2t, 2t+1}
                lhs = row[t:t + ow, :]            # (OW, 2*Ci), contiguous slice
                acc = acc + jnp.dot(lhs, w_ref[ki * 3 + t],
                                    preferred_element_type=jnp.float32)
        y = acc + b_ref[...]
        o_ref[oy] = jnp.where(y >= 0.0, y, neg_slope * y).astype(o_ref.dtype)

    if oh <= 32:                                  # small images: fully static
        for oy in range(oh):
            compute_row(oy)
    else:                                         # large images: dynamic rows
        @pl.loop(0, oh)
        def _(oy):
            compute_row(oy)


def conv_leaky_layer(x, layer, *, neg_slope=0.2):
    """x: (N, H, W, Ci_pad) bf16 NHWC (padded channels are exactly 0)."""
    n, h, w, ci_pad = x.shape
    assert ci_pad == layer["ci_pad"], (ci_pad, layer["ci_pad"])
    oh = (h - 1) // 2 + 1
    ow = (w - 1) // 2 + 1
    hpad = h + 4
    wpad = w + 4 + (w % 2)            # even -> width-to-depth is a free reshape
    xp = jnp.pad(x, ((0, 0), (2, hpad - h - 2), (2, wpad - w - 2), (0, 0)))
    wd = wpad // 2
    ci2 = 2 * ci_pad
    xw = xp.reshape(n, hpad, wd, ci2)             # free trailing-dim regroup
    oc_pad = layer["oc_pad"]

    return pl.pallas_call(
        functools.partial(_conv5x5s2_kernel, oh=oh, ow=ow, neg_slope=neg_slope),
        out_shape=jax.ShapeDtypeStruct((n, oh, ow, oc_pad), jnp.bfloat16),
        grid=(n,),
        in_specs=[
            pl.BlockSpec((pl.Squeezed(), hpad, wd, ci2),
                         lambda i: (i, 0, 0, 0)),
            pl.BlockSpec((15, ci2, oc_pad), lambda i: (0, 0, 0)),  # resident
            pl.BlockSpec((1, oc_pad), lambda i: (0, 0)),
        ],
        out_specs=pl.BlockSpec((pl.Squeezed(), oh, ow, oc_pad),
                               lambda i: (i, 0, 0, 0)),
        compiler_params=pltpu.CompilerParams(
            dimension_semantics=("parallel",),    # one sample per TC on v7x
            vmem_limit_bytes=_vmem_limit_bytes()),
    )(xw, layer["w"], layer["b"])


# -----------------------------------------------------------------------------
# Final mean over (H, W, C_true) of the channel-padded output
# -----------------------------------------------------------------------------
def _mean_kernel(x_ref, o_ref, acc_ref, *, denom):
    @pl.when(pl.program_id(0) == 0)
    def _():
        acc_ref[...] = jnp.zeros_like(acc_ref)

    acc_ref[...] += jnp.sum(x_ref[...].astype(jnp.float32), axis=1,
                            keepdims=True)

    @pl.when(pl.program_id(0) == pl.num_programs(0) - 1)
    def _():
        o_ref[...] = (acc_ref[...] * (1.0 / denom)).astype(o_ref.dtype)


def mean_over_chw(x, oc_true):
    """mean over (H, W, C_true) of a channel-padded NHWC tensor -> (N,)."""
    n, oh, ow, ocp = x.shape
    denom = float(oh * ow * oc_true)              # padded channels are 0
    flat = x.reshape(n, oh * ow * ocp)            # free reshape, no slicing
    l = flat.shape[1]
    tl = min(_round_up(l, 128), 4096)
    l_pad = _round_up(l, tl)
    if l_pad != l:
        flat = jnp.pad(flat, ((0, 0), (0, l_pad - l)))
    out = pl.pallas_call(
        functools.partial(_mean_kernel, denom=denom),
        out_shape=jax.ShapeDtypeStruct((n, 1), jnp.float32),
        grid=(l_pad // tl,),
        in_specs=[pl.BlockSpec((n, tl), lambda i: (0, i))],
        out_specs=pl.BlockSpec((n, 1), lambda i: (0, 0)),
        scratch_shapes=[pltpu.VMEM((n, 1), jnp.float32)],
        compiler_params=pltpu.CompilerParams(
            dimension_semantics=("arbitrary",),
            vmem_limit_bytes=_vmem_limit_bytes()),
    )(flat)
    return out[:, 0]


# -----------------------------------------------------------------------------
# Parameter preparation / init / forward
# -----------------------------------------------------------------------------
def prepare_discriminator_params(params):
    """Pre-transpose / pre-pad the (OIHW) weights once, outside the fwd loop.

    Layer l>0 consumes activations whose channel dim equals the previous
    layer's padded output-channel count; the extra weight rows are zero so the
    (zero) padded input channels contribute nothing.
    """
    prepped = []
    prev_oc_pad = None
    for idx, (w, b) in enumerate(params):
        oc, ic, kh, kw = w.shape
        assert (kh, kw) == (5, 5)
        ci_pad = ic if idx == 0 else prev_oc_pad
        oc_pad = _round_up(oc, 128)
        wt = jnp.transpose(w, (2, 3, 1, 0)).astype(jnp.float32)   # (5,5,IC,OC)
        # Pad: kj 5->6 (the kj==5 half-tap is identically 0), IC->ci_pad,
        # OC->oc_pad.  Flattening (5,6,ci_pad) row-major gives exactly
        # tap = 3*ki + kj//2, row = (kj%2)*ci_pad + c, matching the
        # width-to-depth LHS packing used in the kernel.
        wt = jnp.pad(wt, ((0, 0), (0, 1), (0, ci_pad - ic), (0, oc_pad - oc)))
        w_tap = wt.reshape(15, 2 * ci_pad, oc_pad).astype(jnp.bfloat16)
        b_row = jnp.pad(b.astype(jnp.float32), (0, oc_pad - oc)).reshape(1, oc_pad)
        prepped.append(dict(w=w_tap, b=b_row, oc=oc, oc_pad=oc_pad,
                            ci=ic, ci_pad=ci_pad))
        prev_oc_pad = oc_pad
    return prepped


def init_discriminator_params(key, in_channels, base_channels, n_layers):
    params = []
    ch = in_channels
    for i in range(n_layers):
        out_ch = base_channels * 2 ** i
        key, kw, kb = jax.random.split(key, 3)
        fan_in = ch * 25
        bound = 1.0 / (fan_in ** 0.5)
        w = jax.random.uniform(kw, (out_ch, ch, 5, 5), jnp.float32, -bound, bound)
        b = jax.random.uniform(kb, (out_ch,), jnp.float32, -bound, bound)
        params.append((w, b))
        ch = out_ch
    return params


def discriminator_forward(x_nchw, prepped_params):
    x = jnp.transpose(x_nchw, (0, 2, 3, 1)).astype(jnp.bfloat16)  # NCHW->NHWC once
    for layer in prepped_params:
        x = conv_leaky_layer(x, layer, neg_slope=0.2)
    return mean_over_chw(x, prepped_params[-1]["oc"])


# Pure-JAX reference (bf16 matmul operands, f32 accumulation -- same recipe).
def _reference_forward(x, params):
    for w, b in params:
        y = lax.conv_general_dilated(
            x.astype(jnp.bfloat16), w.astype(jnp.bfloat16),
            window_strides=(2, 2), padding=((2, 2), (2, 2)),
            dimension_numbers=("NCHW", "OIHW", "NCHW"),
            preferred_element_type=jnp.float32)
        y = y + b.reshape(1, -1, 1, 1)
        x = jnp.where(y >= 0.0, y, 0.2 * y)
    return jnp.mean(x, axis=(1, 2, 3))


if __name__ == "__main__":
    key = jax.random.PRNGKey(0)
    k_x, k_p = jax.random.split(key)

    in_channels, base_channels, n_layers = 3, 4, 3
    x = jax.random.normal(k_x, (2, in_channels, 16, 16), dtype=jnp.float32)
    params = init_discriminator_params(k_p, in_channels, base_channels, n_layers)
    prepped = prepare_discriminator_params(params)

    out = jax.block_until_ready(discriminator_forward(x, prepped))
    ref = jax.block_until_ready(_reference_forward(x, params))

    assert out.shape == (2,), out.shape
    assert jnp.allclose(out, ref, atol=2e-2, rtol=2e-2), (out, ref)

    print("KERNEL_OK")
</pallas_src>

<mosaic_0001>
module attributes {stable_mosaic.version = 11 : i64} {
  func.func @_conv5x5s2_kernel(%arg0: i32, %arg1: memref<1x20x10x6xbf16, #tpu.memory_space<vmem>>, %arg2: memref<15x6x128xbf16, #tpu.memory_space<vmem>>, %arg3: memref<1x128xf32, #tpu.memory_space<vmem>>, %arg4: memref<1x8x8x128xbf16, #tpu.memory_space<vmem>>) attributes {dimension_semantics = [#tpu.dimension_semantics<parallel>], iteration_bounds = array<i64: 2>, scalar_prefetch = 0 : i64, scratch_operands = 0 : i64, tpu.core_type = #tpu.core_type<tc>, window_params = [{transform_indices = @transform_0, window_bounds = array<i64: 1, 20, 10, 6>}, {pipeline_mode = #tpu.pipeline_mode<synchronous>, transform_indices = @transform_1, window_bounds = array<i64: 15, 6, 128>}, {pipeline_mode = #tpu.pipeline_mode<synchronous>, transform_indices = @transform_2, window_bounds = array<i64: 1, 128>}, {transform_indices = @transform_3, window_bounds = array<i64: 1, 8, 8, 128>}]} {
    %cst = arith.constant 0.000000e+00 : f32
    %0 = vector.broadcast %cst : f32 to vector<8x128xf32>
    %c0 = arith.constant 0 : index
    %c0_0 = arith.constant 0 : index
    %c0_1 = arith.constant 0 : index
    %c0_2 = arith.constant 0 : index
    %1 = vector.load %arg1[%c0, %c0_0, %c0_1, %c0_2] : memref<1x20x10x6xbf16, #tpu.memory_space<vmem>>, vector<1x1x10x6xbf16>
    %2 = vector.shape_cast %1 : vector<1x1x10x6xbf16> to vector<10x6xbf16>
    %3 = vector.extract_strided_slice %2 {offsets = [0, 0], sizes = [8, 6], strides = [1, 1]} : vector<10x6xbf16> to vector<8x6xbf16>
    %c0_3 = arith.constant 0 : index
    %c0_4 = arith.constant 0 : index
    %c0_5 = arith.constant 0 : index
    %4 = vector.load %arg2[%c0_3, %c0_4, %c0_5] : memref<15x6x128xbf16, #tpu.memory_space<vmem>>, vector<1x6x128xbf16>
    %5 = vector.shape_cast %4 : vector<1x6x128xbf16> to vector<6x128xbf16>
    %cst_6 = arith.constant dense<0.000000e+00> : vector<8x128xf32>
    %6 = tpu.matmul %3, %5, %cst_6 {dimension_numbers = #tpu.dot_dimension_numbers<[1], [0], [0], [1], [0, 0, 1, 1], [], []>} : vector<8x6xbf16>, vector<6x128xbf16>, vector<8x128xf32> -> vector<8x128xf32>
    %7 = arith.addf %0, %6 : vector<8x128xf32>
    %8 = vector.extract_strided_slice %2 {offsets = [1, 0], sizes = [8, 6], strides = [1, 1]} : vector<10x6xbf16> to vector<8x6xbf16>
    %c1 = arith.constant 1 : index
    %c0_7 = arith.constant 0 : index
    %c0_8 = arith.constant 0 : index
    %9 = vector.load %arg2[%c1, %c0_7, %c0_8] : memref<15x6x128xbf16, #tpu.memory_space<vmem>>, vector<1x6x128xbf16>
    %10 = vector.shape_cast %9 : vector<1x6x128xbf16> to vector<6x128xbf16>
    %cst_9 = arith.constant dense<0.000000e+00> : vector<8x128xf32>
    %11 = tpu.matmul %8, %10, %cst_9 {dimension_numbers = #tpu.dot_dimension_numbers<[1], [0], [0], [1], [0, 0, 1, 1], [], []>} : vector<8x6xbf16>, vector<6x128xbf16>, vector<8x128xf32> -> vector<8x128xf32>
    %12 = arith.addf %7, %11 : vector<8x128xf32>
    %13 = vector.extract_strided_slice %2 {offsets = [2, 0], sizes = [8, 6], strides = [1, 1]} : vector<10x6xbf16> to vector<8x6xbf16>
    %c2 = arith.constant 2 : index
    %c0_10 = arith.constant 0 : index
    %c0_11 = arith.constant 0 : index
    %14 = vector.load %arg2[%c2, %c0_10, %c0_11] : memref<15x6x128xbf16, #tpu.memory_space<vmem>>, vector<1x6x128xbf16>
    %15 = vector.shape_cast %14 : vector<1x6x128xbf16> to vector<6x128xbf16>
    %cst_12 = arith.constant dense<0.000000e+00> : vector<8x128xf32>
    %16 = tpu.matmul %13, %15, %cst_12 {dimension_numbers = #tpu.dot_dimension_numbers<[1], [0], [0], [1], [0, 0, 1, 1], [], []>} : vector<8x6xbf16>, vector<6x128xbf16>, vector<8x128xf32> -> vector<8x128xf32>
    %17 = arith.addf %12, %16 : vector<8x128xf32>
    %c0_13 = arith.constant 0 : index
    %c1_14 = arith.constant 1 : index
    %c0_15 = arith.constant 0 : index
    %c0_16 = arith.constant 0 : index
    %18 = vector.load %arg1[%c0_13, %c1_14, %c0_15, %c0_16] : memref<1x20x10x6xbf16, #tpu.memory_space<vmem>>, vector<1x1x10x6xbf16>
    %19 = vector.shape_cast %18 : vector<1x1x10x6xbf16> to vector<10x6xbf16>
    %20 = vector.extract_strided_slice %19 {offsets = [0, 0], sizes = [8, 6], strides = [1, 1]} : vector<10x6xbf16> to vector<8x6xbf16>
    %c3 = arith.constant 3 : index
    %c0_17 = arith.constant 0 : index
    %c0_18 = arith.constant 0 : index
    %21 = vector.load %arg2[%c3, %c0_17, %c0_18] : memref<15x6x128xbf16, #tpu.memory_space<vmem>>, vector<1x6x128xbf16>
    %22 = vector.shape_cast %21 : vector<1x6x128xbf16> to vector<6x128xbf16>
    %cst_19 = arith.constant dense<0.000000e+00> : vector<8x128xf32>
    %23 = tpu.matmul %20, %22, %cst_19 {dimension_numbers = #tpu.dot_dimension_numbers<[1], [0], [0], [1], [0, 0, 1, 1], [], []>} : vector<8x6xbf16>, vector<6x128xbf16>, vector<8x128xf32> -> vector<8x128xf32>
    %24 = arith.addf %17, %23 : vector<8x128xf32>
    %25 = vector.extract_strided_slice %19 {offsets = [1, 0], sizes = [8, 6], strides = [1, 1]} : vector<10x6xbf16> to vector<8x6xbf16>
    %c4 = arith.constant 4 : index
    %c0_20 = arith.constant 0 : index
    %c0_21 = arith.constant 0 : index
    %26 = vector.load %arg2[%c4, %c0_20, %c0_21] : memref<15x6x128xbf16, #tpu.memory_space<vmem>>, vector<1x6x128xbf16>
    %27 = vector.shape_cast %26 : vector<1x6x128xbf16> to vector<6x128xbf16>
    %cst_22 = arith.constant dense<0.000000e+00> : vector<8x128xf32>
    %28 = tpu.matmul %25, %27, %cst_22 {dimension_numbers = #tpu.dot_dimension_numbers<[1], [0], [0], [1], [0, 0, 1, 1], [], []>} : vector<8x6xbf16>, vector<6x128xbf16>, vector<8x128xf32> -> vector<8x128xf32>
    %29 = arith.addf %24, %28 : vector<8x128xf32>
    %30 = vector.extract_strided_slice %19 {offsets = [2, 0], sizes = [8, 6], strides = [1, 1]} : vector<10x6xbf16> to vector<8x6xbf16>
    %c5 = arith.constant 5 : index
    %c0_23 = arith.constant 0 : index
    %c0_24 = arith.constant 0 : index
    %31 = vector.load %arg2[%c5, %c0_23, %c0_24] : memref<15x6x128xbf16, #tpu.memory_space<vmem>>, vector<1x6x128xbf16>
    %32 = vector.shape_cast %31 : vector<1x6x128xbf16> to vector<6x128xbf16>
    %cst_25 = arith.constant dense<0.000000e+00> : vector<8x128xf32>
    %33 = tpu.matmul %30, %32, %cst_25 {dimension_numbers = #tpu.dot_dimension_numbers<[1], [0], [0], [1], [0, 0, 1, 1], [], []>} : vector<8x6xbf16>, vector<6x128xbf16>, vector<8x128xf32> -> vector<8x128xf32>
    %34 = arith.addf %29, %33 : vector<8x128xf32>
    %c0_26 = arith.constant 0 : index
    %c2_27 = arith.constant 2 : index
    %c0_28 = arith.constant 0 : index
    %c0_29 = arith.constant 0 : index
    %35 = vector.load %arg1[%c0_26, %c2_27, %c0_28, %c0_29] : memref<1x20x10x6xbf16, #tpu.memory_space<vmem>>, vector<1x1x10x6xbf16>
    %36 = vector.shape_cast %35 : vector<1x1x10x6xbf16> to vector<10x6xbf16>
    %37 = vector.extract_strided_slice %36 {offsets = [0, 0], sizes = [8, 6], strides = [1, 1]} : vector<10x6xbf16> to vector<8x6xbf16>
    %c6 = arith.constant 6 : index
    %c0_30 = arith.constant 0 : index
    %c0_31 = arith.constant 0 : index
    %38 = vector.load %arg2[%c6, %c0_30, %c0_31] : memref<15x6x128xbf16, #tpu.memory_space<vmem>>, vector<1x6x128xbf16>
    %39 = vector.shape_cast %38 : vector<1x6x128xbf16> to vector<6x128xbf16>
    %cst_32 = arith.constant dense<0.000000e+00> : vector<8x128xf32>
    %40 = tpu.matmul %37, %39, %cst_32 {dimension_numbers = #tpu.dot_dimension_numbers<[1], [0], [0], [1], [0, 0, 1, 1], [], []>} : vector<8x6xbf16>, vector<6x128xbf16>, vector<8x128xf32> -> vector<8x128xf32>
    %41 = arith.addf %34, %40 : vector<8x128xf32>
    %42 = vector.extract_strided_slice %36 {offsets = [1, 0], sizes = [8, 6], strides = [1, 1]} : vector<10x6xbf16> to vector<8x6xbf16>
    %c7 = arith.constant 7 : index
    %c0_33 = arith.constant 0 : index
    %c0_34 = arith.constant 0 : index
    %43 = vector.load %arg2[%c7, %c0_33, %c0_34] : memref<15x6x128xbf16, #tpu.memory_space<vmem>>, vector<1x6x128xbf16>
    %44 = vector.shape_cast %43 : vector<1x6x128xbf16> to vector<6x128xbf16>
    %cst_35 = arith.constant dense<0.000000e+00> : vector<8x128xf32>
    %45 = tpu.matmul %42, %44, %cst_35 {dimension_numbers = #tpu.dot_dimension_numbers<[1], [0], [0], [1], [0, 0, 1, 1], [], []>} : vector<8x6xbf16>, vector<6x128xbf16>, vector<8x128xf32> -> vector<8x128xf32>
    %46 = arith.addf %41, %45 : vector<8x128xf32>
    %47 = vector.extract_strided_slice %36 {offsets = [2, 0], sizes = [8, 6], strides = [1, 1]} : vector<10x6xbf16> to vector<8x6xbf16>
    %c8 = arith.constant 8 : index
    %c0_36 = arith.constant 0 : index
    %c0_37 = arith.constant 0 : index
    %48 = vector.load %arg2[%c8, %c0_36, %c0_37] : memref<15x6x128xbf16, #tpu.memory_space<vmem>>, vector<1x6x128xbf16>
    %49 = vector.shape_cast %48 : vector<1x6x128xbf16> to vector<6x128xbf16>
    %cst_38 = arith.constant dense<0.000000e+00> : vector<8x128xf32>
    %50 = tpu.matmul %47, %49, %cst_38 {dimension_numbers = #tpu.dot_dimension_numbers<[1], [0], [0], [1], [0, 0, 1, 1], [], []>} : vector<8x6xbf16>, vector<6x128xbf16>, vector<8x128xf32> -> vector<8x128xf32>
    %51 = arith.addf %46, %50 : vector<8x128xf32>
    %c0_39 = arith.constant 0 : index
    %c3_40 = arith.constant 3 : index
    %c0_41 = arith.constant 0 : index
    %c0_42 = arith.constant 0 : index
    %52 = vector.load %arg1[%c0_39, %c3_40, %c0_41, %c0_42] : memref<1x20x10x6xbf16, #tpu.memory_space<vmem>>, vector<1x1x10x6xbf16>
    %53 = vector.shape_cast %52 : vector<1x1x10x6xbf16> to vector<10x6xbf16>
    %54 = vector.extract_strided_slice %53 {offsets = [0, 0], sizes = [8, 6], strides = [1, 1]} : vector<10x6xbf16> to vector<8x6xbf16>
    %c9 = arith.constant 9 : index
    %c0_43 = arith.constant 0 : index
    %c0_44 = arith.constant 0 : index
    %55 = vector.load %arg2[%c9, %c0_43, %c0_44] : memref<15x6x128xbf16, #tpu.memory_space<vmem>>, vector<1x6x128xbf16>
    %56 = vector.shape_cast %55 : vector<1x6x128xbf16> to vector<6x128xbf16>
    %cst_45 = arith.constant dense<0.000000e+00> : vector<8x128xf32>
    %57 = tpu.matmul %54, %56, %cst_45 {dimension_numbers = #tpu.dot_dimension_numbers<[1], [0], [0], [1], [0, 0, 1, 1], [], []>} : vector<8x6xbf16>, vector<6x128xbf16>, vector<8x128xf32> -> vector<8x128xf32>
    %58 = arith.addf %51, %57 : vector<8x128xf32>
    %59 = vector.extract_strided_slice %53 {offsets = [1, 0], sizes = [8, 6], strides = [1, 1]} : vector<10x6xbf16> to vector<8x6xbf16>
    %c10 = arith.constant 10 : index
    %c0_46 = arith.constant 0 : index
    %c0_47 = arith.constant 0 : index
    %60 = vector.load %arg2[%c10, %c0_46, %c0_47] : memref<15x6x128xbf16, #tpu.memory_space<vmem>>, vector<1x6x128xbf16>
    %61 = vector.shape_cast %60 : vector<1x6x128xbf16> to vector<6x128xbf16>
    %cst_48 = arith.constant dense<0.000000e+00> : vector<8x128xf32>
    %62 = tpu.matmul %59, %61, %cst_48 {dimension_numbers = #tpu.dot_dimension_numbers<[1], [0], [0], [1], [0, 0, 1, 1], [], []>} : vector<8x6xbf16>, vector<6x128xbf16>, vector<8x128xf32> -> vector<8x128xf32>
    %63 = arith.addf %58, %62 : vector<8x128xf32>
    %64 = vector.extract_strided_slice %53 {offsets = [2, 0], sizes = [8, 6], strides = [1, 1]} : vector<10x6xbf16> to vector<8x6xbf16>
    %c11 = arith.constant 11 : index
    %c0_49 = arith.constant 0 : index
    %c0_50 = arith.constant 0 : index
    %65 = vector.load %arg2[%c11, %c0_49, %c0_50] : memref<15x6x128xbf16, #tpu.memory_space<vmem>>, vector<1x6x128xbf16>
    %66 = vector.shape_cast %65 : vector<1x6x128xbf16> to vector<6x128xbf16>
    %cst_51 = arith.constant dense<0.000000e+00> : vector<8x128xf32>
    %67 = tpu.matmul %64, %66, %cst_51 {dimension_numbers = #tpu.dot_dimension_numbers<[1], [0], [0], [1], [0, 0, 1, 1], [], []>} : vector<8x6xbf16>, vector<6x128xbf16>, vector<8x128xf32> -> vector<8x128xf32>
    %68 = arith.addf %63, %67 : vector<8x128xf32>
    %c0_52 = arith.constant 0 : index
    %c4_53 = arith.constant 4 : index
    %c0_54 = arith.constant 0 : index
    %c0_55 = arith.constant 0 : index
    %69 = vector.load %arg1[%c0_52, %c4_53, %c0_54, %c0_55] : memref<1x20x10x6xbf16, #tpu.memory_space<vmem>>, vector<1x1x10x6xbf16>
    %70 = vector.shape_cast %69 : vector<1x1x10x6xbf16> to vector<10x6xbf16>
    %71 = vector.extract_strided_slice %70 {offsets = [0, 0], sizes = [8, 6], strides = [1, 1]} : vector<10x6xbf16> to vector<8x6xbf16>
    %c12 = arith.constant 12 : index
    %c0_56 = arith.constant 0 : index
    %c0_57 = arith.constant 0 : index
    %72 = vector.load %arg2[%c12, %c0_56, %c0_57] : memref<15x6x128xbf16, #tpu.memory_space<vmem>>, vector<1x6x128xbf16>
    %73 = vector.shape_cast %72 : vector<1x6x128xbf16> to vector<6x128xbf16>
    %cst_58 = arith.constant dense<0.000000e+00> : vector<8x128xf32>
    %74 = tpu.matmul %71, %73, %cst_58 {dimension_numbers = #tpu.dot_dimension_numbers<[1], [0], [0], [1], [0, 0, 1, 1], [], []>} : vector<8x6xbf16>, vector<6x128xbf16>, vector<8x128xf32> -> vector<8x128xf32>
    %75 = arith.addf %68, %74 : vector<8x128xf32>
    %76 = vector.extract_strided_slice %70 {offsets = [1, 0], sizes = [8, 6], strides = [1, 1]} : vector<10x6xbf16> to vector<8x6xbf16>
    %c13 = arith.constant 13 : index
    %c0_59 = arith.constant 0 : index
    %c0_60 = arith.constant 0 : index
    %77 = vector.load %arg2[%c13, %c0_59, %c0_60] : memref<15x6x128xbf16, #tpu.memory_space<vmem>>, vector<1x6x128xbf16>
    %78 = vector.shape_cast %77 : vector<1x6x128xbf16> to vector<6x128xbf16>
    %cst_61 = arith.constant dense<0.000000e+00> : vector<8x128xf32>
    %79 = tpu.matmul %76, %78, %cst_61 {dimension_numbers = #tpu.dot_dimension_numbers<[1], [0], [0], [1], [0, 0, 1, 1], [], []>} : vector<8x6xbf16>, vector<6x128xbf16>, vector<8x128xf32> -> vector<8x128xf32>
    %80 = arith.addf %75, %79 : vector<8x128xf32>
    %81 = vector.extract_strided_slice %70 {offsets = [2, 0], sizes = [8, 6], strides = [1, 1]} : vector<10x6xbf16> to vector<8x6xbf16>
    %c14 = arith.constant 14 : index
    %c0_62 = arith.constant 0 : index
    %c0_63 = arith.constant 0 : index
    %82 = vector.load %arg2[%c14, %c0_62, %c0_63] : memref<15x6x128xbf16, #tpu.memory_space<vmem>>, vector<1x6x128xbf16>
    %83 = vector.shape_cast %82 : vector<1x6x128xbf16> to vector<6x128xbf16>
    %cst_64 = arith.constant dense<0.000000e+00> : vector<8x128xf32>
    %84 = tpu.matmul %81, %83, %cst_64 {dimension_numbers = #tpu.dot_dimension_numbers<[1], [0], [0], [1], [0, 0, 1, 1], [], []>} : vector<8x6xbf16>, vector<6x128xbf16>, vector<8x128xf32> -> vector<8x128xf32>
    %85 = arith.addf %80, %84 : vector<8x128xf32>
    %c0_65 = arith.constant 0 : index
    %c0_66 = arith.constant 0 : index
    %86 = vector.load %arg3[%c0_65, %c0_66] : memref<1x128xf32, #tpu.memory_space<vmem>>, vector<1x128xf32>
    %87 = vector.broadcast %86 : vector<1x128xf32> to vector<8x128xf32>
    %88 = arith.addf %85, %87 : vector<8x128xf32>
    %cst_67 = arith.constant 0.000000e+00 : f32
    %89 = vector.broadcast %cst_67 : f32 to vector<8x128xf32>
    %90 = arith.cmpf oge, %88, %89 : vector<8x128xf32>
    %cst_68 = arith.constant 2.000000e-01 : f32
    %91 = vector.broadcast %cst_68 : f32 to vector<8x128xf32>
    %92 = arith.mulf %91, %88 : vector<8x128xf32>
    %93 = arith.select %90, %88, %92 : vector<8x128xi1>, vector<8x128xf32>
    %94 = arith.truncf %93 : vector<8x128xf32> to vector<8x128xbf16>
    %c0_69 = arith.constant 0 : index
    %c0_70 = arith.constant 0 : index
    %c0_71 = arith.constant 0 : index
    %c0_72 = arith.constant 0 : index
    %95 = vector.load %arg4[%c0_69, %c0_70, %c0_71, %c0_72] : memref<1x8x8x128xbf16, #tpu.memory_space<vmem>>, vector<1x1x8x128xbf16>
    %96 = vector.shape_cast %95 : vector<1x1x8x128xbf16> to vector<8x128xbf16>
    %97 = vector.shape_cast %94 : vector<8x128xbf16> to vector<1x1x8x128xbf16>
    tpu.vector_store %arg4[%c0_69, %c0_70, %c0_71, %c0_72], %97 {strides = array<i32>} : memref<1x8x8x128xbf16, #tpu.memory_space<vmem>>, vector<1x1x8x128xbf16>,
    %cst_73 = arith.constant 0.000000e+00 : f32
    %98 = vector.broadcast %cst_73 : f32 to vector<8x128xf32>
    %c0_74 = arith.constant 0 : index
    %c2_75 = arith.constant 2 : index
    %c0_76 = arith.constant 0 : index
    %c0_77 = arith.constant 0 : index
    %99 = vector.load %arg1[%c0_74, %c2_75, %c0_76, %c0_77] : memref<1x20x10x6xbf16, #tpu.memory_space<vmem>>, vector<1x1x10x6xbf16>
    %100 = vector.shape_cast %99 : vector<1x1x10x6xbf16> to vector<10x6xbf16>
    %101 = vector.extract_strided_slice %100 {offsets = [0, 0], sizes = [8, 6], strides = [1, 1]} : vector<10x6xbf16> to vector<8x6xbf16>
    %c0_78 = arith.constant 0 : index
    %c0_79 = arith.constant 0 : index
    %c0_80 = arith.constant 0 : index
    %102 = vector.load %arg2[%c0_78, %c0_79, %c0_80] : memref<15x6x128xbf16, #tpu.memory_space<vmem>>, vector<1x6x128xbf16>
    %103 = vector.shape_cast %102 : vector<1x6x128xbf16> to vector<6x128xbf16>
    %cst_81 = arith.constant dense<0.000000e+00> : vector<8x128xf32>
    %104 = tpu.matmul %101, %103, %cst_81 {dimension_numbers = #tpu.dot_dimension_numbers<[1], [0], [0], [1], [0, 0, 1, 1], [], []>} : vector<8x6xbf16>, vector<6x128xbf16>, vector<8x128xf32> -> vector<8x128xf32>
    %105 = arith.addf %98, %104 : vector<8x128xf32>
    %106 = vector.extract_strided_slice %100 {offsets = [1, 0], sizes = [8, 6], strides = [1, 1]} : vector<10x6xbf16> to vector<8x6xbf16>
    %c1_82 = arith.constant 1 : index
    %c0_83 = arith.constant 0 : index
    %c0_84 = arith.constant 0 : index
    %107 = vector.load %arg2[%c1_82, %c0_83, %c0_84] : memref<15x6x128xbf16, #tpu.memory_space<vmem>>, vector<1x6x128xbf16>
    %108 = vector.shape_cast %107 : vector<1x6x128xbf16> to vector<6x128xbf16>
    %cst_85 = arith.constant dense<0.000000e+00> : vector<8x128xf32>
    %109 = tpu.matmul %106, %108, %cst_85 {dimension_numbers = #tpu.dot_dimension_numbers<[1], [0], [0], [1], [0, 0, 1, 1], [], []>} : vector<8x6xbf16>, vector<6x128xbf16>, vector<8x128xf32> -> vector<8x128xf32>
    %110 = arith.addf %105, %109 : vector<8x128xf32>
    %111 = vector.extract_strided_slice %100 {offsets = [2, 0], sizes = [8, 6], strides = [1, 1]} : vector<10x6xbf16> to vector<8x6xbf16>
    %c2_86 = arith.constant 2 : index
    %c0_87 = arith.constant 0 : index
    %c0_88 = arith.constant 0 : index
    %112 = vector.load %arg2[%c2_86, %c0_87, %c0_88] : memref<15x6x128xbf16, #tpu.memory_space<vmem>>, vector<1x6x128xbf16>
    %113 = vector.shape_cast %112 : vector<1x6x128xbf16> to vector<6x128xbf16>
    %cst_89 = arith.constant dense<0.000000e+00> : vector<8x128xf32>
    %114 = tpu.matmul %111, %113, %cst_89 {dimension_numbers = #tpu.dot_dimension_numbers<[1], [0], [0], [1], [0, 0, 1, 1], [], []>} : vector<8x6xbf16>, vector<6x128xbf16>, vector<8x128xf32> -> vector<8x128xf32>
    %115 = arith.addf %110, %114 : vector<8x128xf32>
    %c0_90 = arith.constant 0 : index
    %c3_91 = arith.constant 3 : index
    %c0_92 = arith.constant 0 : index
    %c0_93 = arith.constant 0 : index
    %116 = vector.load %arg1[%c0_90, %c3_91, %c0_92, %c0_93] : memref<1x20x10x6xbf16, #tpu.memory_space<vmem>>, vector<1x1x10x6xbf16>
    %117 = vector.shape_cast %116 : vector<1x1x10x6xbf16> to vector<10x6xbf16>
    %118 = vector.extract_strided_slice %117 {offsets = [0, 0], sizes = [8, 6], strides = [1, 1]} : vector<10x6xbf16> to vector<8x6xbf16>
    %c3_94 = arith.constant 3 : index
    %c0_95 = arith.constant 0 : index
    %c0_96 = arith.constant 0 : index
    %119 = vector.load %arg2[%c3_94, %c0_95, %c0_96] : memref<15x6x128xbf16, #tpu.memory_space<vmem>>, vector<1x6x128xbf16>
    %120 = vector.shape_cast %119 : vector<1x6x128xbf16> to vector<6x128xbf16>
    %cst_97 = arith.constant dense<0.000000e+00> : vector<8x128xf32>
    %121 = tpu.matmul %118, %120, %cst_97 {dimension_numbers = #tpu.dot_dimension_numbers<[1], [0], [0], [1], [0, 0, 1, 1], [], []>} : vector<8x6xbf16>, vector<6x128xbf16>, vector<8x128xf32> -> vector<8x128xf32>
    %122 = arith.addf %115, %121 : vector<8x128xf32>
    %123 = vector.extract_strided_slice %117 {offsets = [1, 0], sizes = [8, 6], strides = [1, 1]} : vector<10x6xbf16> to vector<8x6xbf16>
    %c4_98 = arith.constant 4 : index
    %c0_99 = arith.constant 0 : index
    %c0_100 = arith.constant 0 : index
    %124 = vector.load %arg2[%c4_98, %c0_99, %c0_100] : memref<15x6x128xbf16, #tpu.memory_space<vmem>>, vector<1x6x128xbf16>
    %125 = vector.shape_cast %124 : vector<1x6x128xbf16> to vector<6x128xbf16>
    %cst_101 = arith.constant dense<0.000000e+00> : vector<8x128xf32>
    %126 = tpu.matmul %123, %125, %cst_101 {dimension_numbers = #tpu.dot_dimension_numbers<[1], [0], [0], [1], [0, 0, 1, 1], [], []>} : vector<8x6xbf16>, vector<6x128xbf16>, vector<8x128xf32> -> vector<8x128xf32>
    %127 = arith.addf %122, %126 : vector<8x128xf32>
    %128 = vector.extract_strided_slice %117 {offsets = [2, 0], sizes = [8, 6], strides = [1, 1]} : vector<10x6xbf16> to vector<8x6xbf16>
    %c5_102 = arith.constant 5 : index
    %c0_103 = arith.constant 0 : index
    %c0_104 = arith.constant 0 : index
    %129 = vector.load %arg2[%c5_102, %c0_103, %c0_104] : memref<15x6x128xbf16, #tpu.memory_space<vmem>>, vector<1x6x128xbf16>
    %130 = vector.shape_cast %129 : vector<1x6x128xbf16> to vector<6x128xbf16>
    %cst_105 = arith.constant dense<0.000000e+00> : vector<8x128xf32>
    %131 = tpu.matmul %128, %130, %cst_105 {dimension_numbers = #tpu.dot_dimension_numbers<[1], [0], [0], [1], [0, 0, 1, 1], [], []>} : vector<8x6xbf16>, vector<6x128xbf16>, vector<8x128xf32> -> vector<8x128xf32>
    %132 = arith.addf %127, %131 : vector<8x128xf32>
    %c0_106 = arith.constant 0 : index
    %c4_107 = arith.constant 4 : index
    %c0_108 = arith.constant 0 : index
    %c0_109 = arith.constant 0 : index
    %133 = vector.load %arg1[%c0_106, %c4_107, %c0_108, %c0_109] : memref<1x20x10x6xbf16, #tpu.memory_space<vmem>>, vector<1x1x10x6xbf16>
    %134 = vector.shape_cast %133 : vector<1x1x10x6xbf16> to vector<10x6xbf16>
    %135 = vector.extract_strided_slice %134 {offsets = [0, 0], sizes = [8, 6], strides = [1, 1]} : vector<10x6xbf16> to vector<8x6xbf16>
    %c6_110 = arith.constant 6 : index
    %c0_111 = arith.constant 0 : index
    %c0_112 = arith.constant 0 : index
    %136 = vector.load %arg2[%c6_110, %c0_111, %c0_112] : memref<15x6x128xbf16, #tpu.memory_space<vmem>>, vector<1x6x128xbf16>
    %137 = vector.shape_cast %136 : vector<1x6x128xbf16> to vector<6x128xbf16>
    %cst_113 = arith.constant dense<0.000000e+00> : vector<8x128xf32>
    %138 = tpu.matmul %135, %137, %cst_113 {dimension_numbers = #tpu.dot_dimension_numbers<[1], [0], [0], [1], [0, 0, 1, 1], [], []>} : vector<8x6xbf16>, vector<6x128xbf16>, vector<8x128xf32> -> vector<8x128xf32>
    %139 = arith.addf %132, %138 : vector<8x128xf32>
    %140 = vector.extract_strided_slice %134 {offsets = [1, 0], sizes = [8, 6], strides = [1, 1]} : vector<10x6xbf16> to vector<8x6xbf16>
    %c7_114 = arith.constant 7 : index
    %c0_115 = arith.constant 0 : index
    %c0_116 = arith.constant 0 : index
    %141 = vector.load %arg2[%c7_114, %c0_115, %c0_116] : memref<15x6x128xbf16, #tpu.memory_space<vmem>>, vector<1x6x128xbf16>
    %142 = vector.shape_cast %141 : vector<1x6x128xbf16> to vector<6x128xbf16>
    %cst_117 = arith.constant dense<0.000000e+00> : vector<8x128xf32>
    %143 = tpu.matmul %140, %142, %cst_117 {dimension_numbers = #tpu.dot_dimension_numbers<[1], [0], [0], [1], [0, 0, 1, 1], [], []>} : vector<8x6xbf16>, vector<6x128xbf16>, vector<8x128xf32> -> vector<8x128xf32>
    %144 = arith.addf %139, %143 : vector<8x128xf32>
    %145 = vector.extract_strided_slice %134 {offsets = [2, 0], sizes = [8, 6], strides = [1, 1]} : vector<10x6xbf16> to vector<8x6xbf16>
    %c8_118 = arith.constant 8 : index
    %c0_119 = arith.constant 0 : index
    %c0_120 = arith.constant 0 : index
    %146 = vector.load %arg2[%c8_118, %c0_119, %c0_120] : memref<15x6x128xbf16, #tpu.memory_space<vmem>>, vector<1x6x128xbf16>
    %147 = vector.shape_cast %146 : vector<1x6x128xbf16> to vector<6x128xbf16>
    %cst_121 = arith.constant dense<0.000000e+00> : vector<8x128xf32>
    %148 = tpu.matmul %145, %147, %cst_121 {dimension_numbers = #tpu.dot_dimension_numbers<[1], [0], [0], [1], [0, 0, 1, 1], [], []>} : vector<8x6xbf16>, vector<6x128xbf16>, vector<8x128xf32> -> vector<8x128xf32>
    %149 = arith.addf %144, %148 : vector<8x128xf32>
    %c0_122 = arith.constant 0 : index
    %c5_123 = arith.constant 5 : index
    %c0_124 = arith.constant 0 : index
    %c0_125 = arith.constant 0 : index
    %150 = vector.load %arg1[%c0_122, %c5_123, %c0_124, %c0_125] : memref<1x20x10x6xbf16, #tpu.memory_space<vmem>>, vector<1x1x10x6xbf16>
    %151 = vector.shape_cast %150 : vector<1x1x10x6xbf16> to vector<10x6xbf16>
    %152 = vector.extract_strided_slice %151 {offsets = [0, 0], sizes = [8, 6], strides = [1, 1]} : vector<10x6xbf16> to vector<8x6xbf16>
    %c9_126 = arith.constant 9 : index
    %c0_127 = arith.constant 0 : index
    %c0_128 = arith.constant 0 : index
    %153 = vector.load %arg2[%c9_126, %c0_127, %c0_128] : memref<15x6x128xbf16, #tpu.memory_space<vmem>>, vector<1x6x128xbf16>
    %154 = vector.shape_cast %153 : vector<1x6x128xbf16> to vector<6x128xbf16>
    %cst_129 = arith.constant dense<0.000000e+00> : vector<8x128xf32>
    %155 = tpu.matmul %152, %154, %cst_129 {dimension_numbers = #tpu.dot_dimension_numbers<[1], [0], [0], [1], [0, 0, 1, 1], [], []>} : vector<8x6xbf16>, vector<6x128xbf16>, vector<8x128xf32> -> vector<8x128xf32>
    %156 = arith.addf %149, %155 : vector<8x128xf32>
    %157 = vector.extract_strided_slice %151 {offsets = [1, 0], sizes = [8, 6], strides = [1, 1]} : vector<10x6xbf16> to vector<8x6xbf16>
    %c10_130 = arith.constant 10 : index
    %c0_131 = arith.constant 0 : index
    %c0_132 = arith.constant 0 : index
    %158 = vector.load %arg2[%c10_130, %c0_131, %c0_132] : memref<15x6x128xbf16, #tpu.memory_space<vmem>>, vector<1x6x128xbf16>
    %159 = vector.shape_cast %158 : vector<1x6x128xbf16> to vector<6x128xbf16>
    %cst_133 = arith.constant dense<0.000000e+00> : vector<8x128xf32>
    %160 = tpu.matmul %157, %159, %cst_133 {dimension_numbers = #tpu.dot_dimension_numbers<[1], [0], [0], [1], [0, 0, 1, 1], [], []>} : vector<8x6xbf16>, vector<6x128xbf16>, vector<8x128xf32> -> vector<8x128xf32>
    %161 = arith.addf %156, %160 : vector<8x128xf32>
    %162 = vector.extract_strided_slice %151 {offsets = [2, 0], sizes = [8, 6], strides = [1, 1]} : vector<10x6xbf16> to vector<8x6xbf16>
    %c11_134 = arith.constant 11 : index
    %c0_135 = arith.constant 0 : index
    %c0_136 = arith.constant 0 : index
    %163 = vector.load %arg2[%c11_134, %c0_135, %c0_136] : memref<15x6x128xbf16, #tpu.memory_space<vmem>>, vector<1x6x128xbf16>
    %164 = vector.shape_cast %163 : vector<1x6x128xbf16> to vector<6x128xbf16>
    %cst_137 = arith.constant dense<0.000000e+00> : vector<8x128xf32>
    %165 = tpu.matmul %162, %164, %cst_137 {dimension_numbers = #tpu.dot_dimension_numbers<[1], [0], [0], [1], [0, 0, 1, 1], [], []>} : vector<8x6xbf16>, vector<6x128xbf16>, vector<8x128xf32> -> vector<8x128xf32>
    %166 = arith.addf %161, %165 : vector<8x128xf32>
    %c0_138 = arith.constant 0 : index
    %c6_139 = arith.constant 6 : index
    %c0_140 = arith.constant 0 : index
    %c0_141 = arith.constant 0 : index
    %167 = vector.load %arg1[%c0_138, %c6_139, %c0_140, %c0_141] : memref<1x20x10x6xbf16, #tpu.memory_space<vmem>>, vector<1x1x10x6xbf16>
    %168 = vector.shape_cast %167 : vector<1x1x10x6xbf16> to vector<10x6xbf16>
    %169 = vector.extract_strided_slice %168 {offsets = [0, 0], sizes = [8, 6], strides = [1, 1]} : vector<10x6xbf16> to vector<8x6xbf16>
    %c12_142 = arith.constant 12 : index
    %c0_143 = arith.constant 0 : index
    %c0_144 = arith.constant 0 : index
    %170 = vector.load %arg2[%c12_142, %c0_143, %c0_144] : memref<15x6x128xbf16, #tpu.memory_space<vmem>>, vector<1x6x128xbf16>
    %171 = vector.shape_cast %170 : vector<1x6x128xbf16> to vector<6x128xbf16>
    %cst_145 = arith.constant dense<0.000000e+00> : vector<8x128xf32>
    %172 = tpu.matmul %169, %171, %cst_145 {dimension_numbers = #tpu.dot_dimension_numbers<[1], [0], [0], [1], [0, 0, 1, 1], [], []>} : vector<8x6xbf16>, vector<6x128xbf16>, vector<8x128xf32> -> vector<8x128xf32>
    %173 = arith.addf %166, %172 : vector<8x128xf32>
    %174 = vector.extract_strided_slice %168 {offsets = [1, 0], sizes = [8, 6], strides = [1, 1]} : vector<10x6xbf16> to vector<8x6xbf16>
    %c13_146 = arith.constant 13 : index
    %c0_147 = arith.constant 0 : index
    %c0_148 = arith.constant 0 : index
    %175 = vector.load %arg2[%c13_146, %c0_147, %c0_148] : memref<15x6x128xbf16, #tpu.memory_space<vmem>>, vector<1x6x128xbf16>
    %176 = vector.shape_cast %175 : vector<1x6x128xbf16> to vector<6x128xbf16>
    %cst_149 = arith.constant dense<0.000000e+00> : vector<8x128xf32>
    %177 = tpu.matmul %174, %176, %cst_149 {dimension_numbers = #tpu.dot_dimension_numbers<[1], [0], [0], [1], [0, 0, 1, 1], [], []>} : vector<8x6xbf16>, vector<6x128xbf16>, vector<8x128xf32> -> vector<8x128xf32>
    %178 = arith.addf %173, %177 : vector<8x128xf32>
    %179 = vector.extract_strided_slice %168 {offsets = [2, 0], sizes = [8, 6], strides = [1, 1]} : vector<10x6xbf16> to vector<8x6xbf16>
    %c14_150 = arith.constant 14 : index
    %c0_151 = arith.constant 0 : index
    %c0_152 = arith.constant 0 : index
    %180 = vector.load %arg2[%c14_150, %c0_151, %c0_152] : memref<15x6x128xbf16, #tpu.memory_space<vmem>>, vector<1x6x128xbf16>
    %181 = vector.shape_cast %180 : vector<1x6x128xbf16> to vector<6x128xbf16>
    %cst_153 = arith.constant dense<0.000000e+00> : vector<8x128xf32>
    %182 = tpu.matmul %179, %181, %cst_153 {dimension_numbers = #tpu.dot_dimension_numbers<[1], [0], [0], [1], [0, 0, 1, 1], [], []>} : vector<8x6xbf16>, vector<6x128xbf16>, vector<8x128xf32> -> vector<8x128xf32>
    %183 = arith.addf %178, %182 : vector<8x128xf32>
    %c0_154 = arith.constant 0 : index
    %c0_155 = arith.constant 0 : index
    %184 = vector.load %arg3[%c0_154, %c0_155] : memref<1x128xf32, #tpu.memory_space<vmem>>, vector<1x128xf32>
    %185 = vector.broadcast %184 : vector<1x128xf32> to vector<8x128xf32>
    %186 = arith.addf %183, %185 : vector<8x128xf32>
    %cst_156 = arith.constant 0.000000e+00 : f32
    %187 = vector.broadcast %cst_156 : f32 to vector<8x128xf32>
    %188 = arith.cmpf oge, %186, %187 : vector<8x128xf32>
    %cst_157 = arith.constant 2.000000e-01 : f32
    %189 = vector.broadcast %cst_157 : f32 to vector<8x128xf32>
    %190 = arith.mulf %189, %186 : vector<8x128xf32>
    %191 = arith.select %188, %186, %190 : vector<8x128xi1>, vector<8x128xf32>
    %192 = arith.truncf %191 : vector<8x128xf32> to vector<8x128xbf16>
    %c0_158 = arith.constant 0 : index
    %c1_159 = arith.constant 1 : index
    %c0_160 = arith.constant 0 : index
    %c0_161 = arith.constant 0 : index
    %193 = vector.load %arg4[%c0_158, %c1_159, %c0_160, %c0_161] : memref<1x8x8x128xbf16, #tpu.memory_space<vmem>>, vector<1x1x8x128xbf16>
    %194 = vector.shape_cast %193 : vector<1x1x8x128xbf16> to vector<8x128xbf16>
    %195 = vector.shape_cast %192 : vector<8x128xbf16> to vector<1x1x8x128xbf16>
    tpu.vector_store %arg4[%c0_158, %c1_159, %c0_160, %c0_161], %195 {strides = array<i32>} : memref<1x8x8x128xbf16, #tpu.memory_space<vmem>>, vector<1x1x8x128xbf16>,
    %cst_162 = arith.constant 0.000000e+00 : f32
    %196 = vector.broadcast %cst_162 : f32 to vector<8x128xf32>
    %c0_163 = arith.constant 0 : index
    %c4_164 = arith.constant 4 : index
    %c0_165 = arith.constant 0 : index
    %c0_166 = arith.constant 0 : index
    %197 = vector.load %arg1[%c0_163, %c4_164, %c0_165, %c0_166] : memref<1x20x10x6xbf16, #tpu.memory_space<vmem>>, vector<1x1x10x6xbf16>
    %198 = vector.shape_cast %197 : vector<1x1x10x6xbf16> to vector<10x6xbf16>
    %199 = vector.extract_strided_slice %198 {offsets = [0, 0], sizes = [8, 6], strides = [1, 1]} : vector<10x6xbf16> to vector<8x6xbf16>
    %c0_167 = arith.constant 0 : index
    %c0_168 = arith.constant 0 : index
    %c0_169 = arith.constant 0 : index
    %200 = vector.load %arg2[%c0_167, %c0_168, %c0_169] : memref<15x6x128xbf16, #tpu.memory_space<vmem>>, vector<1x6x128xbf16>
    %201 = vector.shape_cast %200 : vector<1x6x128xbf16> to vector<6x128xbf16>
    %cst_170 = arith.constant dense<0.000000e+00> : vector<8x128xf32>
    %202 = tpu.matmul %199, %201, %cst_170 {dimension_numbers = #tpu.dot_dimension_numbers<[1], [0], [0], [1], [0, 0, 1, 1], [], []>} : vector<8x6xbf16>, vector<6x128xbf16>, vector<8x128xf32> -> vector<8x128xf32>
    %203 = arith.addf %196, %202 : vector<8x128xf32>
    %204 = vector.extract_strided_slice %198 {offsets = [1, 0], sizes = [8, 6], strides = [1, 1]} : vector<10x6xbf16> to vector<8x6xbf16>
    %c1_171 = arith.constant 1 : index
    %c0_172 = arith.constant 0 : index
    %c0_173 = arith.constant 0 : index
    %205 = vector.load %arg2[%c1_171, %c0_172, %c0_173] : memref<15x6x128xbf16, #tpu.memory_space<vmem>>, vector<1x6x128xbf16>
    %206 = vector.shape_cast %205 : vector<1x6x128xbf16> to vector<6x128xbf16>
    %cst_174 = arith.constant dense<0.000000e+00> : vector<8x128xf32>
    %207 = tpu.matmul %204, %206, %cst_174 {dimension_numbers = #tpu.dot_dimension_numbers<[1], [0], [0], [1], [0, 0, 1, 1], [], []>} : vector<8x6xbf16>, vector<6x128xbf16>, vector<8x128xf32> -> vector<8x128xf32>
    %208 = arith.addf %203, %207 : vector<8x128xf32>
    %209 = vector.extract_strided_slice %198 {offsets = [2, 0], sizes = [8, 6], strides = [1, 1]} : vector<10x6xbf16> to vector<8x6xbf16>
    %c2_175 = arith.constant 2 : index
    %c0_176 = arith.constant 0 : index
    %c0_177 = arith.constant 0 : index
    %210 = vector.load %arg2[%c2_175, %c0_176, %c0_177] : memref<15x6x128xbf16, #tpu.memory_space<vmem>>, vector<1x6x128xbf16>
    %211 = vector.shape_cast %210 : vector<1x6x128xbf16> to vector<6x128xbf16>
    %cst_178 = arith.constant dense<0.000000e+00> : vector<8x128xf32>
    %212 = tpu.matmul %209, %211, %cst_178 {dimension_numbers = #tpu.dot_dimension_numbers<[1], [0], [0], [1], [0, 0, 1, 1], [], []>} : vector<8x6xbf16>, vector<6x128xbf16>, vector<8x128xf32> -> vector<8x128xf32>
    %213 = arith.addf %208, %212 : vector<8x128xf32>
    %c0_179 = arith.constant 0 : index
    %c5_180 = arith.constant 5 : index
    %c0_181 = arith.constant 0 : index
    %c0_182 = arith.constant 0 : index
    %214 = vector.load %arg1[%c0_179, %c5_180, %c0_181, %c0_182] : memref<1x20x10x6xbf16, #tpu.memory_space<vmem>>, vector<1x1x10x6xbf16>
    %215 = vector.shape_cast %214 : vector<1x1x10x6xbf16> to vector<10x6xbf16>
    %216 = vector.extract_strided_slice %215 {offsets = [0, 0], sizes = [8, 6], strides = [1, 1]} : vector<10x6xbf16> to vector<8x6xbf16>
    %c3_183 = arith.constant 3 : index
    %c0_184 = arith.constant 0 : index
    %c0_185 = arith.constant 0 : index
    %217 = vector.load %arg2[%c3_183, %c0_184, %c0_185] : memref<15x6x128xbf16, #tpu.memory_space<vmem>>, vector<1x6x128xbf16>
    %218 = vector.shape_cast %217 : vector<1x6x128xbf16> to vector<6x128xbf16>
    %cst_186 = arith.constant dense<0.000000e+00> : vector<8x128xf32>
    %219 = tpu.matmul %216, %218, %cst_186 {dimension_numbers = #tpu.dot_dimension_numbers<[1], [0], [0], [1], [0, 0, 1, 1], [], []>} : vector<8x6xbf16>, vector<6x128xbf16>, vector<8x128xf32> -> vector<8x128xf32>
    %220 = arith.addf %213, %219 : vector<8x128xf32>
    %221 = vector.extract_strided_slice %215 {offsets = [1, 0], sizes = [8, 6], strides = [1, 1]} : vector<10x6xbf16> to vector<8x6xbf16>
    %c4_187 = arith.constant 4 : index
    %c0_188 = arith.constant 0 : index
    %c0_189 = arith.constant 0 : index
    %222 = vector.load %arg2[%c4_187, %c0_188, %c0_189] : memref<15x6x128xbf16, #tpu.memory_space<vmem>>, vector<1x6x128xbf16>
    %223 = vector.shape_cast %222 : vector<1x6x128xbf16> to vector<6x128xbf16>
    %cst_190 = arith.constant dense<0.000000e+00> : vector<8x128xf32>
    %224 = tpu.matmul %221, %223, %cst_190 {dimension_numbers = #tpu.dot_dimension_numbers<[1], [0], [0], [1], [0, 0, 1, 1], [], []>} : vector<8x6xbf16>, vector<6x128xbf16>, vector<8x128xf32> -> vector<8x128xf32>
    %225 = arith.addf %220, %224 : vector<8x128xf32>
    %226 = vector.extract_strided_slice %215 {offsets = [2, 0], sizes = [8, 6], strides = [1, 1]} : vector<10x6xbf16> to vector<8x6xbf16>
    %c5_191 = arith.constant 5 : index
    %c0_192 = arith.constant 0 : index
    %c0_193 = arith.constant 0 : index
    %227 = vector.load %arg2[%c5_191, %c0_192, %c0_193] : memref<15x6x128xbf16, #tpu.memory_space<vmem>>, vector<1x6x128xbf16>
    %228 = vector.shape_cast %227 : vector<1x6x128xbf16> to vector<6x128xbf16>
    %cst_194 = arith.constant dense<0.000000e+00> : vector<8x128xf32>
    %229 = tpu.matmul %226, %228, %cst_194 {dimension_numbers = #tpu.dot_dimension_numbers<[1], [0], [0], [1], [0, 0, 1, 1], [], []>} : vector<8x6xbf16>, vector<6x128xbf16>, vector<8x128xf32> -> vector<8x128xf32>
    %230 = arith.addf %225, %229 : vector<8x128xf32>
    %c0_195 = arith.constant 0 : index
    %c6_196 = arith.constant 6 : index
    %c0_197 = arith.constant 0 : index
    %c0_198 = arith.constant 0 : index
    %231 = vector.load %arg1[%c0_195, %c6_196, %c0_197, %c0_198] : memref<1x20x10x6xbf16, #tpu.memory_space<vmem>>, vector<1x1x10x6xbf16>
    %232 = vector.shape_cast %231 : vector<1x1x10x6xbf16> to vector<10x6xbf16>
    %233 = vector.extract_strided_slice %232 {offsets = [0, 0], sizes = [8, 6], strides = [1, 1]} : vector<10x6xbf16> to vector<8x6xbf16>
    %c6_199 = arith.constant 6 : index
    %c0_200 = arith.constant 0 : index
    %c0_201 = arith.constant 0 : index
    %234 = vector.load %arg2[%c6_199, %c0_200, %c0_201] : memref<15x6x128xbf16, #tpu.memory_space<vmem>>, vector<1x6x128xbf16>
    %235 = vector.shape_cast %234 : vector<1x6x128xbf16> to vector<6x128xbf16>
    %cst_202 = arith.constant dense<0.000000e+00> : vector<8x128xf32>
    %236 = tpu.matmul %233, %235, %cst_202 {dimension_numbers = #tpu.dot_dimension_numbers<[1], [0], [0], [1], [0, 0, 1, 1], [], []>} : vector<8x6xbf16>, vector<6x128xbf16>, vector<8x128xf32> -> vector<8x128xf32>
    %237 = arith.addf %230, %236 : vector<8x128xf32>
    %238 = vector.extract_strided_slice %232 {offsets = [1, 0], sizes = [8, 6], strides = [1, 1]} : vector<10x6xbf16> to vector<8x6xbf16>
    %c7_203 = arith.constant 7 : index
    %c0_204 = arith.constant 0 : index
    %c0_205 = arith.constant 0 : index
    %239 = vector.load %arg2[%c7_203, %c0_204, %c0_205] : memref<15x6x128xbf16, #tpu.memory_space<vmem>>, vector<1x6x128xbf16>
    %240 = vector.shape_cast %239 : vector<1x6x128xbf16> to vector<6x128xbf16>
    %cst_206 = arith.constant dense<0.000000e+00> : vector<8x128xf32>
    %241 = tpu.matmul %238, %240, %cst_206 {dimension_numbers = #tpu.dot_dimension_numbers<[1], [0], [0], [1], [0, 0, 1, 1], [], []>} : vector<8x6xbf16>, vector<6x128xbf16>, vector<8x128xf32> -> vector<8x128xf32>
    %242 = arith.addf %237, %241 : vector<8x128xf32>
    %243 = vector.extract_strided_slice %232 {offsets = [2, 0], sizes = [8, 6], strides = [1, 1]} : vector<10x6xbf16> to vector<8x6xbf16>
    %c8_207 = arith.constant 8 : index
    %c0_208 = arith.constant 0 : index
    %c0_209 = arith.constant 0 : index
    %244 = vector.load %arg2[%c8_207, %c0_208, %c0_209] : memref<15x6x128xbf16, #tpu.memory_space<vmem>>, vector<1x6x128xbf16>
    %245 = vector.shape_cast %244 : vector<1x6x128xbf16> to vector<6x128xbf16>
    %cst_210 = arith.constant dense<0.000000e+00> : vector<8x128xf32>
    %246 = tpu.matmul %243, %245, %cst_210 {dimension_numbers = #tpu.dot_dimension_numbers<[1], [0], [0], [1], [0, 0, 1, 1], [], []>} : vector<8x6xbf16>, vector<6x128xbf16>, vector<8x128xf32> -> vector<8x128xf32>
    %247 = arith.addf %242, %246 : vector<8x128xf32>
    %c0_211 = arith.constant 0 : index
    %c7_212 = arith.constant 7 : index
    %c0_213 = arith.constant 0 : index
    %c0_214 = arith.constant 0 : index
    %248 = vector.load %arg1[%c0_211, %c7_212, %c0_213, %c0_214] : memref<1x20x10x6xbf16, #tpu.memory_space<vmem>>, vector<1x1x10x6xbf16>
    %249 = vector.shape_cast %248 : vector<1x1x10x6xbf16> to vector<10x6xbf16>
    %250 = vector.extract_strided_slice %249 {offsets = [0, 0], sizes = [8, 6], strides = [1, 1]} : vector<10x6xbf16> to vector<8x6xbf16>
    %c9_215 = arith.constant 9 : index
    %c0_216 = arith.constant 0 : index
    %c0_217 = arith.constant 0 : index
    %251 = vector.load %arg2[%c9_215, %c0_216, %c0_217] : memref<15x6x128xbf16, #tpu.memory_space<vmem>>, vector<1x6x128xbf16>
    %252 = vector.shape_cast %251 : vector<1x6x128xbf16> to vector<6x128xbf16>
    %cst_218 = arith.constant dense<0.000000e+00> : vector<8x128xf32>
    %253 = tpu.matmul %250, %252, %cst_218 {dimension_numbers = #tpu.dot_dimension_numbers<[1], [0], [0], [1], [0, 0, 1, 1], [], []>} : vector<8x6xbf16>, vector<6x128xbf16>, vector<8x128xf32> -> vector<8x128xf32>
    %254 = arith.addf %247, %253 : vector<8x128xf32>
    %255 = vector.extract_strided_slice %249 {offsets = [1, 0], sizes = [8, 6], strides = [1, 1]} : vector<10x6xbf16> to vector<8x6xbf16>
    %c10_219 = arith.constant 10 : index
    %c0_220 = arith.constant 0 : index
    %c0_221 = arith.constant 0 : index
    %256 = vector.load %arg2[%c10_219, %c0_220, %c0_221] : memref<15x6x128xbf16, #tpu.memory_space<vmem>>, vector<1x6x128xbf16>
    %257 = vector.shape_cast %256 : vector<1x6x128xbf16> to vector<6x128xbf16>
    %cst_222 = arith.constant dense<0.000000e+00> : vector<8x128xf32>
    %258 = tpu.matmul %255, %257, %cst_222 {dimension_numbers = #tpu.dot_dimension_numbers<[1], [0], [0], [1], [0, 0, 1, 1], [], []>} : vector<8x6xbf16>, vector<6x128xbf16>, vector<8x128xf32> -> vector<8x128xf32>
    %259 = arith.addf %254, %258 : vector<8x128xf32>
    %260 = vector.extract_strided_slice %249 {offsets = [2, 0], sizes = [8, 6], strides = [1, 1]} : vector<10x6xbf16> to vector<8x6xbf16>
    %c11_223 = arith.constant 11 : index
    %c0_224 = arith.constant 0 : index
    %c0_225 = arith.constant 0 : index
    %261 = vector.load %arg2[%c11_223, %c0_224, %c0_225] : memref<15x6x128xbf16, #tpu.memory_space<vmem>>, vector<1x6x128xbf16>
    %262 = vector.shape_cast %261 : vector<1x6x128xbf16> to vector<6x128xbf16>
    %cst_226 = arith.constant dense<0.000000e+00> : vector<8x128xf32>
    %263 = tpu.matmul %260, %262, %cst_226 {dimension_numbers = #tpu.dot_dimension_numbers<[1], [0], [0], [1], [0, 0, 1, 1], [], []>} : vector<8x6xbf16>, vector<6x128xbf16>, vector<8x128xf32> -> vector<8x128xf32>
    %264 = arith.addf %259, %263 : vector<8x128xf32>
    %c0_227 = arith.constant 0 : index
    %c8_228 = arith.constant 8 : index
    %c0_229 = arith.constant 0 : index
    %c0_230 = arith.constant 0 : index
    %265 = vector.load %arg1[%c0_227, %c8_228, %c0_229, %c0_230] : memref<1x20x10x6xbf16, #tpu.memory_space<vmem>>, vector<1x1x10x6xbf16>
    %266 = vector.shape_cast %265 : vector<1x1x10x6xbf16> to vector<10x6xbf16>
    %267 = vector.extract_strided_slice %266 {offsets = [0, 0], sizes = [8, 6], strides = [1, 1]} : vector<10x6xbf16> to vector<8x6xbf16>
    %c12_231 = arith.constant 12 : index
    %c0_232 = arith.constant 0 : index
    %c0_233 = arith.constant 0 : index
    %268 = vector.load %arg2[%c12_231, %c0_232, %c0_233] : memref<15x6x128xbf16, #tpu.memory_space<vmem>>, vector<1x6x128xbf16>
    %269 = vector.shape_cast %268 : vector<1x6x128xbf16> to vector<6x128xbf16>
    %cst_234 = arith.constant dense<0.000000e+00> : vector<8x128xf32>
    %270 = tpu.matmul %267, %269, %cst_234 {dimension_numbers = #tpu.dot_dimension_numbers<[1], [0], [0], [1], [0, 0, 1, 1], [], []>} : vector<8x6xbf16>, vector<6x128xbf16>, vector<8x128xf32> -> vector<8x128xf32>
    %271 = arith.addf %264, %270 : vector<8x128xf32>
    %272 = vector.extract_strided_slice %266 {offsets = [1, 0], sizes = [8, 6], strides = [1, 1]} : vector<10x6xbf16> to vector<8x6xbf16>
    %c13_235 = arith.constant 13 : index
    %c0_236 = arith.constant 0 : index
    %c0_237 = arith.constant 0 : index
    %273 = vector.load %arg2[%c13_235, %c0_236, %c0_237] : memref<15x6x128xbf16, #tpu.memory_space<vmem>>, vector<1x6x128xbf16>
    %274 = vector.shape_cast %273 : vector<1x6x128xbf16> to vector<6x128xbf16>
    %cst_238 = arith.constant dense<0.000000e+00> : vector<8x128xf32>
    %275 = tpu.matmul %272, %274, %cst_238 {dimension_numbers = #tpu.dot_dimension_numbers<[1], [0], [0], [1], [0, 0, 1, 1], [], []>} : vector<8x6xbf16>, vector<6x128xbf16>, vector<8x128xf32> -> vector<8x128xf32>
    %276 = arith.addf %271, %275 : vector<8x128xf32>
    %277 = vector.extract_strided_slice %266 {offsets = [2, 0], sizes = [8, 6], strides = [1, 1]} : vector<10x6xbf16> to vector<8x6xbf16>
    %c14_239 = arith.constant 14 : index
    %c0_240 = arith.constant 0 : index
    %c0_241 = arith.constant 0 : index
    %278 = vector.load %arg2[%c14_239, %c0_240, %c0_241] : memref<15x6x128xbf16, #tpu.memory_space<vmem>>, vector<1x6x128xbf16>
    %279 = vector.shape_cast %278 : vector<1x6x128xbf16> to vector<6x128xbf16>
    %cst_242 = arith.constant dense<0.000000e+00> : vector<8x128xf32>
    %280 = tpu.matmul %277, %279, %cst_242 {dimension_numbers = #tpu.dot_dimension_numbers<[1], [0], [0], [1], [0, 0, 1, 1], [], []>} : vector<8x6xbf16>, vector<6x128xbf16>, vector<8x128xf32> -> vector<8x128xf32>
    %281 = arith.addf %276, %280 : vector<8x128xf32>
    %c0_243 = arith.constant 0 : index
    %c0_244 = arith.constant 0 : index
    %282 = vector.load %arg3[%c0_243, %c0_244] : memref<1x128xf32, #tpu.memory_space<vmem>>, vector<1x128xf32>
    %283 = vector.broadcast %282 : vector<1x128xf32> to vector<8x128xf32>
    %284 = arith.addf %281, %283 : vector<8x128xf32>
    %cst_245 = arith.constant 0.000000e+00 : f32
    %285 = vector.broadcast %cst_245 : f32 to vector<8x128xf32>
    %286 = arith.cmpf oge, %284, %285 : vector<8x128xf32>
    %cst_246 = arith.constant 2.000000e-01 : f32
    %287 = vector.broadcast %cst_246 : f32 to vector<8x128xf32>
    %288 = arith.mulf %287, %284 : vector<8x128xf32>
    %289 = arith.select %286, %284, %288 : vector<8x128xi1>, vector<8x128xf32>
    %290 = arith.truncf %289 : vector<8x128xf32> to vector<8x128xbf16>
    %c0_247 = arith.constant 0 : index
    %c2_248 = arith.constant 2 : index
    %c0_249 = arith.constant 0 : index
    %c0_250 = arith.constant 0 : index
    %291 = vector.load %arg4[%c0_247, %c2_248, %c0_249, %c0_250] : memref<1x8x8x128xbf16, #tpu.memory_space<vmem>>, vector<1x1x8x128xbf16>
    %292 = vector.shape_cast %291 : vector<1x1x8x128xbf16> to vector<8x128xbf16>
    %293 = vector.shape_cast %290 : vector<8x128xbf16> to vector<1x1x8x128xbf16>
    tpu.vector_store %arg4[%c0_247, %c2_248, %c0_249, %c0_250], %293 {strides = array<i32>} : memref<1x8x8x128xbf16, #tpu.memory_space<vmem>>, vector<1x1x8x128xbf16>,
    %cst_251 = arith.constant 0.000000e+00 : f32
    %294 = vector.broadcast %cst_251 : f32 to vector<8x128xf32>
    %c0_252 = arith.constant 0 : index
    %c6_253 = arith.constant 6 : index
    %c0_254 = arith.constant 0 : index
    %c0_255 = arith.constant 0 : index
    %295 = vector.load %arg1[%c0_252, %c6_253, %c0_254, %c0_255] : memref<1x20x10x6xbf16, #tpu.memory_space<vmem>>, vector<1x1x10x6xbf16>
    %296 = vector.shape_cast %295 : vector<1x1x10x6xbf16> to vector<10x6xbf16>
    %297 = vector.extract_strided_slice %296 {offsets = [0, 0], sizes = [8, 6], strides = [1, 1]} : vector<10x6xbf16> to vector<8x6xbf16>
    %c0_256 = arith.constant 0 : index
    %c0_257 = arith.constant 0 : index
    %c0_258 = arith.constant 0 : index
    %298 = vector.load %arg2[%c0_256, %c0_257, %c0_258] : memref<15x6x128xbf16, #tpu.memory_space<vmem>>, vector<1x6x128xbf16>
    %299 = vector.shape_cast %298 : vector<1x6x128xbf16> to vector<6x128xbf16>
    %cst_259 = arith.constant dense<0.000000e+00> : vector<8x128xf32>
    %300 = tpu.matmul %297, %299, %cst_259 {dimension_numbers = #tpu.dot_dimension_numbers<[1], [0], [0], [1], [0, 0, 1, 1], [], []>} : vector<8x6xbf16>, vector<6x128xbf16>, vector<8x128xf32> -> vector<8x128xf32>
    %301 = arith.addf %294, %300 : vector<8x128xf32>
    %302 = vector.extract_strided_slice %296 {offsets = [1, 0], sizes = [8, 6], strides = [1, 1]} : vector<10x6xbf16> to vector<8x6xbf16>
    %c1_260 = arith.constant 1 : index
    %c0_261 = arith.constant 0 : index
    %c0_262 = arith.constant 0 : index
    %303 = vector.load %arg2[%c1_260, %c0_261, %c0_262] : memref<15x6x128xbf16, #tpu.memory_space<vmem>>, vector<1x6x128xbf16>
    %304 = vector.shape_cast %303 : vector<1x6x128xbf16> to vector<6x128xbf16>
    %cst_263 = arith.constant dense<0.000000e+00> : vector<8x128xf32>
    %305 = tpu.matmul %302, %304, %cst_263 {dimension_numbers = #tpu.dot_dimension_numbers<[1], [0], [0], [1], [0, 0, 1, 1], [], []>} : vector<8x6xbf16>, vector<6x128xbf16>, vector<8x128xf32> -> vector<8x128xf32>
    %306 = arith.addf %301, %305 : vector<8x128xf32>
    %307 = vector.extract_strided_slice %296 {offsets = [2, 0], sizes = [8, 6], strides = [1, 1]} : vector<10x6xbf16> to vector<8x6xbf16>
    %c2_264 = arith.constant 2 : index
    %c0_265 = arith.constant 0 : index
    %c0_266 = arith.constant 0 : index
    %308 = vector.load %arg2[%c2_264, %c0_265, %c0_266] : memref<15x6x128xbf16, #tpu.memory_space<vmem>>, vector<1x6x128xbf16>
    %309 = vector.shape_cast %308 : vector<1x6x128xbf16> to vector<6x128xbf16>
    %cst_267 = arith.constant dense<0.000000e+00> : vector<8x128xf32>
    %310 = tpu.matmul %307, %309, %cst_267 {dimension_numbers = #tpu.dot_dimension_numbers<[1], [0], [0], [1], [0, 0, 1, 1], [], []>} : vector<8x6xbf16>, vector<6x128xbf16>, vector<8x128xf32> -> vector<8x128xf32>
    %311 = arith.addf %306, %310 : vector<8x128xf32>
    %c0_268 = arith.constant 0 : index
    %c7_269 = arith.constant 7 : index
    %c0_270 = arith.constant 0 : index
    %c0_271 = arith.constant 0 : index
    %312 = vector.load %arg1[%c0_268, %c7_269, %c0_270, %c0_271] : memref<1x20x10x6xbf16, #tpu.memory_space<vmem>>, vector<1x1x10x6xbf16>
    %313 = vector.shape_cast %312 : vector<1x1x10x6xbf16> to vector<10x6xbf16>
    %314 = vector.extract_strided_slice %313 {offsets = [0, 0], sizes = [8, 6], strides = [1, 1]} : vector<10x6xbf16> to vector<8x6xbf16>
    %c3_272 = arith.constant 3 : index
    %c0_273 = arith.constant 0 : index
    %c0_274 = arith.constant 0 : index
    %315 = vector.load %arg2[%c3_272, %c0_273, %c0_274] : memref<15x6x128xbf16, #tpu.memory_space<vmem>>, vector<1x6x128xbf16>
    %316 = vector.shape_cast %315 : vector<1x6x128xbf16> to vector<6x128xbf16>
    %cst_275 = arith.constant dense<0.000000e+00> : vector<8x128xf32>
    %317 = tpu.matmul %314, %316, %cst_275 {dimension_numbers = #tpu.dot_dimension_numbers<[1], [0], [0], [1], [0, 0, 1, 1], [], []>} : vector<8x6xbf16>, vector<6x128xbf16>, vector<8x128xf32> -> vector<8x128xf32>
    %318 = arith.addf %311, %317 : vector<8x128xf32>
    %319 = vector.extract_strided_slice %313 {offsets = [1, 0], sizes = [8, 6], strides = [1, 1]} : vector<10x6xbf16> to vector<8x6xbf16>
    %c4_276 = arith.constant 4 : index
    %c0_277 = arith.constant 0 : index
    %c0_278 = arith.constant 0 : index
    %320 = vector.load %arg2[%c4_276, %c0_277, %c0_278] : memref<15x6x128xbf16, #tpu.memory_space<vmem>>, vector<1x6x128xbf16>
    %321 = vector.shape_cast %320 : vector<1x6x128xbf16> to vector<6x128xbf16>
    %cst_279 = arith.constant dense<0.000000e+00> : vector<8x128xf32>
    %322 = tpu.matmul %319, %321, %cst_279 {dimension_numbers = #tpu.dot_dimension_numbers<[1], [0], [0], [1], [0, 0, 1, 1], [], []>} : vector<8x6xbf16>, vector<6x128xbf16>, vector<8x128xf32> -> vector<8x128xf32>
    %323 = arith.addf %318, %322 : vector<8x128xf32>
    %324 = vector.extract_strided_slice %313 {offsets = [2, 0], sizes = [8, 6], strides = [1, 1]} : vector<10x6xbf16> to vector<8x6xbf16>
    %c5_280 = arith.constant 5 : index
    %c0_281 = arith.constant 0 : index
    %c0_282 = arith.constant 0 : index
    %325 = vector.load %arg2[%c5_280, %c0_281, %c0_282] : memref<15x6x128xbf16, #tpu.memory_space<vmem>>, vector<1x6x128xbf16>
    %326 = vector.shape_cast %325 : vector<1x6x128xbf16> to vector<6x128xbf16>
    %cst_283 = arith.constant dense<0.000000e+00> : vector<8x128xf32>
    %327 = tpu.matmul %324, %326, %cst_283 {dimension_numbers = #tpu.dot_dimension_numbers<[1], [0], [0], [1], [0, 0, 1, 1], [], []>} : vector<8x6xbf16>, vector<6x128xbf16>, vector<8x128xf32> -> vector<8x128xf32>
    %328 = arith.addf %323, %327 : vector<8x128xf32>
    %c0_284 = arith.constant 0 : index
    %c8_285 = arith.constant 8 : index
    %c0_286 = arith.constant 0 : index
    %c0_287 = arith.constant 0 : index
    %329 = vector.load %arg1[%c0_284, %c8_285, %c0_286, %c0_287] : memref<1x20x10x6xbf16, #tpu.memory_space<vmem>>, vector<1x1x10x6xbf16>
    %330 = vector.shape_cast %329 : vector<1x1x10x6xbf16> to vector<10x6xbf16>
    %331 = vector.extract_strided_slice %330 {offsets = [0, 0], sizes = [8, 6], strides = [1, 1]} : vector<10x6xbf16> to vector<8x6xbf16>
    %c6_288 = arith.constant 6 : index
    %c0_289 = arith.constant 0 : index
    %c0_290 = arith.constant 0 : index
    %332 = vector.load %arg2[%c6_288, %c0_289, %c0_290] : memref<15x6x128xbf16, #tpu.memory_space<vmem>>, vector<1x6x128xbf16>
    %333 = vector.shape_cast %332 : vector<1x6x128xbf16> to vector<6x128xbf16>
    %cst_291 = arith.constant dense<0.000000e+00> : vector<8x128xf32>
    %334 = tpu.matmul %331, %333, %cst_291 {dimension_numbers = #tpu.dot_dimension_numbers<[1], [0], [0], [1], [0, 0, 1, 1], [], []>} : vector<8x6xbf16>, vector<6x128xbf16>, vector<8x128xf32> -> vector<8x128xf32>
    %335 = arith.addf %328, %334 : vector<8x128xf32>
    %336 = vector.extract_strided_slice %330 {offsets = [1, 0], sizes = [8, 6], strides = [1, 1]} : vector<10x6xbf16> to vector<8x6xbf16>
    %c7_292 = arith.constant 7 : index
    %c0_293 = arith.constant 0 : index
    %c0_294 = arith.constant 0 : index
    %337 = vector.load %arg2[%c7_292, %c0_293, %c0_294] : memref<15x6x128xbf16, #tpu.memory_space<vmem>>, vector<1x6x128xbf16>
    %338 = vector.shape_cast %337 : vector<1x6x128xbf16> to vector<6x128xbf16>
    %cst_295 = arith.constant dense<0.000000e+00> : vector<8x128xf32>
    %339 = tpu.matmul %336, %338, %cst_295 {dimension_numbers = #tpu.dot_dimension_numbers<[1], [0], [0], [1], [0, 0, 1, 1], [], []>} : vector<8x6xbf16>, vector<6x128xbf16>, vector<8x128xf32> -> vector<8x128xf32>
    %340 = arith.addf %335, %339 : vector<8x128xf32>
    %341 = vector.extract_strided_slice %330 {offsets = [2, 0], sizes = [8, 6], strides = [1, 1]} : vector<10x6xbf16> to vector<8x6xbf16>
    %c8_296 = arith.constant 8 : index
    %c0_297 = arith.constant 0 : index
    %c0_298 = arith.constant 0 : index
    %342 = vector.load %arg2[%c8_296, %c0_297, %c0_298] : memref<15x6x128xbf16, #tpu.memory_space<vmem>>, vector<1x6x128xbf16>
    %343 = vector.shape_cast %342 : vector<1x6x128xbf16> to vector<6x128xbf16>
    %cst_299 = arith.constant dense<0.000000e+00> : vector<8x128xf32>
    %344 = tpu.matmul %341, %343, %cst_299 {dimension_numbers = #tpu.dot_dimension_numbers<[1], [0], [0], [1], [0, 0, 1, 1], [], []>} : vector<8x6xbf16>, vector<6x128xbf16>, vector<8x128xf32> -> vector<8x128xf32>
    %345 = arith.addf %340, %344 : vector<8x128xf32>
    %c0_300 = arith.constant 0 : index
    %c9_301 = arith.constant 9 : index
    %c0_302 = arith.constant 0 : index
    %c0_303 = arith.constant 0 : index
    %346 = vector.load %arg1[%c0_300, %c9_301, %c0_302, %c0_303] : memref<1x20x10x6xbf16, #tpu.memory_space<vmem>>, vector<1x1x10x6xbf16>
    %347 = vector.shape_cast %346 : vector<1x1x10x6xbf16> to vector<10x6xbf16>
    %348 = vector.extract_strided_slice %347 {offsets = [0, 0], sizes = [8, 6], strides = [1, 1]} : vector<10x6xbf16> to vector<8x6xbf16>
    %c9_304 = arith.constant 9 : index
    %c0_305 = arith.constant 0 : index
    %c0_306 = arith.constant 0 : index
    %349 = vector.load %arg2[%c9_304, %c0_305, %c0_306] : memref<15x6x128xbf16, #tpu.memory_space<vmem>>, vector<1x6x128xbf16>
    %350 = vector.shape_cast %349 : vector<1x6x128xbf16> to vector<6x128xbf16>
    %cst_307 = arith.constant dense<0.000000e+00> : vector<8x128xf32>
    %351 = tpu.matmul %348, %350, %cst_307 {dimension_numbers = #tpu.dot_dimension_numbers<[1], [0], [0], [1], [0, 0, 1, 1], [], []>} : vector<8x6xbf16>, vector<6x128xbf16>, vector<8x128xf32> -> vector<8x128xf32>
    %352 = arith.addf %345, %351 : vector<8x128xf32>
    %353 = vector.extract_strided_slice %347 {offsets = [1, 0], sizes = [8, 6], strides = [1, 1]} : vector<10x6xbf16> to vector<8x6xbf16>
    %c10_308 = arith.constant 10 : index
    %c0_309 = arith.constant 0 : index
    %c0_310 = arith.constant 0 : index
    %354 = vector.load %arg2[%c10_308, %c0_309, %c0_310] : memref<15x6x128xbf16, #tpu.memory_space<vmem>>, vector<1x6x128xbf16>
    %355 = vector.shape_cast %354 : vector<1x6x128xbf16> to vector<6x128xbf16>
    %cst_311 = arith.constant dense<0.000000e+00> : vector<8x128xf32>
    %356 = tpu.matmul %353, %355, %cst_311 {dimension_numbers = #tpu.dot_dimension_numbers<[1], [0], [0], [1], [0, 0, 1, 1], [], []>} : vector<8x6xbf16>, vector<6x128xbf16>, vector<8x128xf32> -> vector<8x128xf32>
    %357 = arith.addf %352, %356 : vector<8x128xf32>
    %358 = vector.extract_strided_slice %347 {offsets = [2, 0], sizes = [8, 6], strides = [1, 1]} : vector<10x6xbf16> to vector<8x6xbf16>
    %c11_312 = arith.constant 11 : index
    %c0_313 = arith.constant 0 : index
    %c0_314 = arith.constant 0 : index
    %359 = vector.load %arg2[%c11_312, %c0_313, %c0_314] : memref<15x6x128xbf16, #tpu.memory_space<vmem>>, vector<1x6x128xbf16>
    %360 = vector.shape_cast %359 : vector<1x6x128xbf16> to vector<6x128xbf16>
    %cst_315 = arith.constant dense<0.000000e+00> : vector<8x128xf32>
    %361 = tpu.matmul %358, %360, %cst_315 {dimension_numbers = #tpu.dot_dimension_numbers<[1], [0], [0], [1], [0, 0, 1, 1], [], []>} : vector<8x6xbf16>, vector<6x128xbf16>, vector<8x128xf32> -> vector<8x128xf32>
    %362 = arith.addf %357, %361 : vector<8x128xf32>
    %c0_316 = arith.constant 0 : index
    %c10_317 = arith.constant 10 : index
    %c0_318 = arith.constant 0 : index
    %c0_319 = arith.constant 0 : index
    %363 = vector.load %arg1[%c0_316, %c10_317, %c0_318, %c0_319] : memref<1x20x10x6xbf16, #tpu.memory_space<vmem>>, vector<1x1x10x6xbf16>
    %364 = vector.shape_cast %363 : vector<1x1x10x6xbf16> to vector<10x6xbf16>
    %365 = vector.extract_strided_slice %364 {offsets = [0, 0], sizes = [8, 6], strides = [1, 1]} : vector<10x6xbf16> to vector<8x6xbf16>
    %c12_320 = arith.constant 12 : index
    %c0_321 = arith.constant 0 : index
    %c0_322 = arith.constant 0 : index
    %366 = vector.load %arg2[%c12_320, %c0_321, %c0_322] : memref<15x6x128xbf16, #tpu.memory_space<vmem>>, vector<1x6x128xbf16>
    %367 = vector.shape_cast %366 : vector<1x6x128xbf16> to vector<6x128xbf16>
    %cst_323 = arith.constant dense<0.000000e+00> : vector<8x128xf32>
    %368 = tpu.matmul %365, %367, %cst_323 {dimension_numbers = #tpu.dot_dimension_numbers<[1], [0], [0], [1], [0, 0, 1, 1], [], []>} : vector<8x6xbf16>, vector<6x128xbf16>, vector<8x128xf32> -> vector<8x128xf32>
    %369 = arith.addf %362, %368 : vector<8x128xf32>
    %370 = vector.extract_strided_slice %364 {offsets = [1, 0], sizes = [8, 6], strides = [1, 1]} : vector<10x6xbf16> to vector<8x6xbf16>
    %c13_324 = arith.constant 13 : index
    %c0_325 = arith.constant 0 : index
    %c0_326 = arith.constant 0 : index
    %371 = vector.load %arg2[%c13_324, %c0_325, %c0_326] : memref<15x6x128xbf16, #tpu.memory_space<vmem>>, vector<1x6x128xbf16>
    %372 = vector.shape_cast %371 : vector<1x6x128xbf16> to vector<6x128xbf16>
    %cst_327 = arith.constant dense<0.000000e+00> : vector<8x128xf32>
    %373 = tpu.matmul %370, %372, %cst_327 {dimension_numbers = #tpu.dot_dimension_numbers<[1], [0], [0], [1], [0, 0, 1, 1], [], []>} : vector<8x6xbf16>, vector<6x128xbf16>, vector<8x128xf32> -> vector<8x128xf32>
    %374 = arith.addf %369, %373 : vector<8x128xf32>
    %375 = vector.extract_strided_slice %364 {offsets = [2, 0], sizes = [8, 6], strides = [1, 1]} : vector<10x6xbf16> to vector<8x6xbf16>
    %c14_328 = arith.constant 14 : index
    %c0_329 = arith.constant 0 : index
    %c0_330 = arith.constant 0 : index
    %376 = vector.load %arg2[%c14_328, %c0_329, %c0_330] : memref<15x6x128xbf16, #tpu.memory_space<vmem>>, vector<1x6x128xbf16>
    %377 = vector.shape_cast %376 : vector<1x6x128xbf16> to vector<6x128xbf16>
    %cst_331 = arith.constant dense<0.000000e+00> : vector<8x128xf32>
    %378 = tpu.matmul %375, %377, %cst_331 {dimension_numbers = #tpu.dot_dimension_numbers<[1], [0], [0], [1], [0, 0, 1, 1], [], []>} : vector<8x6xbf16>, vector<6x128xbf16>, vector<8x128xf32> -> vector<8x128xf32>
    %379 = arith.addf %374, %378 : vector<8x128xf32>
    %c0_332 = arith.constant 0 : index
    %c0_333 = arith.constant 0 : index
    %380 = vector.load %arg3[%c0_332, %c0_333] : memref<1x128xf32, #tpu.memory_space<vmem>>, vector<1x128xf32>
    %381 = vector.broadcast %380 : vector<1x128xf32> to vector<8x128xf32>
    %382 = arith.addf %379, %381 : vector<8x128xf32>
    %cst_334 = arith.constant 0.000000e+00 : f32
    %383 = vector.broadcast %cst_334 : f32 to vector<8x128xf32>
    %384 = arith.cmpf oge, %382, %383 : vector<8x128xf32>
    %cst_335 = arith.constant 2.000000e-01 : f32
    %385 = vector.broadcast %cst_335 : f32 to vector<8x128xf32>
    %386 = arith.mulf %385, %382 : vector<8x128xf32>
    %387 = arith.select %384, %382, %386 : vector<8x128xi1>, vector<8x128xf32>
    %388 = arith.truncf %387 : vector<8x128xf32> to vector<8x128xbf16>
    %c0_336 = arith.constant 0 : index
    %c3_337 = arith.constant 3 : index
    %c0_338 = arith.constant 0 : index
    %c0_339 = arith.constant 0 : index
    %389 = vector.load %arg4[%c0_336, %c3_337, %c0_338, %c0_339] : memref<1x8x8x128xbf16, #tpu.memory_space<vmem>>, vector<1x1x8x128xbf16>
    %390 = vector.shape_cast %389 : vector<1x1x8x128xbf16> to vector<8x128xbf16>
    %391 = vector.shape_cast %388 : vector<8x128xbf16> to vector<1x1x8x128xbf16>
    tpu.vector_store %arg4[%c0_336, %c3_337, %c0_338, %c0_339], %391 {strides = array<i32>} : memref<1x8x8x128xbf16, #tpu.memory_space<vmem>>, vector<1x1x8x128xbf16>,
    %cst_340 = arith.constant 0.000000e+00 : f32
    %392 = vector.broadcast %cst_340 : f32 to vector<8x128xf32>
    %c0_341 = arith.constant 0 : index
    %c8_342 = arith.constant 8 : index
    %c0_343 = arith.constant 0 : index
    %c0_344 = arith.constant 0 : index
    %393 = vector.load %arg1[%c0_341, %c8_342, %c0_343, %c0_344] : memref<1x20x10x6xbf16, #tpu.memory_space<vmem>>, vector<1x1x10x6xbf16>
    %394 = vector.shape_cast %393 : vector<1x1x10x6xbf16> to vector<10x6xbf16>
    %395 = vector.extract_strided_slice %394 {offsets = [0, 0], sizes = [8, 6], strides = [1, 1]} : vector<10x6xbf16> to vector<8x6xbf16>
    %c0_345 = arith.constant 0 : index
    %c0_346 = arith.constant 0 : index
    %c0_347 = arith.constant 0 : index
    %396 = vector.load %arg2[%c0_345, %c0_346, %c0_347] : memref<15x6x128xbf16, #tpu.memory_space<vmem>>, vector<1x6x128xbf16>
    %397 = vector.shape_cast %396 : vector<1x6x128xbf16> to vector<6x128xbf16>
    %cst_348 = arith.constant dense<0.000000e+00> : vector<8x128xf32>
    %398 = tpu.matmul %395, %397, %cst_348 {dimension_numbers = #tpu.dot_dimension_numbers<[1], [0], [0], [1], [0, 0, 1, 1], [], []>} : vector<8x6xbf16>, vector<6x128xbf16>, vector<8x128xf32> -> vector<8x128xf32>
    %399 = arith.addf %392, %398 : vector<8x128xf32>
    %400 = vector.extract_strided_slice %394 {offsets = [1, 0], sizes = [8, 6], strides = [1, 1]} : vector<10x6xbf16> to vector<8x6xbf16>
    %c1_349 = arith.constant 1 : index
    %c0_350 = arith.constant 0 : index
    %c0_351 = arith.constant 0 : index
    %401 = vector.load %arg2[%c1_349, %c0_350, %c0_351] : memref<15x6x128xbf16, #tpu.memory_space<vmem>>, vector<1x6x128xbf16>
    %402 = vector.shape_cast %401 : vector<1x6x128xbf16> to vector<6x128xbf16>
    %cst_352 = arith.constant dense<0.000000e+00> : vector<8x128xf32>
    %403 = tpu.matmul %400, %402, %cst_352 {dimension_numbers = #tpu.dot_dimension_numbers<[1], [0], [0], [1], [0, 0, 1, 1], [], []>} : vector<8x6xbf16>, vector<6x128xbf16>, vector<8x128xf32> -> vector<8x128xf32>
    %404 = arith.addf %399, %403 : vector<8x128xf32>
    %405 = vector.extract_strided_slice %394 {offsets = [2, 0], sizes = [8, 6], strides = [1, 1]} : vector<10x6xbf16> to vector<8x6xbf16>
    %c2_353 = arith.constant 2 : index
    %c0_354 = arith.constant 0 : index
    %c0_355 = arith.constant 0 : index
    %406 = vector.load %arg2[%c2_353, %c0_354, %c0_355] : memref<15x6x128xbf16, #tpu.memory_space<vmem>>, vector<1x6x128xbf16>
    %407 = vector.shape_cast %406 : vector<1x6x128xbf16> to vector<6x128xbf16>
    %cst_356 = arith.constant dense<0.000000e+00> : vector<8x128xf32>
    %408 = tpu.matmul %405, %407, %cst_356 {dimension_numbers = #tpu.dot_dimension_numbers<[1], [0], [0], [1], [0, 0, 1, 1], [], []>} : vector<8x6xbf16>, vector<6x128xbf16>, vector<8x128xf32> -> vector<8x128xf32>
    %409 = arith.addf %404, %408 : vector<8x128xf32>
    %c0_357 = arith.constant 0 : index
    %c9_358 = arith.constant 9 : index
    %c0_359 = arith.constant 0 : index
    %c0_360 = arith.constant 0 : index
    %410 = vector.load %arg1[%c0_357, %c9_358, %c0_359, %c0_360] : memref<1x20x10x6xbf16, #tpu.memory_space<vmem>>, vector<1x1x10x6xbf16>
    %411 = vector.shape_cast %410 : vector<1x1x10x6xbf16> to vector<10x6xbf16>
    %412 = vector.extract_strided_slice %411 {offsets = [0, 0], sizes = [8, 6], strides = [1, 1]} : vector<10x6xbf16> to vector<8x6xbf16>
    %c3_361 = arith.constant 3 : index
    %c0_362 = arith.constant 0 : index
    %c0_363 = arith.constant 0 : index
    %413 = vector.load %arg2[%c3_361, %c0_362, %c0_363] : memref<15x6x128xbf16, #tpu.memory_space<vmem>>, vector<1x6x128xbf16>
    %414 = vector.shape_cast %413 : vector<1x6x128xbf16> to vector<6x128xbf16>
    %cst_364 = arith.constant dense<0.000000e+00> : vector<8x128xf32>
    %415 = tpu.matmul %412, %414, %cst_364 {dimension_numbers = #tpu.dot_dimension_numbers<[1], [0], [0], [1], [0, 0, 1, 1], [], []>} : vector<8x6xbf16>, vector<6x128xbf16>, vector<8x128xf32> -> vector<8x128xf32>
    %416 = arith.addf %409, %415 : vector<8x128xf32>
    %417 = vector.extract_strided_slice %411 {offsets = [1, 0], sizes = [8, 6], strides = [1, 1]} : vector<10x6xbf16> to vector<8x6xbf16>
    %c4_365 = arith.constant 4 : index
    %c0_366 = arith.constant 0 : index
    %c0_367 = arith.constant 0 : index
    %418 = vector.load %arg2[%c4_365, %c0_366, %c0_367] : memref<15x6x128xbf16, #tpu.memory_space<vmem>>, vector<1x6x128xbf16>
    %419 = vector.shape_cast %418 : vector<1x6x128xbf16> to vector<6x128xbf16>
    %cst_368 = arith.constant dense<0.000000e+00> : vector<8x128xf32>
    %420 = tpu.matmul %417, %419, %cst_368 {dimension_numbers = #tpu.dot_dimension_numbers<[1], [0], [0], [1], [0, 0, 1, 1], [], []>} : vector<8x6xbf16>, vector<6x128xbf16>, vector<8x128xf32> -> vector<8x128xf32>
    %421 = arith.addf %416, %420 : vector<8x128xf32>
    %422 = vector.extract_strided_slice %411 {offsets = [2, 0], sizes = [8, 6], strides = [1, 1]} : vector<10x6xbf16> to vector<8x6xbf16>
    %c5_369 = arith.constant 5 : index
    %c0_370 = arith.constant 0 : index
    %c0_371 = arith.constant 0 : index
    %423 = vector.load %arg2[%c5_369, %c0_370, %c0_371] : memref<15x6x128xbf16, #tpu.memory_space<vmem>>, vector<1x6x128xbf16>
    %424 = vector.shape_cast %423 : vector<1x6x128xbf16> to vector<6x128xbf16>
    %cst_372 = arith.constant dense<0.000000e+00> : vector<8x128xf32>
    %425 = tpu.matmul %422, %424, %cst_372 {dimension_numbers = #tpu.dot_dimension_numbers<[1], [0], [0], [1], [0, 0, 1, 1], [], []>} : vector<8x6xbf16>, vector<6x128xbf16>, vector<8x128xf32> -> vector<8x128xf32>
    %426 = arith.addf %421, %425 : vector<8x128xf32>
    %c0_373 = arith.constant 0 : index
    %c10_374 = arith.constant 10 : index
    %c0_375 = arith.constant 0 : index
    %c0_376 = arith.constant 0 : index
    %427 = vector.load %arg1[%c0_373, %c10_374, %c0_375, %c0_376] : memref<1x20x10x6xbf16, #tpu.memory_space<vmem>>, vector<1x1x10x6xbf16>
    %428 = vector.shape_cast %427 : vector<1x1x10x6xbf16> to vector<10x6xbf16>
    %429 = vector.extract_strided_slice %428 {offsets = [0, 0], sizes = [8, 6], strides = [1, 1]} : vector<10x6xbf16> to vector<8x6xbf16>
    %c6_377 = arith.constant 6 : index
    %c0_378 = arith.constant 0 : index
    %c0_379 = arith.constant 0 : index
    %430 = vector.load %arg2[%c6_377, %c0_378, %c0_379] : memref<15x6x128xbf16, #tpu.memory_space<vmem>>, vector<1x6x128xbf16>
    %431 = vector.shape_cast %430 : vector<1x6x128xbf16> to vector<6x128xbf16>
    %cst_380 = arith.constant dense<0.000000e+00> : vector<8x128xf32>
    %432 = tpu.matmul %429, %431, %cst_380 {dimension_numbers = #tpu.dot_dimension_numbers<[1], [0], [0], [1], [0, 0, 1, 1], [], []>} : vector<8x6xbf16>, vector<6x128xbf16>, vector<8x128xf32> -> vector<8x128xf32>
    %433 = arith.addf %426, %432 : vector<8x128xf32>
    %434 = vector.extract_strided_slice %428 {offsets = [1, 0], sizes = [8, 6], strides = [1, 1]} : vector<10x6xbf16> to vector<8x6xbf16>
    %c7_381 = arith.constant 7 : index
    %c0_382 = arith.constant 0 : index
    %c0_383 = arith.constant 0 : index
    %435 = vector.load %arg2[%c7_381, %c0_382, %c0_383] : memref<15x6x128xbf16, #tpu.memory_space<vmem>>, vector<1x6x128xbf16>
    %436 = vector.shape_cast %435 : vector<1x6x128xbf16> to vector<6x128xbf16>
    %cst_384 = arith.constant dense<0.000000e+00> : vector<8x128xf32>
    %437 = tpu.matmul %434, %436, %cst_384 {dimension_numbers = #tpu.dot_dimension_numbers<[1], [0], [0], [1], [0, 0, 1, 1], [], []>} : vector<8x6xbf16>, vector<6x128xbf16>, vector<8x128xf32> -> vector<8x128xf32>
    %438 = arith.addf %433, %437 : vector<8x128xf32>
    %439 = vector.extract_strided_slice %428 {offsets = [2, 0], sizes = [8, 6], strides = [1, 1]} : vector<10x6xbf16> to vector<8x6xbf16>
    %c8_385 = arith.constant 8 : index
    %c0_386 = arith.constant 0 : index
    %c0_387 = arith.constant 0 : index
    %440 = vector.load %arg2[%c8_385, %c0_386, %c0_387] : memref<15x6x128xbf16, #tpu.memory_space<vmem>>, vector<1x6x128xbf16>
    %441 = vector.shape_cast %440 : vector<1x6x128xbf16> to vector<6x128xbf16>
    %cst_388 = arith.constant dense<0.000000e+00> : vector<8x128xf32>
    %442 = tpu.matmul %439, %441, %cst_388 {dimension_numbers = #tpu.dot_dimension_numbers<[1], [0], [0], [1], [0, 0, 1, 1], [], []>} : vector<8x6xbf16>, vector<6x128xbf16>, vector<8x128xf32> -> vector<8x128xf32>
    %443 = arith.addf %438, %442 : vector<8x128xf32>
    %c0_389 = arith.constant 0 : index
    %c11_390 = arith.constant 11 : index
    %c0_391 = arith.constant 0 : index
    %c0_392 = arith.constant 0 : index
    %444 = vector.load %arg1[%c0_389, %c11_390, %c0_391, %c0_392] : memref<1x20x10x6xbf16, #tpu.memory_space<vmem>>, vector<1x1x10x6xbf16>
    %445 = vector.shape_cast %444 : vector<1x1x10x6xbf16> to vector<10x6xbf16>
    %446 = vector.extract_strided_slice %445 {offsets = [0, 0], sizes = [8, 6], strides = [1, 1]} : vector<10x6xbf16> to vector<8x6xbf16>
    %c9_393 = arith.constant 9 : index
    %c0_394 = arith.constant 0 : index
    %c0_395 = arith.constant 0 : index
    %447 = vector.load %arg2[%c9_393, %c0_394, %c0_395] : memref<15x6x128xbf16, #tpu.memory_space<vmem>>, vector<1x6x128xbf16>
    %448 = vector.shape_cast %447 : vector<1x6x128xbf16> to vector<6x128xbf16>
    %cst_396 = arith.constant dense<0.000000e+00> : vector<8x128xf32>
    %449 = tpu.matmul %446, %448, %cst_396 {dimension_numbers = #tpu.dot_dimension_numbers<[1], [0], [0], [1], [0, 0, 1, 1], [], []>} : vector<8x6xbf16>, vector<6x128xbf16>, vector<8x128xf32> -> vector<8x128xf32>
    %450 = arith.addf %443, %449 : vector<8x128xf32>
    %451 = vector.extract_strided_slice %445 {offsets = [1, 0], sizes = [8, 6], strides = [1, 1]} : vector<10x6xbf16> to vector<8x6xbf16>
    %c10_397 = arith.constant 10 : index
    %c0_398 = arith.constant 0 : index
    %c0_399 = arith.constant 0 : index
    %452 = vector.load %arg2[%c10_397, %c0_398, %c0_399] : memref<15x6x128xbf16, #tpu.memory_space<vmem>>, vector<1x6x128xbf16>
    %453 = vector.shape_cast %452 : vector<1x6x128xbf16> to vector<6x128xbf16>
    %cst_400 = arith.constant dense<0.000000e+00> : vector<8x128xf32>
    %454 = tpu.matmul %451, %453, %cst_400 {dimension_numbers = #tpu.dot_dimension_numbers<[1], [0], [0], [1], [0, 0, 1, 1], [], []>} : vector<8x6xbf16>, vector<6x128xbf16>, vector<8x128xf32> -> vector<8x128xf32>
    %455 = arith.addf %450, %454 : vector<8x128xf32>
    %456 = vector.extract_strided_slice %445 {offsets = [2, 0], sizes = [8, 6], strides = [1, 1]} : vector<10x6xbf16> to vector<8x6xbf16>
    %c11_401 = arith.constant 11 : index
    %c0_402 = arith.constant 0 : index
    %c0_403 = arith.constant 0 : index
    %457 = vector.load %arg2[%c11_401, %c0_402, %c0_403] : memref<15x6x128xbf16, #tpu.memory_space<vmem>>, vector<1x6x128xbf16>
    %458 = vector.shape_cast %457 : vector<1x6x128xbf16> to vector<6x128xbf16>
    %cst_404 = arith.constant dense<0.000000e+00> : vector<8x128xf32>
    %459 = tpu.matmul %456, %458, %cst_404 {dimension_numbers = #tpu.dot_dimension_numbers<[1], [0], [0], [1], [0, 0, 1, 1], [], []>} : vector<8x6xbf16>, vector<6x128xbf16>, vector<8x128xf32> -> vector<8x128xf32>
    %460 = arith.addf %455, %459 : vector<8x128xf32>
    %c0_405 = arith.constant 0 : index
    %c12_406 = arith.constant 12 : index
    %c0_407 = arith.constant 0 : index
    %c0_408 = arith.constant 0 : index
    %461 = vector.load %arg1[%c0_405, %c12_406, %c0_407, %c0_408] : memref<1x20x10x6xbf16, #tpu.memory_space<vmem>>, vector<1x1x10x6xbf16>
    %462 = vector.shape_cast %461 : vector<1x1x10x6xbf16> to vector<10x6xbf16>
    %463 = vector.extract_strided_slice %462 {offsets = [0, 0], sizes = [8, 6], strides = [1, 1]} : vector<10x6xbf16> to vector<8x6xbf16>
    %c12_409 = arith.constant 12 : index
    %c0_410 = arith.constant 0 : index
    %c0_411 = arith.constant 0 : index
    %464 = vector.load %arg2[%c12_409, %c0_410, %c0_411] : memref<15x6x128xbf16, #tpu.memory_space<vmem>>, vector<1x6x128xbf16>
    %465 = vector.shape_cast %464 : vector<1x6x128xbf16> to vector<6x128xbf16>
    %cst_412 = arith.constant dense<0.000000e+00> : vector<8x128xf32>
    %466 = tpu.matmul %463, %465, %cst_412 {dimension_numbers = #tpu.dot_dimension_numbers<[1], [0], [0], [1], [0, 0, 1, 1], [], []>} : vector<8x6xbf16>, vector<6x128xbf16>, vector<8x128xf32> -> vector<8x128xf32>
    %467 = arith.addf %460, %466 : vector<8x128xf32>
    %468 = vector.extract_strided_slice %462 {offsets = [1, 0], sizes = [8, 6], strides = [1, 1]} : vector<10x6xbf16> to vector<8x6xbf16>
    %c13_413 = arith.constant 13 : index
    %c0_414 = arith.constant 0 : index
    %c0_415 = arith.constant 0 : index
    %469 = vector.load %arg2[%c13_413, %c0_414, %c0_415] : memref<15x6x128xbf16, #tpu.memory_space<vmem>>, vector<1x6x128xbf16>
    %470 = vector.shape_cast %469 : vector<1x6x128xbf16> to vector<6x128xbf16>
    %cst_416 = arith.constant dense<0.000000e+00> : vector<8x128xf32>
    %471 = tpu.matmul %468, %470, %cst_416 {dimension_numbers = #tpu.dot_dimension_numbers<[1], [0], [0], [1], [0, 0, 1, 1], [], []>} : vector<8x6xbf16>, vector<6x128xbf16>, vector<8x128xf32> -> vector<8x128xf32>
    %472 = arith.addf %467, %471 : vector<8x128xf32>
    %473 = vector.extract_strided_slice %462 {offsets = [2, 0], sizes = [8, 6], strides = [1, 1]} : vector<10x6xbf16> to vector<8x6xbf16>
    %c14_417 = arith.constant 14 : index
    %c0_418 = arith.constant 0 : index
    %c0_419 = arith.constant 0 : index
    %474 = vector.load %arg2[%c14_417, %c0_418, %c0_419] : memref<15x6x128xbf16, #tpu.memory_space<vmem>>, vector<1x6x128xbf16>
    %475 = vector.shape_cast %474 : vector<1x6x128xbf16> to vector<6x128xbf16>
    %cst_420 = arith.constant dense<0.000000e+00> : vector<8x128xf32>
    %476 = tpu.matmul %473, %475, %cst_420 {dimension_numbers = #tpu.dot_dimension_numbers<[1], [0], [0], [1], [0, 0, 1, 1], [], []>} : vector<8x6xbf16>, vector<6x128xbf16>, vector<8x128xf32> -> vector<8x128xf32>
    %477 = arith.addf %472, %476 : vector<8x128xf32>
    %c0_421 = arith.constant 0 : index
    %c0_422 = arith.constant 0 : index
    %478 = vector.load %arg3[%c0_421, %c0_422] : memref<1x128xf32, #tpu.memory_space<vmem>>, vector<1x128xf32>
    %479 = vector.broadcast %478 : vector<1x128xf32> to vector<8x128xf32>
    %480 = arith.addf %477, %479 : vector<8x128xf32>
    %cst_423 = arith.constant 0.000000e+00 : f32
    %481 = vector.broadcast %cst_423 : f32 to vector<8x128xf32>
    %482 = arith.cmpf oge, %480, %481 : vector<8x128xf32>
    %cst_424 = arith.constant 2.000000e-01 : f32
    %483 = vector.broadcast %cst_424 : f32 to vector<8x128xf32>
    %484 = arith.mulf %483, %480 : vector<8x128xf32>
    %485 = arith.select %482, %480, %484 : vector<8x128xi1>, vector<8x128xf32>
    %486 = arith.truncf %485 : vector<8x128xf32> to vector<8x128xbf16>
    %c0_425 = arith.constant 0 : index
    %c4_426 = arith.constant 4 : index
    %c0_427 = arith.constant 0 : index
    %c0_428 = arith.constant 0 : index
    %487 = vector.load %arg4[%c0_425, %c4_426, %c0_427, %c0_428] : memref<1x8x8x128xbf16, #tpu.memory_space<vmem>>, vector<1x1x8x128xbf16>
    %488 = vector.shape_cast %487 : vector<1x1x8x128xbf16> to vector<8x128xbf16>
    %489 = vector.shape_cast %486 : vector<8x128xbf16> to vector<1x1x8x128xbf16>
    tpu.vector_store %arg4[%c0_425, %c4_426, %c0_427, %c0_428], %489 {strides = array<i32>} : memref<1x8x8x128xbf16, #tpu.memory_space<vmem>>, vector<1x1x8x128xbf16>,
    %cst_429 = arith.constant 0.000000e+00 : f32
    %490 = vector.broadcast %cst_429 : f32 to vector<8x128xf32>
    %c0_430 = arith.constant 0 : index
    %c10_431 = arith.constant 10 : index
    %c0_432 = arith.constant 0 : index
    %c0_433 = arith.constant 0 : index
    %491 = vector.load %arg1[%c0_430, %c10_431, %c0_432, %c0_433] : memref<1x20x10x6xbf16, #tpu.memory_space<vmem>>, vector<1x1x10x6xbf16>
    %492 = vector.shape_cast %491 : vector<1x1x10x6xbf16> to vector<10x6xbf16>
    %493 = vector.extract_strided_slice %492 {offsets = [0, 0], sizes = [8, 6], strides = [1, 1]} : vector<10x6xbf16> to vector<8x6xbf16>
    %c0_434 = arith.constant 0 : index
    %c0_435 = arith.constant 0 : index
    %c0_436 = arith.constant 0 : index
    %494 = vector.load %arg2[%c0_434, %c0_435, %c0_436] : memref<15x6x128xbf16, #tpu.memory_space<vmem>>, vector<1x6x128xbf16>
    %495 = vector.shape_cast %494 : vector<1x6x128xbf16> to vector<6x128xbf16>
    %cst_437 = arith.constant dense<0.000000e+00> : vector<8x128xf32>
    %496 = tpu.matmul %493, %495, %cst_437 {dimension_numbers = #tpu.dot_dimension_numbers<[1], [0], [0], [1], [0, 0, 1, 1], [], []>} : vector<8x6xbf16>, vector<6x128xbf16>, vector<8x128xf32> -> vector<8x128xf32>
    %497 = arith.addf %490, %496 : vector<8x128xf32>
    %498 = vector.extract_strided_slice %492 {offsets = [1, 0], sizes = [8, 6], strides = [1, 1]} : vector<10x6xbf16> to vector<8x6xbf16>
    %c1_438 = arith.constant 1 : index
    %c0_439 = arith.constant 0 : index
    %c0_440 = arith.constant 0 : index
    %499 = vector.load %arg2[%c1_438, %c0_439, %c0_440] : memref<15x6x128xbf16, #tpu.memory_space<vmem>>, vector<1x6x128xbf16>
    %500 = vector.shape_cast %499 : vector<1x6x128xbf16> to vector<6x128xbf16>
    %cst_441 = arith.constant dense<0.000000e+00> : vector<8x128xf32>
    %501 = tpu.matmul %498, %500, %cst_441 {dimension_numbers = #tpu.dot_dimension_numbers<[1], [0], [0], [1], [0, 0, 1, 1], [], []>} : vector<8x6xbf16>, vector<6x128xbf16>, vector<8x128xf32> -> vector<8x128xf32>
    %502 = arith.addf %497, %501 : vector<8x128xf32>
    %503 = vector.extract_strided_slice %492 {offsets = [2, 0], sizes = [8, 6], strides = [1, 1]} : vector<10x6xbf16> to vector<8x6xbf16>
    %c2_442 = arith.constant 2 : index
    %c0_443 = arith.constant 0 : index
    %c0_444 = arith.constant 0 : index
    %504 = vector.load %arg2[%c2_442, %c0_443, %c0_444] : memref<15x6x128xbf16, #tpu.memory_space<vmem>>, vector<1x6x128xbf16>
    %505 = vector.shape_cast %504 : vector<1x6x128xbf16> to vector<6x128xbf16>
    %cst_445 = arith.constant dense<0.000000e+00> : vector<8x128xf32>
    %506 = tpu.matmul %503, %505, %cst_445 {dimension_numbers = #tpu.dot_dimension_numbers<[1], [0], [0], [1], [0, 0, 1, 1], [], []>} : vector<8x6xbf16>, vector<6x128xbf16>, vector<8x128xf32> -> vector<8x128xf32>
    %507 = arith.addf %502, %506 : vector<8x128xf32>
    %c0_446 = arith.constant 0 : index
    %c11_447 = arith.constant 11 : index
    %c0_448 = arith.constant 0 : index
    %c0_449 = arith.constant 0 : index
    %508 = vector.load %arg1[%c0_446, %c11_447, %c0_448, %c0_449] : memref<1x20x10x6xbf16, #tpu.memory_space<vmem>>, vector<1x1x10x6xbf16>
    %509 = vector.shape_cast %508 : vector<1x1x10x6xbf16> to vector<10x6xbf16>
    %510 = vector.extract_strided_slice %509 {offsets = [0, 0], sizes = [8, 6], strides = [1, 1]} : vector<10x6xbf16> to vector<8x6xbf16>
    %c3_450 = arith.constant 3 : index
    %c0_451 = arith.constant 0 : index
    %c0_452 = arith.constant 0 : index
    %511 = vector.load %arg2[%c3_450, %c0_451, %c0_452] : memref<15x6x128xbf16, #tpu.memory_space<vmem>>, vector<1x6x128xbf16>
    %512 = vector.shape_cast %511 : vector<1x6x128xbf16> to vector<6x128xbf16>
    %cst_453 = arith.constant dense<0.000000e+00> : vector<8x128xf32>
    %513 = tpu.matmul %510, %512, %cst_453 {dimension_numbers = #tpu.dot_dimension_numbers<[1], [0], [0], [1], [0, 0, 1, 1], [], []>} : vector<8x6xbf16>, vector<6x128xbf16>, vector<8x128xf32> -> vector<8x128xf32>
    %514 = arith.addf %507, %513 : vector<8x128xf32>
    %515 = vector.extract_strided_slice %509 {offsets = [1, 0], sizes = [8, 6], strides = [1, 1]} : vector<10x6xbf16> to vector<8x6xbf16>
    %c4_454 = arith.constant 4 : index
    %c0_455 = arith.constant 0 : index
    %c0_456 = arith.constant 0 : index
    %516 = vector.load %arg2[%c4_454, %c0_455, %c0_456] : memref<15x6x128xbf16, #tpu.memory_space<vmem>>, vector<1x6x128xbf16>
    %517 = vector.shape_cast %516 : vector<1x6x128xbf16> to vector<6x128xbf16>
    %cst_457 = arith.constant dense<0.000000e+00> : vector<8x128xf32>
    %518 = tpu.matmul %515, %517, %cst_457 {dimension_numbers = #tpu.dot_dimension_numbers<[1], [0], [0], [1], [0, 0, 1, 1], [], []>} : vector<8x6xbf16>, vector<6x128xbf16>, vector<8x128xf32> -> vector<8x128xf32>
    %519 = arith.addf %514, %518 : vector<8x128xf32>
    %520 = vector.extract_strided_slice %509 {offsets = [2, 0], sizes = [8, 6], strides = [1, 1]} : vector<10x6xbf16> to vector<8x6xbf16>
    %c5_458 = arith.constant 5 : index
    %c0_459 = arith.constant 0 : index
    %c0_460 = arith.constant 0 : index
    %521 = vector.load %arg2[%c5_458, %c0_459, %c0_460] : memref<15x6x128xbf16, #tpu.memory_space<vmem>>, vector<1x6x128xbf16>
    %522 = vector.shape_cast %521 : vector<1x6x128xbf16> to vector<6x128xbf16>
    %cst_461 = arith.constant dense<0.000000e+00> : vector<8x128xf32>
    %523 = tpu.matmul %520, %522, %cst_461 {dimension_numbers = #tpu.dot_dimension_numbers<[1], [0], [0], [1], [0, 0, 1, 1], [], []>} : vector<8x6xbf16>, vector<6x128xbf16>, vector<8x128xf32> -> vector<8x128xf32>
    %524 = arith.addf %519, %523 : vector<8x128xf32>
    %c0_462 = arith.constant 0 : index
    %c12_463 = arith.constant 12 : index
    %c0_464 = arith.constant 0 : index
    %c0_465 = arith.constant 0 : index
    %525 = vector.load %arg1[%c0_462, %c12_463, %c0_464, %c0_465] : memref<1x20x10x6xbf16, #tpu.memory_space<vmem>>, vector<1x1x10x6xbf16>
    %526 = vector.shape_cast %525 : vector<1x1x10x6xbf16> to vector<10x6xbf16>
    %527 = vector.extract_strided_slice %526 {offsets = [0, 0], sizes = [8, 6], strides = [1, 1]} : vector<10x6xbf16> to vector<8x6xbf16>
    %c6_466 = arith.constant 6 : index
    %c0_467 = arith.constant 0 : index
    %c0_468 = arith.constant 0 : index
    %528 = vector.load %arg2[%c6_466, %c0_467, %c0_468] : memref<15x6x128xbf16, #tpu.memory_space<vmem>>, vector<1x6x128xbf16>
    %529 = vector.shape_cast %528 : vector<1x6x128xbf16> to vector<6x128xbf16>
    %cst_469 = arith.constant dense<0.000000e+00> : vector<8x128xf32>
    %530 = tpu.matmul %527, %529, %cst_469 {dimension_numbers = #tpu.dot_dimension_numbers<[1], [0], [0], [1], [0, 0, 1, 1], [], []>} : vector<8x6xbf16>, vector<6x128xbf16>, vector<8x128xf32> -> vector<8x128xf32>
    %531 = arith.addf %524, %530 : vector<8x128xf32>
    %532 = vector.extract_strided_slice %526 {offsets = [1, 0], sizes = [8, 6], strides = [1, 1]} : vector<10x6xbf16> to vector<8x6xbf16>
    %c7_470 = arith.constant 7 : index
    %c0_471 = arith.constant 0 : index
    %c0_472 = arith.constant 0 : index
    %533 = vector.load %arg2[%c7_470, %c0_471, %c0_472] : memref<15x6x128xbf16, #tpu.memory_space<vmem>>, vector<1x6x128xbf16>
    %534 = vector.shape_cast %533 : vector<1x6x128xbf16> to vector<6x128xbf16>
    %cst_473 = arith.constant dense<0.000000e+00> : vector<8x128xf32>
    %535 = tpu.matmul %532, %534, %cst_473 {dimension_numbers = #tpu.dot_dimension_numbers<[1], [0], [0], [1], [0, 0, 1, 1], [], []>} : vector<8x6xbf16>, vector<6x128xbf16>, vector<8x128xf32> -> vector<8x128xf32>
    %536 = arith.addf %531, %535 : vector<8x128xf32>
    %537 = vector.extract_strided_slice %526 {offsets = [2, 0], sizes = [8, 6], strides = [1, 1]} : vector<10x6xbf16> to vector<8x6xbf16>
    %c8_474 = arith.constant 8 : index
    %c0_475 = arith.constant 0 : index
    %c0_476 = arith.constant 0 : index
    %538 = vector.load %arg2[%c8_474, %c0_475, %c0_476] : memref<15x6x128xbf16, #tpu.memory_space<vmem>>, vector<1x6x128xbf16>
    %539 = vector.shape_cast %538 : vector<1x6x128xbf16> to vector<6x128xbf16>
    %cst_477 = arith.constant dense<0.000000e+00> : vector<8x128xf32>
    %540 = tpu.matmul %537, %539, %cst_477 {dimension_numbers = #tpu.dot_dimension_numbers<[1], [0], [0], [1], [0, 0, 1, 1], [], []>} : vector<8x6xbf16>, vector<6x128xbf16>, vector<8x128xf32> -> vector<8x128xf32>
    %541 = arith.addf %536, %540 : vector<8x128xf32>
    %c0_478 = arith.constant 0 : index
    %c13_479 = arith.constant 13 : index
    %c0_480 = arith.constant 0 : index
    %c0_481 = arith.constant 0 : index
    %542 = vector.load %arg1[%c0_478, %c13_479, %c0_480, %c0_481] : memref<1x20x10x6xbf16, #tpu.memory_space<vmem>>, vector<1x1x10x6xbf16>
    %543 = vector.shape_cast %542 : vector<1x1x10x6xbf16> to vector<10x6xbf16>
    %544 = vector.extract_strided_slice %543 {offsets = [0, 0], sizes = [8, 6], strides = [1, 1]} : vector<10x6xbf16> to vector<8x6xbf16>
    %c9_482 = arith.constant 9 : index
    %c0_483 = arith.constant 0 : index
    %c0_484 = arith.constant 0 : index
    %545 = vector.load %arg2[%c9_482, %c0_483, %c0_484] : memref<15x6x128xbf16, #tpu.memory_space<vmem>>, vector<1x6x128xbf16>
    %546 = vector.shape_cast %545 : vector<1x6x128xbf16> to vector<6x128xbf16>
    %cst_485 = arith.constant dense<0.000000e+00> : vector<8x128xf32>
    %547 = tpu.matmul %544, %546, %cst_485 {dimension_numbers = #tpu.dot_dimension_numbers<[1], [0], [0], [1], [0, 0, 1, 1], [], []>} : vector<8x6xbf16>, vector<6x128xbf16>, vector<8x128xf32> -> vector<8x128xf32>
    %548 = arith.addf %541, %547 : vector<8x128xf32>
    %549 = vector.extract_strided_slice %543 {offsets = [1, 0], sizes = [8, 6], strides = [1, 1]} : vector<10x6xbf16> to vector<8x6xbf16>
    %c10_486 = arith.constant 10 : index
    %c0_487 = arith.constant 0 : index
    %c0_488 = arith.constant 0 : index
    %550 = vector.load %arg2[%c10_486, %c0_487, %c0_488] : memref<15x6x128xbf16, #tpu.memory_space<vmem>>, vector<1x6x128xbf16>
    %551 = vector.shape_cast %550 : vector<1x6x128xbf16> to vector<6x128xbf16>
    %cst_489 = arith.constant dense<0.000000e+00> : vector<8x128xf32>
    %552 = tpu.matmul %549, %551, %cst_489 {dimension_numbers = #tpu.dot_dimension_numbers<[1], [0], [0], [1], [0, 0, 1, 1], [], []>} : vector<8x6xbf16>, vector<6x128xbf16>, vector<8x128xf32> -> vector<8x128xf32>
    %553 = arith.addf %548, %552 : vector<8x128xf32>
    %554 = vector.extract_strided_slice %543 {offsets = [2, 0], sizes = [8, 6], strides = [1, 1]} : vector<10x6xbf16> to vector<8x6xbf16>
    %c11_490 = arith.constant 11 : index
    %c0_491 = arith.constant 0 : index
    %c0_492 = arith.constant 0 : index
    %555 = vector.load %arg2[%c11_490, %c0_491, %c0_492] : memref<15x6x128xbf16, #tpu.memory_space<vmem>>, vector<1x6x128xbf16>
    %556 = vector.shape_cast %555 : vector<1x6x128xbf16> to vector<6x128xbf16>
    %cst_493 = arith.constant dense<0.000000e+00> : vector<8x128xf32>
    %557 = tpu.matmul %554, %556, %cst_493 {dimension_numbers = #tpu.dot_dimension_numbers<[1], [0], [0], [1], [0, 0, 1, 1], [], []>} : vector<8x6xbf16>, vector<6x128xbf16>, vector<8x128xf32> -> vector<8x128xf32>
    %558 = arith.addf %553, %557 : vector<8x128xf32>
    %c0_494 = arith.constant 0 : index
    %c14_495 = arith.constant 14 : index
    %c0_496 = arith.constant 0 : index
    %c0_497 = arith.constant 0 : index
    %559 = vector.load %arg1[%c0_494, %c14_495, %c0_496, %c0_497] : memref<1x20x10x6xbf16, #tpu.memory_space<vmem>>, vector<1x1x10x6xbf16>
    %560 = vector.shape_cast %559 : vector<1x1x10x6xbf16> to vector<10x6xbf16>
    %561 = vector.extract_strided_slice %560 {offsets = [0, 0], sizes = [8, 6], strides = [1, 1]} : vector<10x6xbf16> to vector<8x6xbf16>
    %c12_498 = arith.constant 12 : index
    %c0_499 = arith.constant 0 : index
    %c0_500 = arith.constant 0 : index
    %562 = vector.load %arg2[%c12_498, %c0_499, %c0_500] : memref<15x6x128xbf16, #tpu.memory_space<vmem>>, vector<1x6x128xbf16>
    %563 = vector.shape_cast %562 : vector<1x6x128xbf16> to vector<6x128xbf16>
    %cst_501 = arith.constant dense<0.000000e+00> : vector<8x128xf32>
    %564 = tpu.matmul %561, %563, %cst_501 {dimension_numbers = #tpu.dot_dimension_numbers<[1], [0], [0], [1], [0, 0, 1, 1], [], []>} : vector<8x6xbf16>, vector<6x128xbf16>, vector<8x128xf32> -> vector<8x128xf32>
    %565 = arith.addf %558, %564 : vector<8x128xf32>
    %566 = vector.extract_strided_slice %560 {offsets = [1, 0], sizes = [8, 6], strides = [1, 1]} : vector<10x6xbf16> to vector<8x6xbf16>
    %c13_502 = arith.constant 13 : index
    %c0_503 = arith.constant 0 : index
    %c0_504 = arith.constant 0 : index
    %567 = vector.load %arg2[%c13_502, %c0_503, %c0_504] : memref<15x6x128xbf16, #tpu.memory_space<vmem>>, vector<1x6x128xbf16>
    %568 = vector.shape_cast %567 : vector<1x6x128xbf16> to vector<6x128xbf16>
    %cst_505 = arith.constant dense<0.000000e+00> : vector<8x128xf32>
    %569 = tpu.matmul %566, %568, %cst_505 {dimension_numbers = #tpu.dot_dimension_numbers<[1], [0], [0], [1], [0, 0, 1, 1], [], []>} : vector<8x6xbf16>, vector<6x128xbf16>, vector<8x128xf32> -> vector<8x128xf32>
    %570 = arith.addf %565, %569 : vector<8x128xf32>
    %571 = vector.extract_strided_slice %560 {offsets = [2, 0], sizes = [8, 6], strides = [1, 1]} : vector<10x6xbf16> to vector<8x6xbf16>
    %c14_506 = arith.constant 14 : index
    %c0_507 = arith.constant 0 : index
    %c0_508 = arith.constant 0 : index
    %572 = vector.load %arg2[%c14_506, %c0_507, %c0_508] : memref<15x6x128xbf16, #tpu.memory_space<vmem>>, vector<1x6x128xbf16>
    %573 = vector.shape_cast %572 : vector<1x6x128xbf16> to vector<6x128xbf16>
    %cst_509 = arith.constant dense<0.000000e+00> : vector<8x128xf32>
    %574 = tpu.matmul %571, %573, %cst_509 {dimension_numbers = #tpu.dot_dimension_numbers<[1], [0], [0], [1], [0, 0, 1, 1], [], []>} : vector<8x6xbf16>, vector<6x128xbf16>, vector<8x128xf32> -> vector<8x128xf32>
    %575 = arith.addf %570, %574 : vector<8x128xf32>
    %c0_510 = arith.constant 0 : index
    %c0_511 = arith.constant 0 : index
    %576 = vector.load %arg3[%c0_510, %c0_511] : memref<1x128xf32, #tpu.memory_space<vmem>>, vector<1x128xf32>
    %577 = vector.broadcast %576 : vector<1x128xf32> to vector<8x128xf32>
    %578 = arith.addf %575, %577 : vector<8x128xf32>
    %cst_512 = arith.constant 0.000000e+00 : f32
    %579 = vector.broadcast %cst_512 : f32 to vector<8x128xf32>
    %580 = arith.cmpf oge, %578, %579 : vector<8x128xf32>
    %cst_513 = arith.constant 2.000000e-01 : f32
    %581 = vector.broadcast %cst_513 : f32 to vector<8x128xf32>
    %582 = arith.mulf %581, %578 : vector<8x128xf32>
    %583 = arith.select %580, %578, %582 : vector<8x128xi1>, vector<8x128xf32>
    %584 = arith.truncf %583 : vector<8x128xf32> to vector<8x128xbf16>
    %c0_514 = arith.constant 0 : index
    %c5_515 = arith.constant 5 : index
    %c0_516 = arith.constant 0 : index
    %c0_517 = arith.constant 0 : index
    %585 = vector.load %arg4[%c0_514, %c5_515, %c0_516, %c0_517] : memref<1x8x8x128xbf16, #tpu.memory_space<vmem>>, vector<1x1x8x128xbf16>
    %586 = vector.shape_cast %585 : vector<1x1x8x128xbf16> to vector<8x128xbf16>
    %587 = vector.shape_cast %584 : vector<8x128xbf16> to vector<1x1x8x128xbf16>
    tpu.vector_store %arg4[%c0_514, %c5_515, %c0_516, %c0_517], %587 {strides = array<i32>} : memref<1x8x8x128xbf16, #tpu.memory_space<vmem>>, vector<1x1x8x128xbf16>,
    %cst_518 = arith.constant 0.000000e+00 : f32
    %588 = vector.broadcast %cst_518 : f32 to vector<8x128xf32>
    %c0_519 = arith.constant 0 : index
    %c12_520 = arith.constant 12 : index
    %c0_521 = arith.constant 0 : index
    %c0_522 = arith.constant 0 : index
    %589 = vector.load %arg1[%c0_519, %c12_520, %c0_521, %c0_522] : memref<1x20x10x6xbf16, #tpu.memory_space<vmem>>, vector<1x1x10x6xbf16>
    %590 = vector.shape_cast %589 : vector<1x1x10x6xbf16> to vector<10x6xbf16>
    %591 = vector.extract_strided_slice %590 {offsets = [0, 0], sizes = [8, 6], strides = [1, 1]} : vector<10x6xbf16> to vector<8x6xbf16>
    %c0_523 = arith.constant 0 : index
    %c0_524 = arith.constant 0 : index
    %c0_525 = arith.constant 0 : index
    %592 = vector.load %arg2[%c0_523, %c0_524, %c0_525] : memref<15x6x128xbf16, #tpu.memory_space<vmem>>, vector<1x6x128xbf16>
    %593 = vector.shape_cast %592 : vector<1x6x128xbf16> to vector<6x128xbf16>
    %cst_526 = arith.constant dense<0.000000e+00> : vector<8x128xf32>
    %594 = tpu.matmul %591, %593, %cst_526 {dimension_numbers = #tpu.dot_dimension_numbers<[1], [0], [0], [1], [0, 0, 1, 1], [], []>} : vector<8x6xbf16>, vector<6x128xbf16>, vector<8x128xf32> -> vector<8x128xf32>
    %595 = arith.addf %588, %594 : vector<8x128xf32>
    %596 = vector.extract_strided_slice %590 {offsets = [1, 0], sizes = [8, 6], strides = [1, 1]} : vector<10x6xbf16> to vector<8x6xbf16>
    %c1_527 = arith.constant 1 : index
    %c0_528 = arith.constant 0 : index
    %c0_529 = arith.constant 0 : index
    %597 = vector.load %arg2[%c1_527, %c0_528, %c0_529] : memref<15x6x128xbf16, #tpu.memory_space<vmem>>, vector<1x6x128xbf16>
    %598 = vector.shape_cast %597 : vector<1x6x128xbf16> to vector<6x128xbf16>
    %cst_530 = arith.constant dense<0.000000e+00> : vector<8x128xf32>
    %599 = tpu.matmul %596, %598, %cst_530 {dimension_numbers = #tpu.dot_dimension_numbers<[1], [0], [0], [1], [0, 0, 1, 1], [], []>} : vector<8x6xbf16>, vector<6x128xbf16>, vector<8x128xf32> -> vector<8x128xf32>
    %600 = arith.addf %595, %599 : vector<8x128xf32>
    %601 = vector.extract_strided_slice %590 {offsets = [2, 0], sizes = [8, 6], strides = [1, 1]} : vector<10x6xbf16> to vector<8x6xbf16>
    %c2_531 = arith.constant 2 : index
    %c0_532 = arith.constant 0 : index
    %c0_533 = arith.constant 0 : index
    %602 = vector.load %arg2[%c2_531, %c0_532, %c0_533] : memref<15x6x128xbf16, #tpu.memory_space<vmem>>, vector<1x6x128xbf16>
    %603 = vector.shape_cast %602 : vector<1x6x128xbf16> to vector<6x128xbf16>
    %cst_534 = arith.constant dense<0.000000e+00> : vector<8x128xf32>
    %604 = tpu.matmul %601, %603, %cst_534 {dimension_numbers = #tpu.dot_dimension_numbers<[1], [0], [0], [1], [0, 0, 1, 1], [], []>} : vector<8x6xbf16>, vector<6x128xbf16>, vector<8x128xf32> -> vector<8x128xf32>
    %605 = arith.addf %600, %604 : vector<8x128xf32>
    %c0_535 = arith.constant 0 : index
    %c13_536 = arith.constant 13 : index
    %c0_537 = arith.constant 0 : index
    %c0_538 = arith.constant 0 : index
    %606 = vector.load %arg1[%c0_535, %c13_536, %c0_537, %c0_538] : memref<1x20x10x6xbf16, #tpu.memory_space<vmem>>, vector<1x1x10x6xbf16>
    %607 = vector.shape_cast %606 : vector<1x1x10x6xbf16> to vector<10x6xbf16>
    %608 = vector.extract_strided_slice %607 {offsets = [0, 0], sizes = [8, 6], strides = [1, 1]} : vector<10x6xbf16> to vector<8x6xbf16>
    %c3_539 = arith.constant 3 : index
    %c0_540 = arith.constant 0 : index
    %c0_541 = arith.constant 0 : index
    %609 = vector.load %arg2[%c3_539, %c0_540, %c0_541] : memref<15x6x128xbf16, #tpu.memory_space<vmem>>, vector<1x6x128xbf16>
    %610 = vector.shape_cast %609 : vector<1x6x128xbf16> to vector<6x128xbf16>
    %cst_542 = arith.constant dense<0.000000e+00> : vector<8x128xf32>
    %611 = tpu.matmul %608, %610, %cst_542 {dimension_numbers = #tpu.dot_dimension_numbers<[1], [0], [0], [1], [0, 0, 1, 1], [], []>} : vector<8x6xbf16>, vector<6x128xbf16>, vector<8x128xf32> -> vector<8x128xf32>
    %612 = arith.addf %605, %611 : vector<8x128xf32>
    %613 = vector.extract_strided_slice %607 {offsets = [1, 0], sizes = [8, 6], strides = [1, 1]} : vector<10x6xbf16> to vector<8x6xbf16>
    %c4_543 = arith.constant 4 : index
    %c0_544 = arith.constant 0 : index
    %c0_545 = arith.constant 0 : index
    %614 = vector.load %arg2[%c4_543, %c0_544, %c0_545] : memref<15x6x128xbf16, #tpu.memory_space<vmem>>, vector<1x6x128xbf16>
    %615 = vector.shape_cast %614 : vector<1x6x128xbf16> to vector<6x128xbf16>
    %cst_546 = arith.constant dense<0.000000e+00> : vector<8x128xf32>
    %616 = tpu.matmul %613, %615, %cst_546 {dimension_numbers = #tpu.dot_dimension_numbers<[1], [0], [0], [1], [0, 0, 1, 1], [], []>} : vector<8x6xbf16>, vector<6x128xbf16>, vector<8x128xf32> -> vector<8x128xf32>
    %617 = arith.addf %612, %616 : vector<8x128xf32>
    %618 = vector.extract_strided_slice %607 {offsets = [2, 0], sizes = [8, 6], strides = [1, 1]} : vector<10x6xbf16> to vector<8x6xbf16>
    %c5_547 = arith.constant 5 : index
    %c0_548 = arith.constant 0 : index
    %c0_549 = arith.constant 0 : index
    %619 = vector.load %arg2[%c5_547, %c0_548, %c0_549] : memref<15x6x128xbf16, #tpu.memory_space<vmem>>, vector<1x6x128xbf16>
    %620 = vector.shape_cast %619 : vector<1x6x128xbf16> to vector<6x128xbf16>
    %cst_550 = arith.constant dense<0.000000e+00> : vector<8x128xf32>
    %621 = tpu.matmul %618, %620, %cst_550 {dimension_numbers = #tpu.dot_dimension_numbers<[1], [0], [0], [1], [0, 0, 1, 1], [], []>} : vector<8x6xbf16>, vector<6x128xbf16>, vector<8x128xf32> -> vector<8x128xf32>
    %622 = arith.addf %617, %621 : vector<8x128xf32>
    %c0_551 = arith.constant 0 : index
    %c14_552 = arith.constant 14 : index
    %c0_553 = arith.constant 0 : index
    %c0_554 = arith.constant 0 : index
    %623 = vector.load %arg1[%c0_551, %c14_552, %c0_553, %c0_554] : memref<1x20x10x6xbf16, #tpu.memory_space<vmem>>, vector<1x1x10x6xbf16>
    %624 = vector.shape_cast %623 : vector<1x1x10x6xbf16> to vector<10x6xbf16>
    %625 = vector.extract_strided_slice %624 {offsets = [0, 0], sizes = [8, 6], strides = [1, 1]} : vector<10x6xbf16> to vector<8x6xbf16>
    %c6_555 = arith.constant 6 : index
    %c0_556 = arith.constant 0 : index
    %c0_557 = arith.constant 0 : index
    %626 = vector.load %arg2[%c6_555, %c0_556, %c0_557] : memref<15x6x128xbf16, #tpu.memory_space<vmem>>, vector<1x6x128xbf16>
    %627 = vector.shape_cast %626 : vector<1x6x128xbf16> to vector<6x128xbf16>
    %cst_558 = arith.constant dense<0.000000e+00> : vector<8x128xf32>
    %628 = tpu.matmul %625, %627, %cst_558 {dimension_numbers = #tpu.dot_dimension_numbers<[1], [0], [0], [1], [0, 0, 1, 1], [], []>} : vector<8x6xbf16>, vector<6x128xbf16>, vector<8x128xf32> -> vector<8x128xf32>
    %629 = arith.addf %622, %628 : vector<8x128xf32>
    %630 = vector.extract_strided_slice %624 {offsets = [1, 0], sizes = [8, 6], strides = [1, 1]} : vector<10x6xbf16> to vector<8x6xbf16>
    %c7_559 = arith.constant 7 : index
    %c0_560 = arith.constant 0 : index
    %c0_561 = arith.constant 0 : index
    %631 = vector.load %arg2[%c7_559, %c0_560, %c0_561] : memref<15x6x128xbf16, #tpu.memory_space<vmem>>, vector<1x6x128xbf16>
    %632 = vector.shape_cast %631 : vector<1x6x128xbf16> to vector<6x128xbf16>
    %cst_562 = arith.constant dense<0.000000e+00> : vector<8x128xf32>
    %633 = tpu.matmul %630, %632, %cst_562 {dimension_numbers = #tpu.dot_dimension_numbers<[1], [0], [0], [1], [0, 0, 1, 1], [], []>} : vector<8x6xbf16>, vector<6x128xbf16>, vector<8x128xf32> -> vector<8x128xf32>
    %634 = arith.addf %629, %633 : vector<8x128xf32>
    %635 = vector.extract_strided_slice %624 {offsets = [2, 0], sizes = [8, 6], strides = [1, 1]} : vector<10x6xbf16> to vector<8x6xbf16>
    %c8_563 = arith.constant 8 : index
    %c0_564 = arith.constant 0 : index
    %c0_565 = arith.constant 0 : index
    %636 = vector.load %arg2[%c8_563, %c0_564, %c0_565] : memref<15x6x128xbf16, #tpu.memory_space<vmem>>, vector<1x6x128xbf16>
    %637 = vector.shape_cast %636 : vector<1x6x128xbf16> to vector<6x128xbf16>
    %cst_566 = arith.constant dense<0.000000e+00> : vector<8x128xf32>
    %638 = tpu.matmul %635, %637, %cst_566 {dimension_numbers = #tpu.dot_dimension_numbers<[1], [0], [0], [1], [0, 0, 1, 1], [], []>} : vector<8x6xbf16>, vector<6x128xbf16>, vector<8x128xf32> -> vector<8x128xf32>
    %639 = arith.addf %634, %638 : vector<8x128xf32>
    %c0_567 = arith.constant 0 : index
    %c15 = arith.constant 15 : index
    %c0_568 = arith.constant 0 : index
    %c0_569 = arith.constant 0 : index
    %640 = vector.load %arg1[%c0_567, %c15, %c0_568, %c0_569] : memref<1x20x10x6xbf16, #tpu.memory_space<vmem>>, vector<1x1x10x6xbf16>
    %641 = vector.shape_cast %640 : vector<1x1x10x6xbf16> to vector<10x6xbf16>
    %642 = vector.extract_strided_slice %641 {offsets = [0, 0], sizes = [8, 6], strides = [1, 1]} : vector<10x6xbf16> to vector<8x6xbf16>
    %c9_570 = arith.constant 9 : index
    %c0_571 = arith.constant 0 : index
    %c0_572 = arith.constant 0 : index
    %643 = vector.load %arg2[%c9_570, %c0_571, %c0_572] : memref<15x6x128xbf16, #tpu.memory_space<vmem>>, vector<1x6x128xbf16>
    %644 = vector.shape_cast %643 : vector<1x6x128xbf16> to vector<6x128xbf16>
    %cst_573 = arith.constant dense<0.000000e+00> : vector<8x128xf32>
    %645 = tpu.matmul %642, %644, %cst_573 {dimension_numbers = #tpu.dot_dimension_numbers<[1], [0], [0], [1], [0, 0, 1, 1], [], []>} : vector<8x6xbf16>, vector<6x128xbf16>, vector<8x128xf32> -> vector<8x128xf32>
    %646 = arith.addf %639, %645 : vector<8x128xf32>
    %647 = vector.extract_strided_slice %641 {offsets = [1, 0], sizes = [8, 6], strides = [1, 1]} : vector<10x6xbf16> to vector<8x6xbf16>
    %c10_574 = arith.constant 10 : index
    %c0_575 = arith.constant 0 : index
    %c0_576 = arith.constant 0 : index
    %648 = vector.load %arg2[%c10_574, %c0_575, %c0_576] : memref<15x6x128xbf16, #tpu.memory_space<vmem>>, vector<1x6x128xbf16>
    %649 = vector.shape_cast %648 : vector<1x6x128xbf16> to vector<6x128xbf16>
    %cst_577 = arith.constant dense<0.000000e+00> : vector<8x128xf32>
    %650 = tpu.matmul %647, %649, %cst_577 {dimension_numbers = #tpu.dot_dimension_numbers<[1], [0], [0], [1], [0, 0, 1, 1], [], []>} : vector<8x6xbf16>, vector<6x128xbf16>, vector<8x128xf32> -> vector<8x128xf32>
    %651 = arith.addf %646, %650 : vector<8x128xf32>
    %652 = vector.extract_strided_slice %641 {offsets = [2, 0], sizes = [8, 6], strides = [1, 1]} : vector<10x6xbf16> to vector<8x6xbf16>
    %c11_578 = arith.constant 11 : index
    %c0_579 = arith.constant 0 : index
    %c0_580 = arith.constant 0 : index
    %653 = vector.load %arg2[%c11_578, %c0_579, %c0_580] : memref<15x6x128xbf16, #tpu.memory_space<vmem>>, vector<1x6x128xbf16>
    %654 = vector.shape_cast %653 : vector<1x6x128xbf16> to vector<6x128xbf16>
    %cst_581 = arith.constant dense<0.000000e+00> : vector<8x128xf32>
    %655 = tpu.matmul %652, %654, %cst_581 {dimension_numbers = #tpu.dot_dimension_numbers<[1], [0], [0], [1], [0, 0, 1, 1], [], []>} : vector<8x6xbf16>, vector<6x128xbf16>, vector<8x128xf32> -> vector<8x128xf32>
    %656 = arith.addf %651, %655 : vector<8x128xf32>
    %c0_582 = arith.constant 0 : index
    %c16 = arith.constant 16 : index
    %c0_583 = arith.constant 0 : index
    %c0_584 = arith.constant 0 : index
    %657 = vector.load %arg1[%c0_582, %c16, %c0_583, %c0_584] : memref<1x20x10x6xbf16, #tpu.memory_space<vmem>>, vector<1x1x10x6xbf16>
    %658 = vector.shape_cast %657 : vector<1x1x10x6xbf16> to vector<10x6xbf16>
    %659 = vector.extract_strided_slice %658 {offsets = [0, 0], sizes = [8, 6], strides = [1, 1]} : vector<10x6xbf16> to vector<8x6xbf16>
    %c12_585 = arith.constant 12 : index
    %c0_586 = arith.constant 0 : index
    %c0_587 = arith.constant 0 : index
    %660 = vector.load %arg2[%c12_585, %c0_586, %c0_587] : memref<15x6x128xbf16, #tpu.memory_space<vmem>>, vector<1x6x128xbf16>
    %661 = vector.shape_cast %660 : vector<1x6x128xbf16> to vector<6x128xbf16>
    %cst_588 = arith.constant dense<0.000000e+00> : vector<8x128xf32>
    %662 = tpu.matmul %659, %661, %cst_588 {dimension_numbers = #tpu.dot_dimension_numbers<[1], [0], [0], [1], [0, 0, 1, 1], [], []>} : vector<8x6xbf16>, vector<6x128xbf16>, vector<8x128xf32> -> vector<8x128xf32>
    %663 = arith.addf %656, %662 : vector<8x128xf32>
    %664 = vector.extract_strided_slice %658 {offsets = [1, 0], sizes = [8, 6], strides = [1, 1]} : vector<10x6xbf16> to vector<8x6xbf16>
    %c13_589 = arith.constant 13 : index
    %c0_590 = arith.constant 0 : index
    %c0_591 = arith.constant 0 : index
    %665 = vector.load %arg2[%c13_589, %c0_590, %c0_591] : memref<15x6x128xbf16, #tpu.memory_space<vmem>>, vector<1x6x128xbf16>
    %666 = vector.shape_cast %665 : vector<1x6x128xbf16> to vector<6x128xbf16>
    %cst_592 = arith.constant dense<0.000000e+00> : vector<8x128xf32>
    %667 = tpu.matmul %664, %666, %cst_592 {dimension_numbers = #tpu.dot_dimension_numbers<[1], [0], [0], [1], [0, 0, 1, 1], [], []>} : vector<8x6xbf16>, vector<6x128xbf16>, vector<8x128xf32> -> vector<8x128xf32>
    %668 = arith.addf %663, %667 : vector<8x128xf32>
    %669 = vector.extract_strided_slice %658 {offsets = [2, 0], sizes = [8, 6], strides = [1, 1]} : vector<10x6xbf16> to vector<8x6xbf16>
    %c14_593 = arith.constant 14 : index
    %c0_594 = arith.constant 0 : index
    %c0_595 = arith.constant 0 : index
    %670 = vector.load %arg2[%c14_593, %c0_594, %c0_595] : memref<15x6x128xbf16, #tpu.memory_space<vmem>>, vector<1x6x128xbf16>
    %671 = vector.shape_cast %670 : vector<1x6x128xbf16> to vector<6x128xbf16>
    %cst_596 = arith.constant dense<0.000000e+00> : vector<8x128xf32>
    %672 = tpu.matmul %669, %671, %cst_596 {dimension_numbers = #tpu.dot_dimension_numbers<[1], [0], [0], [1], [0, 0, 1, 1], [], []>} : vector<8x6xbf16>, vector<6x128xbf16>, vector<8x128xf32> -> vector<8x128xf32>
    %673 = arith.addf %668, %672 : vector<8x128xf32>
    %c0_597 = arith.constant 0 : index
    %c0_598 = arith.constant 0 : index
    %674 = vector.load %arg3[%c0_597, %c0_598] : memref<1x128xf32, #tpu.memory_space<vmem>>, vector<1x128xf32>
    %675 = vector.broadcast %674 : vector<1x128xf32> to vector<8x128xf32>
    %676 = arith.addf %673, %675 : vector<8x128xf32>
    %cst_599 = arith.constant 0.000000e+00 : f32
    %677 = vector.broadcast %cst_599 : f32 to vector<8x128xf32>
    %678 = arith.cmpf oge, %676, %677 : vector<8x128xf32>
    %cst_600 = arith.constant 2.000000e-01 : f32
    %679 = vector.broadcast %cst_600 : f32 to vector<8x128xf32>
    %680 = arith.mulf %679, %676 : vector<8x128xf32>
    %681 = arith.select %678, %676, %680 : vector<8x128xi1>, vector<8x128xf32>
    %682 = arith.truncf %681 : vector<8x128xf32> to vector<8x128xbf16>
    %c0_601 = arith.constant 0 : index
    %c6_602 = arith.constant 6 : index
    %c0_603 = arith.constant 0 : index
    %c0_604 = arith.constant 0 : index
    %683 = vector.load %arg4[%c0_601, %c6_602, %c0_603, %c0_604] : memref<1x8x8x128xbf16, #tpu.memory_space<vmem>>, vector<1x1x8x128xbf16>
    %684 = vector.shape_cast %683 : vector<1x1x8x128xbf16> to vector<8x128xbf16>
    %685 = vector.shape_cast %682 : vector<8x128xbf16> to vector<1x1x8x128xbf16>
    tpu.vector_store %arg4[%c0_601, %c6_602, %c0_603, %c0_604], %685 {strides = array<i32>} : memref<1x8x8x128xbf16, #tpu.memory_space<vmem>>, vector<1x1x8x128xbf16>,
    %cst_605 = arith.constant 0.000000e+00 : f32
    %686 = vector.broadcast %cst_605 : f32 to vector<8x128xf32>
    %c0_606 = arith.constant 0 : index
    %c14_607 = arith.constant 14 : index
    %c0_608 = arith.constant 0 : index
    %c0_609 = arith.constant 0 : index
    %687 = vector.load %arg1[%c0_606, %c14_607, %c0_608, %c0_609] : memref<1x20x10x6xbf16, #tpu.memory_space<vmem>>, vector<1x1x10x6xbf16>
    %688 = vector.shape_cast %687 : vector<1x1x10x6xbf16> to vector<10x6xbf16>
    %689 = vector.extract_strided_slice %688 {offsets = [0, 0], sizes = [8, 6], strides = [1, 1]} : vector<10x6xbf16> to vector<8x6xbf16>
    %c0_610 = arith.constant 0 : index
    %c0_611 = arith.constant 0 : index
    %c0_612 = arith.constant 0 : index
    %690 = vector.load %arg2[%c0_610, %c0_611, %c0_612] : memref<15x6x128xbf16, #tpu.memory_space<vmem>>, vector<1x6x128xbf16>
    %691 = vector.shape_cast %690 : vector<1x6x128xbf16> to vector<6x128xbf16>
    %cst_613 = arith.constant dense<0.000000e+00> : vector<8x128xf32>
    %692 = tpu.matmul %689, %691, %cst_613 {dimension_numbers = #tpu.dot_dimension_numbers<[1], [0], [0], [1], [0, 0, 1, 1], [], []>} : vector<8x6xbf16>, vector<6x128xbf16>, vector<8x128xf32> -> vector<8x128xf32>
    %693 = arith.addf %686, %692 : vector<8x128xf32>
    %694 = vector.extract_strided_slice %688 {offsets = [1, 0], sizes = [8, 6], strides = [1, 1]} : vector<10x6xbf16> to vector<8x6xbf16>
    %c1_614 = arith.constant 1 : index
    %c0_615 = arith.constant 0 : index
    %c0_616 = arith.constant 0 : index
    %695 = vector.load %arg2[%c1_614, %c0_615, %c0_616] : memref<15x6x128xbf16, #tpu.memory_space<vmem>>, vector<1x6x128xbf16>
    %696 = vector.shape_cast %695 : vector<1x6x128xbf16> to vector<6x128xbf16>
    %cst_617 = arith.constant dense<0.000000e+00> : vector<8x128xf32>
    %697 = tpu.matmul %694, %696, %cst_617 {dimension_numbers = #tpu.dot_dimension_numbers<[1], [0], [0], [1], [0, 0, 1, 1], [], []>} : vector<8x6xbf16>, vector<6x128xbf16>, vector<8x128xf32> -> vector<8x128xf32>
    %698 = arith.addf %693, %697 : vector<8x128xf32>
    %699 = vector.extract_strided_slice %688 {offsets = [2, 0], sizes = [8, 6], strides = [1, 1]} : vector<10x6xbf16> to vector<8x6xbf16>
    %c2_618 = arith.constant 2 : index
    %c0_619 = arith.constant 0 : index
    %c0_620 = arith.constant 0 : index
    %700 = vector.load %arg2[%c2_618, %c0_619, %c0_620] : memref<15x6x128xbf16, #tpu.memory_space<vmem>>, vector<1x6x128xbf16>
    %701 = vector.shape_cast %700 : vector<1x6x128xbf16> to vector<6x128xbf16>
    %cst_621 = arith.constant dense<0.000000e+00> : vector<8x128xf32>
    %702 = tpu.matmul %699, %701, %cst_621 {dimension_numbers = #tpu.dot_dimension_numbers<[1], [0], [0], [1], [0, 0, 1, 1], [], []>} : vector<8x6xbf16>, vector<6x128xbf16>, vector<8x128xf32> -> vector<8x128xf32>
    %703 = arith.addf %698, %702 : vector<8x128xf32>
    %c0_622 = arith.constant 0 : index
    %c15_623 = arith.constant 15 : index
    %c0_624 = arith.constant 0 : index
    %c0_625 = arith.constant 0 : index
    %704 = vector.load %arg1[%c0_622, %c15_623, %c0_624, %c0_625] : memref<1x20x10x6xbf16, #tpu.memory_space<vmem>>, vector<1x1x10x6xbf16>
    %705 = vector.shape_cast %704 : vector<1x1x10x6xbf16> to vector<10x6xbf16>
    %706 = vector.extract_strided_slice %705 {offsets = [0, 0], sizes = [8, 6], strides = [1, 1]} : vector<10x6xbf16> to vector<8x6xbf16>
    %c3_626 = arith.constant 3 : index
    %c0_627 = arith.constant 0 : index
    %c0_628 = arith.constant 0 : index
    %707 = vector.load %arg2[%c3_626, %c0_627, %c0_628] : memref<15x6x128xbf16, #tpu.memory_space<vmem>>, vector<1x6x128xbf16>
    %708 = vector.shape_cast %707 : vector<1x6x128xbf16> to vector<6x128xbf16>
    %cst_629 = arith.constant dense<0.000000e+00> : vector<8x128xf32>
    %709 = tpu.matmul %706, %708, %cst_629 {dimension_numbers = #tpu.dot_dimension_numbers<[1], [0], [0], [1], [0, 0, 1, 1], [], []>} : vector<8x6xbf16>, vector<6x128xbf16>, vector<8x128xf32> -> vector<8x128xf32>
    %710 = arith.addf %703, %709 : vector<8x128xf32>
    %711 = vector.extract_strided_slice %705 {offsets = [1, 0], sizes = [8, 6], strides = [1, 1]} : vector<10x6xbf16> to vector<8x6xbf16>
    %c4_630 = arith.constant 4 : index
    %c0_631 = arith.constant 0 : index
    %c0_632 = arith.constant 0 : index
    %712 = vector.load %arg2[%c4_630, %c0_631, %c0_632] : memref<15x6x128xbf16, #tpu.memory_space<vmem>>, vector<1x6x128xbf16>
    %713 = vector.shape_cast %712 : vector<1x6x128xbf16> to vector<6x128xbf16>
    %cst_633 = arith.constant dense<0.000000e+00> : vector<8x128xf32>
    %714 = tpu.matmul %711, %713, %cst_633 {dimension_numbers = #tpu.dot_dimension_numbers<[1], [0], [0], [1], [0, 0, 1, 1], [], []>} : vector<8x6xbf16>, vector<6x128xbf16>, vector<8x128xf32> -> vector<8x128xf32>
    %715 = arith.addf %710, %714 : vector<8x128xf32>
    %716 = vector.extract_strided_slice %705 {offsets = [2, 0], sizes = [8, 6], strides = [1, 1]} : vector<10x6xbf16> to vector<8x6xbf16>
    %c5_634 = arith.constant 5 : index
    %c0_635 = arith.constant 0 : index
    %c0_636 = arith.constant 0 : index
    %717 = vector.load %arg2[%c5_634, %c0_635, %c0_636] : memref<15x6x128xbf16, #tpu.memory_space<vmem>>, vector<1x6x128xbf16>
    %718 = vector.shape_cast %717 : vector<1x6x128xbf16> to vector<6x128xbf16>
    %cst_637 = arith.constant dense<0.000000e+00> : vector<8x128xf32>
    %719 = tpu.matmul %716, %718, %cst_637 {dimension_numbers = #tpu.dot_dimension_numbers<[1], [0], [0], [1], [0, 0, 1, 1], [], []>} : vector<8x6xbf16>, vector<6x128xbf16>, vector<8x128xf32> -> vector<8x128xf32>
    %720 = arith.addf %715, %719 : vector<8x128xf32>
    %c0_638 = arith.constant 0 : index
    %c16_639 = arith.constant 16 : index
    %c0_640 = arith.constant 0 : index
    %c0_641 = arith.constant 0 : index
    %721 = vector.load %arg1[%c0_638, %c16_639, %c0_640, %c0_641] : memref<1x20x10x6xbf16, #tpu.memory_space<vmem>>, vector<1x1x10x6xbf16>
    %722 = vector.shape_cast %721 : vector<1x1x10x6xbf16> to vector<10x6xbf16>
    %723 = vector.extract_strided_slice %722 {offsets = [0, 0], sizes = [8, 6], strides = [1, 1]} : vector<10x6xbf16> to vector<8x6xbf16>
    %c6_642 = arith.constant 6 : index
    %c0_643 = arith.constant 0 : index
    %c0_644 = arith.constant 0 : index
    %724 = vector.load %arg2[%c6_642, %c0_643, %c0_644] : memref<15x6x128xbf16, #tpu.memory_space<vmem>>, vector<1x6x128xbf16>
    %725 = vector.shape_cast %724 : vector<1x6x128xbf16> to vector<6x128xbf16>
    %cst_645 = arith.constant dense<0.000000e+00> : vector<8x128xf32>
    %726 = tpu.matmul %723, %725, %cst_645 {dimension_numbers = #tpu.dot_dimension_numbers<[1], [0], [0], [1], [0, 0, 1, 1], [], []>} : vector<8x6xbf16>, vector<6x128xbf16>, vector<8x128xf32> -> vector<8x128xf32>
    %727 = arith.addf %720, %726 : vector<8x128xf32>
    %728 = vector.extract_strided_slice %722 {offsets = [1, 0], sizes = [8, 6], strides = [1, 1]} : vector<10x6xbf16> to vector<8x6xbf16>
    %c7_646 = arith.constant 7 : index
    %c0_647 = arith.constant 0 : index
    %c0_648 = arith.constant 0 : index
    %729 = vector.load %arg2[%c7_646, %c0_647, %c0_648] : memref<15x6x128xbf16, #tpu.memory_space<vmem>>, vector<1x6x128xbf16>
    %730 = vector.shape_cast %729 : vector<1x6x128xbf16> to vector<6x128xbf16>
    %cst_649 = arith.constant dense<0.000000e+00> : vector<8x128xf32>
    %731 = tpu.matmul %728, %730, %cst_649 {dimension_numbers = #tpu.dot_dimension_numbers<[1], [0], [0], [1], [0, 0, 1, 1], [], []>} : vector<8x6xbf16>, vector<6x128xbf16>, vector<8x128xf32> -> vector<8x128xf32>
    %732 = arith.addf %727, %731 : vector<8x128xf32>
    %733 = vector.extract_strided_slice %722 {offsets = [2, 0], sizes = [8, 6], strides = [1, 1]} : vector<10x6xbf16> to vector<8x6xbf16>
    %c8_650 = arith.constant 8 : index
    %c0_651 = arith.constant 0 : index
    %c0_652 = arith.constant 0 : index
    %734 = vector.load %arg2[%c8_650, %c0_651, %c0_652] : memref<15x6x128xbf16, #tpu.memory_space<vmem>>, vector<1x6x128xbf16>
    %735 = vector.shape_cast %734 : vector<1x6x128xbf16> to vector<6x128xbf16>
    %cst_653 = arith.constant dense<0.000000e+00> : vector<8x128xf32>
    %736 = tpu.matmul %733, %735, %cst_653 {dimension_numbers = #tpu.dot_dimension_numbers<[1], [0], [0], [1], [0, 0, 1, 1], [], []>} : vector<8x6xbf16>, vector<6x128xbf16>, vector<8x128xf32> -> vector<8x128xf32>
    %737 = arith.addf %732, %736 : vector<8x128xf32>
    %c0_654 = arith.constant 0 : index
    %c17 = arith.constant 17 : index
    %c0_655 = arith.constant 0 : index
    %c0_656 = arith.constant 0 : index
    %738 = vector.load %arg1[%c0_654, %c17, %c0_655, %c0_656] : memref<1x20x10x6xbf16, #tpu.memory_space<vmem>>, vector<1x1x10x6xbf16>
    %739 = vector.shape_cast %738 : vector<1x1x10x6xbf16> to vector<10x6xbf16>
    %740 = vector.extract_strided_slice %739 {offsets = [0, 0], sizes = [8, 6], strides = [1, 1]} : vector<10x6xbf16> to vector<8x6xbf16>
    %c9_657 = arith.constant 9 : index
    %c0_658 = arith.constant 0 : index
    %c0_659 = arith.constant 0 : index
    %741 = vector.load %arg2[%c9_657, %c0_658, %c0_659] : memref<15x6x128xbf16, #tpu.memory_space<vmem>>, vector<1x6x128xbf16>
    %742 = vector.shape_cast %741 : vector<1x6x128xbf16> to vector<6x128xbf16>
    %cst_660 = arith.constant dense<0.000000e+00> : vector<8x128xf32>
    %743 = tpu.matmul %740, %742, %cst_660 {dimension_numbers = #tpu.dot_dimension_numbers<[1], [0], [0], [1], [0, 0, 1, 1], [], []>} : vector<8x6xbf16>, vector<6x128xbf16>, vector<8x128xf32> -> vector<8x128xf32>
    %744 = arith.addf %737, %743 : vector<8x128xf32>
    %745 = vector.extract_strided_slice %739 {offsets = [1, 0], sizes = [8, 6], strides = [1, 1]} : vector<10x6xbf16> to vector<8x6xbf16>
    %c10_661 = arith.constant 10 : index
    %c0_662 = arith.constant 0 : index
    %c0_663 = arith.constant 0 : index
    %746 = vector.load %arg2[%c10_661, %c0_662, %c0_663] : memref<15x6x128xbf16, #tpu.memory_space<vmem>>, vector<1x6x128xbf16>
    %747 = vector.shape_cast %746 : vector<1x6x128xbf16> to vector<6x128xbf16>
    %cst_664 = arith.constant dense<0.000000e+00> : vector<8x128xf32>
    %748 = tpu.matmul %745, %747, %cst_664 {dimension_numbers = #tpu.dot_dimension_numbers<[1], [0], [0], [1], [0, 0, 1, 1], [], []>} : vector<8x6xbf16>, vector<6x128xbf16>, vector<8x128xf32> -> vector<8x128xf32>
    %749 = arith.addf %744, %748 : vector<8x128xf32>
    %750 = vector.extract_strided_slice %739 {offsets = [2, 0], sizes = [8, 6], strides = [1, 1]} : vector<10x6xbf16> to vector<8x6xbf16>
    %c11_665 = arith.constant 11 : index
    %c0_666 = arith.constant 0 : index
    %c0_667 = arith.constant 0 : index
    %751 = vector.load %arg2[%c11_665, %c0_666, %c0_667] : memref<15x6x128xbf16, #tpu.memory_space<vmem>>, vector<1x6x128xbf16>
    %752 = vector.shape_cast %751 : vector<1x6x128xbf16> to vector<6x128xbf16>
    %cst_668 = arith.constant dense<0.000000e+00> : vector<8x128xf32>
    %753 = tpu.matmul %750, %752, %cst_668 {dimension_numbers = #tpu.dot_dimension_numbers<[1], [0], [0], [1], [0, 0, 1, 1], [], []>} : vector<8x6xbf16>, vector<6x128xbf16>, vector<8x128xf32> -> vector<8x128xf32>
    %754 = arith.addf %749, %753 : vector<8x128xf32>
    %c0_669 = arith.constant 0 : index
    %c18 = arith.constant 18 : index
    %c0_670 = arith.constant 0 : index
    %c0_671 = arith.constant 0 : index
    %755 = vector.load %arg1[%c0_669, %c18, %c0_670, %c0_671] : memref<1x20x10x6xbf16, #tpu.memory_space<vmem>>, vector<1x1x10x6xbf16>
    %756 = vector.shape_cast %755 : vector<1x1x10x6xbf16> to vector<10x6xbf16>
    %757 = vector.extract_strided_slice %756 {offsets = [0, 0], sizes = [8, 6], strides = [1, 1]} : vector<10x6xbf16> to vector<8x6xbf16>
    %c12_672 = arith.constant 12 : index
    %c0_673 = arith.constant 0 : index
    %c0_674 = arith.constant 0 : index
    %758 = vector.load %arg2[%c12_672, %c0_673, %c0_674] : memref<15x6x128xbf16, #tpu.memory_space<vmem>>, vector<1x6x128xbf16>
    %759 = vector.shape_cast %758 : vector<1x6x128xbf16> to vector<6x128xbf16>
    %cst_675 = arith.constant dense<0.000000e+00> : vector<8x128xf32>
    %760 = tpu.matmul %757, %759, %cst_675 {dimension_numbers = #tpu.dot_dimension_numbers<[1], [0], [0], [1], [0, 0, 1, 1], [], []>} : vector<8x6xbf16>, vector<6x128xbf16>, vector<8x128xf32> -> vector<8x128xf32>
    %761 = arith.addf %754, %760 : vector<8x128xf32>
    %762 = vector.extract_strided_slice %756 {offsets = [1, 0], sizes = [8, 6], strides = [1, 1]} : vector<10x6xbf16> to vector<8x6xbf16>
    %c13_676 = arith.constant 13 : index
    %c0_677 = arith.constant 0 : index
    %c0_678 = arith.constant 0 : index
    %763 = vector.load %arg2[%c13_676, %c0_677, %c0_678] : memref<15x6x128xbf16, #tpu.memory_space<vmem>>, vector<1x6x128xbf16>
    %764 = vector.shape_cast %763 : vector<1x6x128xbf16> to vector<6x128xbf16>
    %cst_679 = arith.constant dense<0.000000e+00> : vector<8x128xf32>
    %765 = tpu.matmul %762, %764, %cst_679 {dimension_numbers = #tpu.dot_dimension_numbers<[1], [0], [0], [1], [0, 0, 1, 1], [], []>} : vector<8x6xbf16>, vector<6x128xbf16>, vector<8x128xf32> -> vector<8x128xf32>
    %766 = arith.addf %761, %765 : vector<8x128xf32>
    %767 = vector.extract_strided_slice %756 {offsets = [2, 0], sizes = [8, 6], strides = [1, 1]} : vector<10x6xbf16> to vector<8x6xbf16>
    %c14_680 = arith.constant 14 : index
    %c0_681 = arith.constant 0 : index
    %c0_682 = arith.constant 0 : index
    %768 = vector.load %arg2[%c14_680, %c0_681, %c0_682] : memref<15x6x128xbf16, #tpu.memory_space<vmem>>, vector<1x6x128xbf16>
    %769 = vector.shape_cast %768 : vector<1x6x128xbf16> to vector<6x128xbf16>
    %cst_683 = arith.constant dense<0.000000e+00> : vector<8x128xf32>
    %770 = tpu.matmul %767, %769, %cst_683 {dimension_numbers = #tpu.dot_dimension_numbers<[1], [0], [0], [1], [0, 0, 1, 1], [], []>} : vector<8x6xbf16>, vector<6x128xbf16>, vector<8x128xf32> -> vector<8x128xf32>
    %771 = arith.addf %766, %770 : vector<8x128xf32>
    %c0_684 = arith.constant 0 : index
    %c0_685 = arith.constant 0 : index
    %772 = vector.load %arg3[%c0_684, %c0_685] : memref<1x128xf32, #tpu.memory_space<vmem>>, vector<1x128xf32>
    %773 = vector.broadcast %772 : vector<1x128xf32> to vector<8x128xf32>
    %774 = arith.addf %771, %773 : vector<8x128xf32>
    %cst_686 = arith.constant 0.000000e+00 : f32
    %775 = vector.broadcast %cst_686 : f32 to vector<8x128xf32>
    %776 = arith.cmpf oge, %774, %775 : vector<8x128xf32>
    %cst_687 = arith.constant 2.000000e-01 : f32
    %777 = vector.broadcast %cst_687 : f32 to vector<8x128xf32>
    %778 = arith.mulf %777, %774 : vector<8x128xf32>
    %779 = arith.select %776, %774, %778 : vector<8x128xi1>, vector<8x128xf32>
    %780 = arith.truncf %779 : vector<8x128xf32> to vector<8x128xbf16>
    %c0_688 = arith.constant 0 : index
    %c7_689 = arith.constant 7 : index
    %c0_690 = arith.constant 0 : index
    %c0_691 = arith.constant 0 : index
    %781 = vector.load %arg4[%c0_688, %c7_689, %c0_690, %c0_691] : memref<1x8x8x128xbf16, #tpu.memory_space<vmem>>, vector<1x1x8x128xbf16>
    %782 = vector.shape_cast %781 : vector<1x1x8x128xbf16> to vector<8x128xbf16>
    %783 = vector.shape_cast %780 : vector<8x128xbf16> to vector<1x1x8x128xbf16>
    tpu.vector_store %arg4[%c0_688, %c7_689, %c0_690, %c0_691], %783 {strides = array<i32>} : memref<1x8x8x128xbf16, #tpu.memory_space<vmem>>, vector<1x1x8x128xbf16>,
    return
  }
  func.func @transform_0(%arg0: i32) -> (i32, i32, i32, i32) {
    %c0_i32 = arith.constant 0 : i32
    %c0_i32_0 = arith.constant 0 : i32
    %c0_i32_1 = arith.constant 0 : i32
    %c0_i32_2 = arith.constant 0 : i32
    return %arg0, %c0_i32, %c0_i32_0, %c0_i32_1 : i32, i32, i32, i32
  }
  func.func @transform_1(%arg0: i32) -> (i32, i32, i32) {
    %c0_i32 = arith.constant 0 : i32
    %c0_i32_0 = arith.constant 0 : i32
    %c0_i32_1 = arith.constant 0 : i32
    %c0_i32_2 = arith.constant 0 : i32
    return %c0_i32, %c0_i32_0, %c0_i32_1 : i32, i32, i32
  }
  func.func @transform_2(%arg0: i32) -> (i32, i32) {
    %c0_i32 = arith.constant 0 : i32
    %c0_i32_0 = arith.constant 0 : i32
    %c0_i32_1 = arith.constant 0 : i32
    return %c0_i32, %c0_i32_0 : i32, i32
  }
  func.func @transform_3(%arg0: i32) -> (i32, i32, i32, i32) {
    %c0_i32 = arith.constant 0 : i32
    %c0_i32_0 = arith.constant 0 : i32
    %c0_i32_1 = arith.constant 0 : i32
    %c0_i32_2 = arith.constant 0 : i32
    return %arg0, %c0_i32, %c0_i32_0, %c0_i32_1 : i32, i32, i32, i32
  }
}

</mosaic_0001>

<bundles_post_ra>
// kernel: tpu_custom_call.1
= control target key start
LH: loop header
LB: loop body
LE: loop exit
PB: predicated region body
PF: predicated region fallthrough
CT: control target
= control target key end

     0   :  { %8 = vsyncpa [#allocation3], 0  ;;  %s5048_s0 = inlined_call_operand.vmem [shape: bf16[2,20,10,6], index: 0, kind: input, shape index: {}]   ;;  %s5049_s1 = inlined_call_operand.vmem [shape: bf16[15,6,128], index: 1, kind: input, shape index: {}]   ;;  %s5050_s2 = inlined_call_operand.vmem [shape: f32[1,128], index: 2, kind: input, shape index: {}]   ;;  %s5051_s3 = inlined_call_operand.hbm [shape: bf16[2,8,8,128], index: 3, kind: output, shape index: {}]  }
   0x1   :  { %10 = vsyncpa [#allocation3 + $0x1], 0  ;;  %s4138_s12 = smov 0   ;;  %s4140_s13 = smov 0  }
   0x2   :  { %s4142_s14 = smov 0   ;;  %s4144_s15 = smov 0  }
   0x3 LB: > { %s4159_s16 = sadd.s32 4294967295, %s4114_s15   ;;  %s3473_s17 = sadd.s32 4294967294, %s4114_s15   ;;  %s4114_s15 = sphi %s4144_s15, %s5057_s15   ;;  %s4110_s14 = sphi %s4142_s14, %s5056_s14   ;;  %s4106_s13 = sphi %s4140_s13, %s5055_s13   ;;  %s4102_s12 = sphi %s4138_s12, %s5054_s12  }
   0x4   : > { %s4163_s18 = sadd.s32 1, %s4114_s15   ;;  %s91_s19 = sadd.s32 1, %s4110_s14 }
   0x5   : > { %s88_s20 = ssub.s32 %s4114_s15, %s4163_s18  ;;  %p101_p0 = scmp.ne.s32.totalorder %s4110_s14, %s4106_s13 }
   0x6   : > { %p89_p1 = scmp.eq.s32.totalorder %s88_s20, 0  ;;  %p102_p2 = scmp.eq.s32.totalorder %s4159_s16, 1 }
   0x7   : > { %p107_p3 = scmp.ne.s32.totalorder %s4106_s13, %s4102_s12  ;;  %p108_p4 = scmp.eq.s32.totalorder %s3473_s17, 1 }
   0x8   : > { %s4174_s21 = scalar_select %p89_p1, %s4110_s14, %s91_s19  }
   0x9   : > { %p4176_p5 = por %p102_p2, %p101_p0  ;;  %p4180_p6 = por %p108_p4, %p107_p3 }
   0xa   : > { %p3476_p7 = scmp.ge.s32.totalorder %s4114_s15, 1  ;;  %p140_p8 = scmp.lt.s32.totalorder %s4114_s15, 3 }
   0xc   : > { %p141_p9 = pnand %p3476_p7, %p140_p8 }
   0xd   : > { %p164_p10 = scmp.lt.s32.totalorder (!%p141_p9), %s4159_s16, 1  ;;  %s161_s19 = sand.u32 (!%p141_p9), 1, %s4106_s13  }
   0xe   : > { %144 = sbr.rel (%p141_p9) target bundleno = 644 (0x284), region = 32  ;;  %s3477_s28 = sshll.u32 (!%p141_p9), %s161_s19, 5 }
   0xf   : > { %s4562_s4 = scalar_lea.vmem (!%p141_p9), [#allocation2], %s3477_s28  ;;  %s4001_s29 = sshll.u32 (!%p141_p9), %s4159_s16, 5 }
  0x10   : > { %s3407_s8 = scalar_lea.hbm (!%p141_p9), %s5051_s3, %s4001_s29  ;;  %s3408_s9 = sshll.u32 (!%p141_p9), %s4562_s4, 4  ;;  %s3409_s9 = int_to_ptr.vmem [resolvable:$true] %s3408_s9 }
  0x11   : > { %s3410_s10 = sshll.u32 (!%p141_p9), %s3407_s8, 4  ;;  %s3411_s10 = int_to_ptr.hbm [resolvable:$true] %s3410_s10 }
  0x12   : > { %s4066_s11 = sshra.s32 (!%p141_p9), %s3411_s10, 4  ;;  %s4067_s11 = int_to_ptr.hbm [resolvable:$true] %s4066_s11 }
  0x13   : > { %vm191_vm0 = vcmask 1042432   ;;  %v3490_v0 = vld [vmem:[%s5049_s1 + $0xc] sm:$0x7]  ;;  %v172_v1 = vld [vmem:[%s5049_s1] sm:$0x7]  ;;  %s165_s30 = scalar_select %p164_p10, %s4159_s16, 1 }
  0x14   : > { %v259_v2 = vsel %vm191_vm0, %v3490_v0, 0  ;;  %v212_v3 = vsel %vm191_vm0, %v172_v1, 0  ;;  %v3486_v4 = vld [vmem:[%s5049_s1 + $0x8] sm:$0x7]  ;;  %v3479_v6 = vld [vmem:[%s5049_s1 + $0x4] sm:$0x7]  ;;  %p4073_p0 = scmp.lt.s32.totalorder %s4067_s11, %s5051_s3 }
  0x15   : > { %268 = vmatpush.bf16.msra.mxu3 %v259_v2  ;;  %221 = vmatpush.bf16.msra.mxu1 %v212_v3  ;;  %v234_v5 = vsel %vm191_vm0, %v3486_v4, 0  ;;  %v3502_v7 = vld [vmem:[%s5049_s1 + $0x18] sm:$0x7]  ;;  %v193_v8 = vsel %vm191_vm0, %v3479_v6, 0  ;;  %v3492_v10 = vld [vmem:[%s5049_s1 + $0x10] sm:$0x7] }
  0x16   : > { %243 = vmatpush.bf16.msra.mxu2 %v234_v5  ;;  %v341_v9 = vsel %vm191_vm0, %v3502_v7, 0  ;;  %v3504_v11 = vld [vmem:[%s5049_s1 + $0x1c] sm:$0x7]  ;;  %s4002_s17 = smul.u32 160, %s165_s30  ;;  %202 = vmatpush.bf16.msra.mxu0 %v193_v8  ;;  %v293_v12 = vsel %vm191_vm0, %v3492_v10, 0  ;;  %vm187_vm1 = vcmask 48128  }
  0x17   : > { %v375_v13 = vsel %vm191_vm0, %v3504_v11, 0  ;;  %v3498_v14 = vld [vmem:[%s5049_s1 + $0x14] sm:$0x7]  ;;  %v3516_v16 = vld [vmem:[%s5049_s1 + $0x28] sm:$0x7]  ;;  %s3396_s16 = scalar_lea.sflag [#allocation3], %s161_s19 }
  0x18   : > { %v316_v15 = vsel %vm191_vm0, %v3498_v14, 0  ;;  %s4223_s26 = scalar_lea.vmem %s5048_s0, %s4002_s17  ;;  %v3522_v17 = vld [vmem:[%s5049_s1 + $0x2c] sm:$0x7]  ;;  %v3514_v18 = vld [vmem:[%s5049_s1 + $0x24] sm:$0x7]  ;;  %v457_v34 = vsel %vm191_vm0, %v3516_v16, 0 }
  0x19   : > { %384 = vmatpush.bf16.msrb.mxu3 %v375_v13  ;;  %325 = vmatpush.bf16.msrb.mxu1 %v316_v15  ;;  %v3488_v19 = vld [vmem:[%s4223_s26 + $0x8] sm:$0xf]  ;;  %v170_v20 = vld [vmem:[%s4223_s26] sm:$0xf]  ;;  %v3961_v22 = vld [vmem:[%s4223_s26] sm:$0x10] }
  0x1a   : > { %350 = vmatpush.bf16.msrb.mxu2 %v341_v9  ;;  %302 = vmatpush.bf16.msrb.mxu0 %v293_v12  ;;  %v3482_v21 = vld [vmem:[%s4223_s26] sm:$0xf]  ;;  %v3507_v23 = vld [vmem:[%s4223_s26 + $0x10] sm:$0xf]  ;;  %v3963_v24 = vld [vmem:[%s4223_s26 + $0x10] sm:$0x10] }
  0x1b   : > { %3491 = vmatmul.msk.bf16.vlgmr.msra.gmra.mxu3 %vm187_vm1, %v3488_v19  ;;  %3485 = vmatmul.msk.bf16.vlgmr.msra.gmra.mxu1 %vm187_vm1, %v170_v20  ;;  %v3483_v25 = vor.u32 %v3961_v22, %v3482_v21  ;;  %v4242_v26 = vor.u32 %v3963_v24, %v3507_v23  ;;  %v3510_v27 = vld [vmem:[%s5049_s1 + $0x20] sm:$0x7]  ;;  %v480_v28 = vsel %vm191_vm0, %v3522_v17, 0  ;;  %v423_v29 = vsel %vm191_vm0, %v3514_v18, 0  ;;  %v3495_v33 = vld [vmem:[%s4223_s26 + $0x8] sm:$0xf] }
  0x1c   : > { %v3962_v36 = vld [vmem:[%s4223_s26 + $0x8] sm:$0x10]  ;;  %v398_v40 = vsel %vm191_vm0, %v3510_v27, 0  ;;  %v3538_v44 = vld [vmem:[%s5049_s1 + $0x4] sm:$0x7]  ;;  %s4068_s17 = scalar_lea.hbm %s4067_s11, 32 }
  0x1d   : > { %v229_v30 = vrot.slane %v3483_v25, 1  ;;  %v181_v31 = vshrl.u32 %v3483_v25, 16  ;;  %v183_v32 = vshll.u32 %v3483_v25, 16  ;;  %489 = vmatpush.bf16.msra.mxu3 %v480_v28  ;;  %432 = vmatpush.bf16.msra.mxu1 %v423_v29  ;;  %v367_v35 = vshll.u32 %v4242_v26, 16  ;;  %v3528_v45 = vld [vmem:[%s5049_s1 + $0x34] sm:$0x7]  ;;  %p4069_p11 = scmp.ne.s32.totalorder %s4067_s11, %s4068_s17 }
  0x1e   : > { %v3496_v39 = vor.u32 %v3962_v36, %v3495_v33  ;;  %v365_v41 = vshrl.u32 %v4242_v26, 16  ;;  %v608_v48 = vsel %vm191_vm0, %v3538_v44, 0  ;;  %v539_v49 = vsel %vm191_vm0, %v3528_v45, 0  ;;  %v3534_v50 = vld [vmem:[%s5049_s1 + $0x38] sm:$0x7] }
  0x1f   : > { %3487 = vmatmul.msk.bf16.vlgmr.msra.gmra.mxu2 %vm187_vm1, %v229_v30  ;;  %v185_v37 = vrot.slane %v183_v32, 1  ;;  %v369_v42 = vrot.slane %v367_v35, 1  ;;  %v3500_v53 = vld [vmem:[%s4223_s26 + $0x10] sm:$0xf]  ;;  %v3519_v54 = vld [vmem:[%s4223_s26 + $0x18] sm:$0xf]  ;;  %p4070_p12 = pnand %p4069_p11, %p4176_p5 }
  0x20   : > { %466 = vmatpush.bf16.msra.mxu2 %v457_v34  ;;  %v311_v43 = vrot.slane %v3496_v39, 1  ;;  %v285_v47 = vshll.u32 %v3496_v39, 16  ;;  %v283_v51 = vshrl.u32 %v3496_v39, 16  ;;  %v3964_v55 = vld [vmem:[%s4223_s26 + $0x18] sm:$0x10]  ;;  %v562_v56 = vsel %vm191_vm0, %v3534_v50, 0 }
  0x21   : > { %v186_v38 = vor.u32 %v185_v37, %v181_v31  ;;  %v370_v46 = vor.u32 %v369_v42, %v365_v41  ;;  %v3526_v57 = vld [vmem:[%s5049_s1 + $0x30] sm:$0x7]  ;;  %v3520_v59 = vor.u32 %v3964_v55, %v3519_v54  ;;  %v3512_v62 = vld [vmem:[%s4223_s26 + $0x18] sm:$0xf]  ;;  %v3545_v0 = vld [vmem:[%s5049_s1 + $0x8] sm:$0x7]  ;;  %p4071_p13 = pneg %p4070_p12 }
  0x22   : > { %v287_v52 = vrot.slane %v285_v47, 1  ;;  %v505_v60 = vsel %vm191_vm0, %v3526_v57, 0  ;;  %v3551_v63 = vld [vmem:[%s5049_s1 + $0x10] sm:$0x7]  ;;  %v3966_v3 = vld [vmem:[%s4223_s26 + $0x10] sm:$0x10] }
  0x23   : > { %3484 = vmatmul.msk.bf16.vlgmr.msra.gmra.mxu0 %vm187_vm1, %v186_v38  ;;  %v449_v61 = vshll.u32 %v3520_v59, 16  ;;  %v475_v1 = vrot.slane %v3520_v59, 1  ;;  %v3541_v2 = vld [vmem:[%s4223_s26 + $0x10] sm:$0xf]  ;;  %v447_v4 = vshrl.u32 %v3520_v59, 16  ;;  %v704_v8 = vsel %vm191_vm0, %v3551_v63, 0 }
  0x24   : > { %407 = vmatpush.bf16.msra.mxu0 %v398_v40  ;;  %v288_v58 = vor.u32 %v287_v52, %v283_v51  ;;  %v3531_v6 = vld [vmem:[%s4223_s26 + $0x20] sm:$0xf]  ;;  %v3965_v7 = vld [vmem:[%s4223_s26 + $0x20] sm:$0x10]  ;;  %v648_v9 = vsel %vm191_vm0, %v3545_v0, 0  ;;  %v3542_v10 = vor.u32 %v3966_v3, %v3541_v2  ;;  %v393_v18 = vrot.slane %v4242_v26, 1 }
  0x25   : > { %v451_v5 = vrot.slane %v449_v61, 1  ;;  %v3532_v11 = vor.u32 %v3965_v7, %v3531_v6  ;;  %v3549_v12 = vld [vmem:[%s5049_s1 + $0xc] sm:$0x7]  ;;  %v590_v17 = vld [vmem:[%s5049_s1] sm:$0x7] }
  0x26   : > { %v671_v14 = vsel %vm191_vm0, %v3549_v12, 0  ;;  %v600_v15 = vshll.u32 %v3542_v10, 16  ;;  %v627_v19 = vsel %vm191_vm0, %v590_v17, 0  ;;  %v598_v20 = vshrl.u32 %v3542_v10, 16  ;;  %v3569_v24 = vld [vmem:[%s5049_s1 + $0x20] sm:$0x7] }
  0x27   : > { %v452_v13 = vor.u32 %v451_v5, %v447_v4  ;;  %v531_v16 = vshll.u32 %v3532_v11, 16  ;;  %v529_v22 = vshrl.u32 %v3532_v11, 16  ;;  %v3561_v25 = vld [vmem:[%s5049_s1 + $0x18] sm:$0x7]  ;;  %v3967_v29 = vld [vmem:[%s4223_s26 + $0x18] sm:$0x10] }
  0x28   : > { %v602_v21 = vrot.slane %v600_v15, 1  ;;  %v3554_v28 = vld [vmem:[%s4223_s26 + $0x18] sm:$0xf]  ;;  %v804_v30 = vsel %vm191_vm0, %v3569_v24, 0  ;;  %v749_v31 = vsel %vm191_vm0, %v3561_v25, 0  ;;  %v557_v34 = vrot.slane %v3532_v11, 1 }
  0x29   : > { %v533_v23 = vrot.slane %v531_v16, 1  ;;  %v4318_v32 = vor.u32 %v3967_v29, %v3554_v28  ;;  %v3563_v33 = vld [vmem:[%s5049_s1 + $0x1c] sm:$0x7]  ;;  %v3557_v37 = vld [vmem:[%s5049_s1 + $0x14] sm:$0x7]  ;;  %v643_v45 = vrot.slane %v3542_v10, 1 }
  0x2a   : > { %v603_v27 = vor.u32 %v602_v21, %v598_v20  ;;  %v782_v35 = vsel %vm191_vm0, %v3563_v33, 0  ;;  %v3524_v38 = vld [vmem:[%s4223_s26 + $0x20] sm:$0xf]  ;;  %v726_v39 = vsel %vm191_vm0, %v3557_v37, 0  ;;  %v3585_v42 = vld [vmem:[%s5049_s1 + $0x30] sm:$0x7] }
  0x2b   : > { %3509 = vmatmul.msk.bf16.vlgmr.msrb.gmra.mxu3 %vm187_vm1, %v370_v46  ;;  %3499 = vmatmul.msk.bf16.vlgmr.msrb.gmra.mxu1 %vm187_vm1, %v311_v43  ;;  %v534_v26 = vor.u32 %v533_v23, %v529_v22  ;;  %v696_v36 = vshll.u32 %v4318_v32, 16  ;;  %v694_v40 = vshrl.u32 %v4318_v32, 16  ;;  %v3575_v43 = vld [vmem:[%s5049_s1 + $0x28] sm:$0x7]  ;;  %v907_v46 = vsel %vm191_vm0, %v3585_v42, 0 }
  0x2c   : > { %617 = vmatpush.bf16.msrb.mxu3 %v608_v48  ;;  %548 = vmatpush.bf16.msrb.mxu1 %v539_v49  ;;  %v861_v47 = vsel %vm191_vm0, %v3575_v43, 0  ;;  %v3581_v48 = vld [vmem:[%s5049_s1 + $0x2c] sm:$0x7]  ;;  %v3547_v49 = vld [vmem:[%s4223_s26 + $0x18] sm:$0xf]  ;;  %v721_v10 = vrot.slane %v4318_v32, 1 }
  0x2d   : > { %v698_v41 = vrot.slane %v696_v36, 1  ;;  %v3566_v50 = vld [vmem:[%s4223_s26 + $0x20] sm:$0xf]  ;;  %v3968_v51 = vld [vmem:[%s4223_s26 + $0x20] sm:$0x10]  ;;  %v883_v52 = vsel %vm191_vm0, %v3581_v48, 0 }
  0x2e   : > { %v3567_v54 = vor.u32 %v3968_v51, %v3566_v50  ;;  %v3536_v55 = vld [vmem:[%s4223_s26 + $0x10] sm:$0xf]  ;;  %v3593_v59 = vld [vmem:[%s5049_s1 + $0x38] sm:$0x7]  ;;  %v3559_v61 = vld [vmem:[%s4223_s26 + $0x20] sm:$0xf] }
  0x2f   : > { %3503 = vmatmul.msk.bf16.vlgmr.msrb.gmra.mxu2 %vm187_vm1, %v3500_v53  ;;  %v699_v44 = vor.u32 %v698_v41, %v694_v40  ;;  %v3573_v53 = vld [vmem:[%s5049_s1 + $0x24] sm:$0x7]  ;;  %v3578_v0 = vld [vmem:[%s4223_s26 + $0x28] sm:$0xf]  ;;  %v962_v3 = vsel %vm191_vm0, %v3593_v59, 0 }
  0x30   : > { %571 = vmatpush.bf16.msrb.mxu2 %v562_v56  ;;  %v828_v56 = vsel %vm191_vm0, %v3573_v53, 0  ;;  %v774_v57 = vshll.u32 %v3567_v54, 16  ;;  %v3598_v5 = vld [vmem:[%s5049_s1 + $0x4] sm:$0x7]  ;;  %v3609_v15 = vld [vmem:[%s5049_s1 + $0xc] sm:$0x7] }
  0x31   : > { %v1009_v7 = vsel %vm191_vm0, %v3598_v5, 0  ;;  %v3583_v17 = vld [vmem:[%s4223_s26 + $0x30] sm:$0xf]  ;;  %v3601_v22 = vld [vmem:[%s4223_s26 + $0x20] sm:$0xf] }
  0x32   : > { %v776_v63 = vrot.slane %v774_v57, 1  ;;  %v3611_v20 = vld [vmem:[%s5049_s1 + $0x10] sm:$0x7]  ;;  %v3971_v23 = vld [vmem:[%s4223_s26 + $0x20] sm:$0x10] }
  0x33   : > { %3497 = vmatmul.msk.bf16.vlgmr.msrb.gmra.mxu0 %vm187_vm1, %v288_v58  ;;  %v991_v58 = vld [vmem:[%s5049_s1] sm:$0x7]  ;;  %v1105_v24 = vsel %vm191_vm0, %v3611_v20, 0  ;;  %v3605_v25 = vld [vmem:[%s5049_s1 + $0x8] sm:$0x7]  ;;  %v4404_v28 = vor.u32 %v3971_v23, %v3601_v22 }
  0x34   : > { %514 = vmatpush.bf16.msrb.mxu0 %v505_v60  ;;  %v799_v60 = vrot.slane %v3567_v54, 1  ;;  %v1028_v2 = vsel %vm191_vm0, %v991_v58, 0  ;;  %v3571_v29 = vld [vmem:[%s4223_s26 + $0x28] sm:$0xf]  ;;  %v3633_v33 = vld [vmem:[%s5049_s1 + $0x24] sm:$0x7] }
  0x35   : > { %v1001_v32 = vshll.u32 %v4404_v28, 16  ;;  %v3596_v36 = vld [vmem:[%s4223_s26 + $0x20] sm:$0xf]  ;;  %v999_v37 = vshrl.u32 %v4404_v28, 16  ;;  %v1229_v40 = vsel %vm191_vm0, %v3633_v33, 0 }
  0x36   : > { %v3629_v42 = vld [vmem:[%s5049_s1 + $0x20] sm:$0x7]  ;;  %v3607_v57 = vld [vmem:[%s4223_s26 + $0x28] sm:$0xf]  ;;  %v3631_v20 = vld [vmem:[%s4223_s26 + $0x38] sm:$0xf] }
  0x37   : > { %v1205_v48 = vsel %vm191_vm0, %v3629_v42, 0  ;;  %v3975_v22 = vld [vmem:[%s4223_s26 + $0x40] sm:$0x10] }
  0x3b   : > { %3523 = vmatmul.msk.bf16.vlgmr.msra.gmra.mxu3 %vm187_vm1, %v475_v1  ;;  %3515 = vmatmul.msk.bf16.vlgmr.msra.gmra.mxu1 %vm187_vm1, %v3512_v62  ;;  %v772_v62 = vshrl.u32 %v3567_v54, 16  ;;  %v3969_v1 = vld [vmem:[%s4223_s26 + $0x28] sm:$0x10]  ;;  %v3647_v54 = vld [vmem:[%s5049_s1 + $0x34] sm:$0x7] }
  0x3c   : > { %713 = vmatpush.bf16.msra.mxu3 %v704_v8  ;;  %657 = vmatpush.bf16.msra.mxu1 %v648_v9  ;;  %v3579_v4 = vor.u32 %v3969_v1, %v3578_v0  ;;  %v3587_v9 = vld [vmem:[%s5049_s1 + $0x34] sm:$0x7] }
  0x3d   : > { %v777_v6 = vor.u32 %v776_v63, %v772_v62  ;;  %v940_v11 = vsel %vm191_vm0, %v3587_v9, 0  ;;  %v3973_v62 = vld [vmem:[%s4223_s26 + $0x30] sm:$0x10]  ;;  %v1341_v63 = vsel %vm191_vm0, %v3647_v54, 0  ;;  %v1044_v9 = vrot.slane %v4404_v28, 1 }
  0x3e   : > { %v853_v8 = vshll.u32 %v3579_v4, 16  ;;  %v851_v12 = vshrl.u32 %v3579_v4, 16  ;;  %v878_v21 = vrot.slane %v3579_v4, 1  ;;  %v1392_v28 = vld [vmem:[%s5049_s1] sm:$0x7] }
  0x3f   : > { %3521 = vmatmul.msk.bf16.vlgmr.msra.gmra.mxu2 %vm187_vm1, %v452_v13  ;;  %v3661_v54 = vld [vmem:[%s4223_s26 + $0x30] sm:$0xf] }
  0x40   : > { %680 = vmatpush.bf16.msra.mxu2 %v671_v14  ;;  %v855_v13 = vrot.slane %v853_v8, 1  ;;  %v3617_v14 = vld [vmem:[%s5049_s1 + $0x14] sm:$0x7] }
  0x42   : > { %v856_v16 = vor.u32 %v855_v13, %v851_v12 }
  0x43   : > { %3511 = vmatmul.msk.bf16.vlgmr.msra.gmra.mxu0 %vm187_vm1, %v393_v18  ;;  %v1127_v18 = vsel %vm191_vm0, %v3617_v14, 0 }
  0x44   : > { %636 = vmatpush.bf16.msra.mxu0 %v627_v19  ;;  %v1072_v19 = vsel %vm191_vm0, %v3609_v15, 0 }
  0x4b   : > { %3543 = vmatmul.msk.bf16.vlgmr.msrb.gmra.mxu3 %vm187_vm1, %v603_v27  ;;  %3533 = vmatmul.msk.bf16.vlgmr.msrb.gmra.mxu1 %vm187_vm1, %v534_v26  ;;  %v3590_v27 = vld [vmem:[%s4223_s26 + $0x30] sm:$0xf]  ;;  %v3970_v26 = vld [vmem:[%s4223_s26 + $0x30] sm:$0x10] }
  0x4c   : > { %813 = vmatpush.bf16.msrb.mxu3 %v804_v30  ;;  %758 = vmatpush.bf16.msrb.mxu1 %v749_v31  ;;  %v1049_v30 = vsel %vm191_vm0, %v3605_v25, 0  ;;  %v3591_v31 = vor.u32 %v3970_v26, %v3590_v27 }
  0x4f   : > { %3535 = vmatmul.msk.bf16.vlgmr.msrb.gmra.mxu2 %vm187_vm1, %v557_v34  ;;  %v3623_v34 = vld [vmem:[%s5049_s1 + $0x1c] sm:$0x7] }
  0x50   : > { %791 = vmatpush.bf16.msrb.mxu2 %v782_v35  ;;  %v957_v35 = vrot.slane %v3591_v31, 1  ;;  %v1183_v41 = vsel %vm191_vm0, %v3623_v34, 0  ;;  %v3653_v34 = vld [vmem:[%s5049_s1 + $0x38] sm:$0x7] }
  0x53   : > { %3527 = vmatmul.msk.bf16.vlgmr.msrb.gmra.mxu0 %vm187_vm1, %v3524_v38  ;;  %v1003_v38 = vrot.slane %v1001_v32, 1  ;;  %v1429_v32 = vsel %vm191_vm0, %v1392_v28, 0 }
  0x54   : > { %735 = vmatpush.bf16.msrb.mxu0 %v726_v39  ;;  %v932_v39 = vshll.u32 %v3591_v31, 16 }
  0x55   : > { %v1004_v43 = vor.u32 %v1003_v38, %v999_v37  ;;  %v3638_v37 = vld [vmem:[%s4223_s26 + $0x38] sm:$0xf]  ;;  %v3974_v38 = vld [vmem:[%s4223_s26 + $0x38] sm:$0x10] }
  0x5b   : > { %3556 = vmatmul.msk.bf16.vlgmr.msra.gmra.mxu3 %vm187_vm1, %v699_v44  ;;  %3546 = vmatmul.msk.bf16.vlgmr.msra.gmra.mxu1 %vm187_vm1, %v643_v45  ;;  %v930_v44 = vshrl.u32 %v3591_v31, 16  ;;  %v934_v45 = vrot.slane %v932_v39, 1 }
  0x5c   : > { %916 = vmatpush.bf16.msra.mxu3 %v907_v46  ;;  %870 = vmatpush.bf16.msra.mxu1 %v861_v47  ;;  %v3614_v46 = vld [vmem:[%s4223_s26 + $0x28] sm:$0xf]  ;;  %v3972_v47 = vld [vmem:[%s4223_s26 + $0x28] sm:$0x10] }
  0x5d   : > { %v935_v50 = vor.u32 %v934_v45, %v930_v44  ;;  %v3615_v51 = vor.u32 %v3972_v47, %v3614_v46  ;;  %v3639_v45 = vor.u32 %v3974_v38, %v3638_v37  ;;  %v3683_v38 = vld [vmem:[%s5049_s1 + $0x1c] sm:$0x7] }
  0x5f   : > { %3550 = vmatmul.msk.bf16.vlgmr.msra.gmra.mxu2 %vm187_vm1, %v3547_v49  ;;  %v3621_v49 = vld [vmem:[%s5049_s1 + $0x18] sm:$0x7]  ;;  %v1097_v53 = vshll.u32 %v3615_v51, 16  ;;  %v1095_v59 = vshrl.u32 %v3615_v51, 16 }
  0x60   : > { %892 = vmatpush.bf16.msra.mxu2 %v883_v52  ;;  %v1150_v52 = vsel %vm191_vm0, %v3621_v49, 0 }
  0x63   : > { %3544 = vmatmul.msk.bf16.vlgmr.msra.gmra.mxu0 %vm187_vm1, %v3536_v55  ;;  %v3641_v55 = vld [vmem:[%s5049_s1 + $0x2c] sm:$0x7] }
  0x64   : > { %837 = vmatpush.bf16.msra.mxu0 %v828_v56  ;;  %v1122_v56 = vrot.slane %v3615_v51, 1  ;;  %v1284_v0 = vsel %vm191_vm0, %v3641_v55, 0  ;;  %v3681_v51 = vld [vmem:[%s5049_s1 + $0x18] sm:$0x7]  ;;  %v3976_v55 = vld [vmem:[%s4223_s26 + $0x30] sm:$0x10] }
  0x6b   : > { %3570 = vmatmul.msk.bf16.vlgmr.msrb.gmra.mxu3 %vm187_vm1, %v799_v60  ;;  %3562 = vmatmul.msk.bf16.vlgmr.msrb.gmra.mxu1 %vm187_vm1, %v3559_v61  ;;  %v1099_v60 = vrot.slane %v1097_v53, 1  ;;  %v3626_v61 = vld [vmem:[%s4223_s26 + $0x30] sm:$0xf]  ;;  %v1254_v53 = vshll.u32 %v3639_v45, 16 }
  0x6c   : > { %1037 = vmatpush.bf16.msrb.mxu3 %v1028_v2  ;;  %971 = vmatpush.bf16.msrb.mxu1 %v962_v3  ;;  %v3627_v1 = vor.u32 %v3973_v62, %v3626_v61  ;;  %v3645_v2 = vld [vmem:[%s5049_s1 + $0x30] sm:$0x7]  ;;  %v3662_v62 = vor.u32 %v3976_v55, %v3661_v54 }
  0x6d   : > { %v1100_v3 = vor.u32 %v1099_v60, %v1095_v59  ;;  %v1308_v5 = vsel %vm191_vm0, %v3645_v2, 0  ;;  %v3643_v2 = vld [vmem:[%s4223_s26 + $0x40] sm:$0xf] }
  0x6e   : > { %v1173_v13 = vshrl.u32 %v3627_v1, 16 }
  0x6f   : > { %3568 = vmatmul.msk.bf16.vlgmr.msrb.gmra.mxu2 %vm187_vm1, %v777_v6  ;;  %v1175_v6 = vshll.u32 %v3627_v1, 16 }
  0x70   : > { %1018 = vmatpush.bf16.msrb.mxu2 %v1009_v7  ;;  %v3635_v7 = vld [vmem:[%s5049_s1 + $0x28] sm:$0x7] }
  0x71   : > { %v1177_v14 = vrot.slane %v1175_v6, 1  ;;  %v1402_v6 = vshll.u32 %v3662_v62, 16 }
  0x73   : > { %3558 = vmatmul.msk.bf16.vlgmr.msrb.gmra.mxu0 %vm187_vm1, %v721_v10 }
  0x74   : > { %949 = vmatpush.bf16.msrb.mxu0 %v940_v11  ;;  %v1262_v11 = vsel %vm191_vm0, %v3635_v7, 0  ;;  %v3669_v7 = vld [vmem:[%s5049_s1 + $0xc] sm:$0x7] }
  0x7b   : > { %3586 = vmatmul.msk.bf16.vlgmr.msra.gmra.mxu3 %vm187_vm1, %v3583_v17  ;;  %3580 = vmatmul.msk.bf16.vlgmr.msra.gmra.mxu1 %vm187_vm1, %v856_v16  ;;  %v3665_v16 = vld [vmem:[%s5049_s1 + $0x8] sm:$0x7]  ;;  %v3658_v17 = vld [vmem:[%s5049_s1 + $0x4] sm:$0x7] }
  0x7c   : > { %1136 = vmatpush.bf16.msra.mxu3 %v1127_v18  ;;  %1081 = vmatpush.bf16.msra.mxu1 %v1072_v19  ;;  %v1178_v18 = vor.u32 %v1177_v14, %v1173_v13  ;;  %v1410_v25 = vsel %vm191_vm0, %v3658_v17, 0  ;;  %v1400_v14 = vshrl.u32 %v3662_v62, 16 }
  0x7f   : > { %3582 = vmatmul.msk.bf16.vlgmr.msra.gmra.mxu2 %vm187_vm1, %v878_v21  ;;  %v3650_v21 = vld [vmem:[%s4223_s26 + $0x40] sm:$0xf] }
  0x80   : > { %1114 = vmatpush.bf16.msra.mxu2 %v1105_v24  ;;  %v1450_v24 = vsel %vm191_vm0, %v3665_v16, 0  ;;  %v4471_v26 = vor.u32 %v3975_v22, %v3650_v21 }
  0x82   : > { %v1333_v33 = vshll.u32 %v4471_v26, 16 }
  0x83   : > { %3574 = vmatmul.msk.bf16.vlgmr.msra.gmra.mxu0 %vm187_vm1, %v3571_v29 }
  0x84   : > { %1058 = vmatpush.bf16.msra.mxu0 %v1049_v30  ;;  %v1200_v30 = vrot.slane %v3627_v1, 1  ;;  %v1335_v44 = vrot.slane %v1333_v33, 1  ;;  %v1256_v1 = vrot.slane %v1254_v53, 1 }
  0x8b   : > { %3604 = vmatmul.msk.bf16.vlgmr.msrb.gmra.mxu3 %vm187_vm1, %v3596_v36  ;;  %3594 = vmatmul.msk.bf16.vlgmr.msrb.gmra.mxu1 %vm187_vm1, %v957_v35 }
  0x8c   : > { %1238 = vmatpush.bf16.msrb.mxu3 %v1229_v40  ;;  %1192 = vmatpush.bf16.msrb.mxu1 %v1183_v41  ;;  %v3619_v40 = vld [vmem:[%s4223_s26 + $0x30] sm:$0xf]  ;;  %v1363_v41 = vsel %vm191_vm0, %v3653_v34, 0 }
  0x8d   : > { %v3656_v34 = vld [vmem:[%s4223_s26 + $0x30] sm:$0xf] }
  0x8f   : > { %3603 = vmatmul.msk.bf16.vlgmr.msrb.gmra.mxu2 %vm187_vm1, %v1004_v43  ;;  %v1331_v43 = vshrl.u32 %v4471_v26, 16 }
  0x90   : > { %1214 = vmatpush.bf16.msrb.mxu2 %v1205_v48 }
  0x91   : > { %v1336_v49 = vor.u32 %v1335_v44, %v1331_v43  ;;  %v1584_v44 = vsel %vm191_vm0, %v3683_v38, 0  ;;  %v3980_v38 = vld [vmem:[%s4223_s26 + $0x50] sm:$0x10] }
  0x93   : > { %3592 = vmatmul.msk.bf16.vlgmr.msrb.gmra.mxu0 %vm187_vm1, %v935_v50  ;;  %v1279_v50 = vrot.slane %v3639_v45, 1 }
  0x94   : > { %1159 = vmatpush.bf16.msrb.mxu0 %v1150_v52 }
  0x98   : > { %v223_v58 = vpop.f32.mrf.mxu1 }
  0x9b   : > { %3618 = vmatmul.msk.bf16.vlgmr.msra.gmra.mxu3 %vm187_vm1, %v1122_v56  ;;  %3610 = vmatmul.msk.bf16.vlgmr.msra.gmra.mxu1 %vm187_vm1, %v3607_v57  ;;  %v1551_v57 = vsel %vm191_vm0, %v3681_v51, 0  ;;  %v3713_v51 = vld [vmem:[%s5049_s1 + $0x38] sm:$0x7] }
  0x9c   : > { %1350 = vmatpush.bf16.msra.mxu3 %v1341_v63  ;;  %1293 = vmatpush.bf16.msra.mxu1 %v1284_v0  ;;  %v3677_v63 = vld [vmem:[%s5049_s1 + $0x14] sm:$0x7]  ;;  %v1252_v0 = vshrl.u32 %v3639_v45, 16 }
  0x9e   : > { %v270_v4 = vpop.f32.mrf.mxu3 }
  0x9f   : > { %3616 = vmatmul.msk.bf16.vlgmr.msra.gmra.mxu2 %vm187_vm1, %v1100_v3 }
  0xa0   : > { %v225_v8 = vpop.f32.mrf.mxu1  ;;  %v204_v10 = vpop.f32.mrf.mxu0  ;;  %1317 = vmatpush.bf16.msra.mxu2 %v1308_v5  ;;  %v1528_v5 = vsel %vm191_vm0, %v3677_v63, 0 }
  0xa1   : > { %v224_v29 = vadd.f32 %v223_v58, %v204_v10  ;;  %v3671_v58 = vld [vmem:[%s5049_s1 + $0x10] sm:$0x7] }
  0xa2   : > { %v245_v12 = vpop.f32.mrf.mxu2  ;;  %v1506_v60 = vsel %vm191_vm0, %v3671_v58, 0  ;;  %v3979_v58 = vld [vmem:[%s4223_s26 + $0x48] sm:$0x10] }
  0xa3   : > { %3606 = vmatmul.msk.bf16.vlgmr.msra.gmra.mxu0 %vm187_vm1, %v1044_v9  ;;  %v249_v35 = vadd.f32 %v245_v12, %v224_v29  ;;  %v1257_v9 = vor.u32 %v1256_v1, %v1252_v0  ;;  %v1473_v12 = vsel %vm191_vm0, %v3669_v7, 0  ;;  %v3707_v1 = vld [vmem:[%s5049_s1 + $0x34] sm:$0x7] }
  0xa4   : > { %1271 = vmatpush.bf16.msra.mxu0 %v1262_v11 }
  0xa5   : > { %v274_v46 = vadd.f32 %v270_v4, %v249_v35 }
  0xa6   : > { %v272_v15 = vpop.f32.mrf.mxu3 }
  0xa7   : > { %v1404_v15 = vrot.slane %v1402_v6, 1  ;;  %v1742_v6 = vsel %vm191_vm0, %v3707_v1, 0  ;;  %v3741_v1 = vld [vmem:[%s5049_s1 + $0x18] sm:$0x7] }
  0xa8   : > { %v327_v19 = vpop.f32.mrf.mxu1  ;;  %v206_v23 = vpop.f32.mrf.mxu0 }
  0xa9   : > { %v1405_v21 = vor.u32 %v1404_v15, %v1400_v14 }
  0xaa   : > { %v247_v27 = vpop.f32.mrf.mxu2 }
  0xab   : > { %3634 = vmatmul.msk.bf16.vlgmr.msrb.gmra.mxu3 %vm187_vm1, %v3631_v20  ;;  %3628 = vmatmul.msk.bf16.vlgmr.msrb.gmra.mxu1 %vm187_vm1, %v1178_v18  ;;  %v3695_v18 = vld [vmem:[%s5049_s1 + $0x28] sm:$0x7]  ;;  %v1445_v20 = vrot.slane %v3662_v62, 1 }
  0xac   : > { %1459 = vmatpush.bf16.msrb.mxu3 %v1450_v24  ;;  %1419 = vmatpush.bf16.msrb.mxu1 %v1410_v25  ;;  %v3674_v24 = vld [vmem:[%s4223_s26 + $0x38] sm:$0xf]  ;;  %v3977_v25 = vld [vmem:[%s4223_s26 + $0x38] sm:$0x10]  ;;  %v1663_v28 = vsel %vm191_vm0, %v3695_v18, 0 }
  0xae   : > { %v386_v31 = vpop.f32.mrf.mxu3 }
  0xaf   : > { %3630 = vmatmul.msk.bf16.vlgmr.msrb.gmra.mxu2 %vm187_vm1, %v1200_v30 }
  0xb0   : > { %v329_v36 = vpop.f32.mrf.mxu1  ;;  %v304_v39 = vpop.f32.mrf.mxu0  ;;  %1438 = vmatpush.bf16.msrb.mxu2 %v1429_v32  ;;  %v3693_v32 = vld [vmem:[%s5049_s1 + $0x24] sm:$0x7] }
  0xb1   : > { %v308_v47 = vadd.f32 %v304_v39, %v274_v46  ;;  %v1630_v36 = vsel %vm191_vm0, %v3693_v32, 0  ;;  %v3725_v32 = vld [vmem:[%s5049_s1 + $0x8] sm:$0x7] }
  0xb2   : > { %v352_v42 = vpop.f32.mrf.mxu2 }
  0xb3   : > { %3622 = vmatmul.msk.bf16.vlgmr.msrb.gmra.mxu0 %vm187_vm1, %v3619_v40  ;;  %v331_v59 = vadd.f32 %v327_v19, %v308_v47  ;;  %v3689_v19 = vld [vmem:[%s5049_s1 + $0x20] sm:$0x7] }
  0xb4   : > { %1372 = vmatpush.bf16.msrb.mxu0 %v1363_v41  ;;  %v1606_v29 = vsel %vm191_vm0, %v3689_v19, 0  ;;  %v1358_v41 = vrot.slane %v4471_v26, 1 }
  0xb5   : > { %v356_v3 = vadd.f32 %v352_v42, %v331_v59 }
  0xb6   : > { %v388_v48 = vpop.f32.mrf.mxu3 }
  0xb7   : > { %v390_v11 = vadd.f32 %v386_v31, %v356_v3  ;;  %v3675_v31 = vor.u32 %v3977_v25, %v3674_v24 }
  0xb8   : > { %v434_v52 = vpop.f32.mrf.mxu1  ;;  %v306_v56 = vpop.f32.mrf.mxu0 }
  0xb9   : > { %v1498_v37 = vshll.u32 %v3675_v31, 16  ;;  %v1496_v46 = vshrl.u32 %v3675_v31, 16  ;;  %v3679_v56 = vld [vmem:[%s4223_s26 + $0x40] sm:$0xf]  ;;  %v1523_v3 = vrot.slane %v3675_v31, 1 }
  0xba   : > { %v354_v61 = vpop.f32.mrf.mxu2 }
  0xbb   : > { %3652 = vmatmul.msk.bf16.vlgmr.msra.gmra.mxu3 %vm187_vm1, %v1336_v49  ;;  %3642 = vmatmul.msk.bf16.vlgmr.msra.gmra.mxu1 %vm187_vm1, %v1279_v50  ;;  %v1500_v47 = vrot.slane %v1498_v37, 1  ;;  %v4044_v49 = vld [vmem:[%s5050_s2] ss:$0 sm:$0xff]  ;;  %v3710_v37 = vld [vmem:[%s4223_s26 + $0x50] sm:$0xf] }
  0xbc   : > { %1560 = vmatpush.bf16.msra.mxu3 %v1551_v57  ;;  %1515 = vmatpush.bf16.msra.mxu1 %v1506_v60  ;;  %v3698_v57 = vld [vmem:[%s4223_s26 + $0x48] sm:$0xf]  ;;  %v1764_v60 = vsel %vm191_vm0, %v3713_v51, 0 }
  0xbd   : > { %v1501_v53 = vor.u32 %v1500_v47, %v1496_v46  ;;  %v4556_v0 = vor.u32 %v3979_v58, %v3698_v57 }
  0xbe   : > { %v491_v4 = vpop.f32.mrf.mxu3 }
  0xbf   : > { %3646 = vmatmul.msk.bf16.vlgmr.msra.gmra.mxu2 %vm187_vm1, %v3643_v2  ;;  %v1655_v7 = vshll.u32 %v4556_v0, 16 }
  0xc0   : > { %v436_v8 = vpop.f32.mrf.mxu1  ;;  %v409_v10 = vpop.f32.mrf.mxu0  ;;  %1537 = vmatpush.bf16.msra.mxu2 %v1528_v5 }
  0xc1   : > { %v413_v16 = vadd.f32 %v409_v10, %v390_v11  ;;  %v3701_v8 = vld [vmem:[%s5049_s1 + $0x2c] sm:$0x7]  ;;  %v3686_v10 = vld [vmem:[%s4223_s26 + $0x40] sm:$0xf]  ;;  %v3978_v11 = vld [vmem:[%s4223_s26 + $0x40] sm:$0x10] }
  0xc2   : > { %v468_v13 = vpop.f32.mrf.mxu2  ;;  %v1685_v14 = vsel %vm191_vm0, %v3701_v8, 0  ;;  %v3687_v18 = vor.u32 %v3978_v11, %v3686_v10  ;;  %v1680_v8 = vrot.slane %v4556_v0, 1  ;;  %v3721_v10 = vld [vmem:[%s4223_s26 + $0x40] sm:$0xf]  ;;  %v3981_v11 = vld [vmem:[%s4223_s26 + $0x40] sm:$0x10] }
  0xc3   : > { %3640 = vmatmul.msk.bf16.vlgmr.msra.gmra.mxu0 %vm187_vm1, %v1257_v9  ;;  %v438_v22 = vadd.f32 %v434_v52, %v413_v16  ;;  %v3705_v52 = vld [vmem:[%s5049_s1 + $0x30] sm:$0x7]  ;;  %v1653_v16 = vshrl.u32 %v4556_v0, 16  ;;  %v3761_v0 = vld [vmem:[%s5049_s1 + $0x2c] sm:$0x7] }
  0xc4   : > { %1482 = vmatpush.bf16.msra.mxu0 %v1473_v12  ;;  %v1709_v61 = vsel %vm191_vm0, %v3705_v52, 0 }
  0xc5   : > { %v472_v33 = vadd.f32 %v468_v13, %v438_v22  ;;  %v3667_v13 = vld [vmem:[%s4223_s26 + $0x38] sm:$0xf] }
  0xc6   : > { %v493_v17 = vpop.f32.mrf.mxu3 }
  0xc7   : > { %v495_v39 = vadd.f32 %v491_v4, %v472_v33  ;;  %v1657_v17 = vrot.slane %v1655_v7, 1 }
  0xc8   : > { %v550_v23 = vpop.f32.mrf.mxu1  ;;  %v411_v27 = vpop.f32.mrf.mxu0 }
  0xc9   : > { %v1658_v22 = vor.u32 %v1657_v17, %v1653_v16  ;;  %v1576_v27 = vshll.u32 %v3687_v18, 16  ;;  %v3722_v16 = vor.u32 %v3981_v11, %v3721_v10  ;;  %v3984_v10 = vld [vmem:[%s4223_s26 + $0x58] sm:$0x10]  ;;  %v3739_v11 = vld [vmem:[%s4223_s26 + $0x50] sm:$0xf] }
  0xca   : > { %v470_v30 = vpop.f32.mrf.mxu2 }
  0xcb   : > { %3666 = vmatmul.msk.bf16.vlgmr.msrb.gmra.mxu3 %vm187_vm1, %v1445_v20  ;;  %3663 = vmatmul.msk.bf16.vlgmr.msrb.gmra.mxu1 %vm187_vm1, %v1405_v21  ;;  %v3729_v20 = vld [vmem:[%s5049_s1 + $0xc] sm:$0x7]  ;;  %v1793_v21 = vld [vmem:[%s5049_s1] sm:$0x7] }
  0xcc   : > { %1672 = vmatpush.bf16.msrb.mxu3 %v1663_v28  ;;  %1615 = vmatpush.bf16.msrb.mxu1 %v1606_v29  ;;  %v1874_v29 = vsel %vm191_vm0, %v3729_v20, 0  ;;  %v1830_v30 = vsel %vm191_vm0, %v1793_v21, 0  ;;  %v3716_v20 = vld [vmem:[%s4223_s26 + $0x40] sm:$0xf] }
  0xce   : > { %v4527_v35 = vpop.f32.mrf.mxu3 }
  0xcf   : > { %3664 = vmatmul.msk.bf16.vlgmr.msrb.gmra.mxu2 %vm187_vm1, %v3656_v34  ;;  %v1574_v34 = vshrl.u32 %v3687_v18, 16 }
  0xd0   : > { %v552_v40 = vpop.f32.mrf.mxu1  ;;  %v516_v42 = vpop.f32.mrf.mxu0  ;;  %1639 = vmatpush.bf16.msrb.mxu2 %v1630_v36  ;;  %v3691_v36 = vld [vmem:[%s4223_s26 + $0x48] sm:$0xf] }
  0xd1   : > { %v520_v43 = vadd.f32 %v516_v42, %v495_v39  ;;  %v1851_v40 = vsel %vm191_vm0, %v3725_v32, 0  ;;  %v3755_v32 = vld [vmem:[%s5049_s1 + $0x28] sm:$0x7] }
  0xd2   : > { %v573_v45 = vpop.f32.mrf.mxu2 }
  0xd3   : > { %v554_v48 = vadd.f32 %v550_v23, %v520_v43  ;;  %3654 = vmatmul.msk.bf16.vlgmr.msrb.gmra.mxu0 %vm187_vm1, %v1358_v41  ;;  %v1601_v23 = vrot.slane %v3687_v18, 1  ;;  %v3718_v41 = vld [vmem:[%s5049_s1 + $0x4] sm:$0x7] }
  0xd4   : > { %1593 = vmatpush.bf16.msrb.mxu0 %v1584_v44  ;;  %v1811_v47 = vsel %vm191_vm0, %v3718_v41, 0  ;;  %v3753_v18 = vld [vmem:[%s5049_s1 + $0x24] sm:$0x7] }
  0xd5   : > { %v577_v26 = vadd.f32 %v573_v45, %v554_v48  ;;  %v3711_v45 = vor.u32 %v3980_v38, %v3710_v37  ;;  %v2064_v38 = vsel %vm191_vm0, %v3755_v32, 0 }
  0xd6   : > { %v621_v50 = vpop.f32.mrf.mxu3 }
  0xd7   : > { %v582_v54 = vadd.f32 %v4044_v49, %v577_v26  ;;  %v1734_v26 = vshll.u32 %v3711_v45, 16  ;;  %v1759_v52 = vrot.slane %v3711_v45, 1 }
  0xd8   : > { %v659_v55 = vpop.f32.mrf.mxu1  ;;  %v518_v59 = vpop.f32.mrf.mxu0 }
  0xd9   : > { %vm583_vm2 = vcmp.ge.f32.partialorder %v582_v54, 0.0  ;;  %v584_v62 = vmul.f32 0.2, %v582_v54  ;;  %v1736_v57 = vrot.slane %v1734_v26, 1 }
  0xda   : > { %v575_v63 = vpop.f32.mrf.mxu2 }
  0xdb   : > { %3682 = vmatmul.msk.bf16.vlgmr.msra.gmra.mxu3 %vm187_vm1, %v3679_v56  ;;  %3676 = vmatmul.msk.bf16.vlgmr.msra.gmra.mxu1 %vm187_vm1, %v1501_v53  ;;  %v585_v2 = vsel %vm583_vm2, %v582_v54, %v584_v62  ;;  %v3743_v53 = vld [vmem:[%s5049_s1 + $0x1c] sm:$0x7]  ;;  %v1732_v56 = vshrl.u32 %v3711_v45, 16  ;;  %v3982_v45 = vld [vmem:[%s4223_s26 + $0x48] sm:$0x10] }
  0xdc   : > { %1773 = vmatpush.bf16.msra.mxu3 %v1764_v60  ;;  %1718 = vmatpush.bf16.msra.mxu1 %v1709_v61  ;;  %v586_v4 = vpack.c.bf16 %v585_v2, %v585_v2  ;;  %v1985_v59 = vsel %vm191_vm0, %v3743_v53, 0  ;;  %v3737_v60 = vld [vmem:[%s5049_s1 + $0x14] sm:$0x7] }
  0xdd   : > { %v1929_v62 = vsel %vm191_vm0, %v3737_v60, 0  ;;  %v1737_v2 = vor.u32 %v1736_v57, %v1732_v56  ;;  %v3778_v56 = vld [vmem:[%s5049_s1 + $0x4] sm:$0x7]  ;;  %v3767_v57 = vld [vmem:[%s5049_s1 + $0x34] sm:$0x7] }
  0xde   : > { %v715_v5 = vpop.f32.mrf.mxu3  ;;  %587 = vst [vmem:[%s4562_s4] sm:$0xf] %v586_v4 }
  0xdf   : > { %3678 = vmatmul.msk.bf16.vlgmr.msra.gmra.mxu2 %vm187_vm1, %v1523_v3 }
  0xe0   : > { %v661_v9 = vpop.f32.mrf.mxu1  ;;  %v638_v12 = vpop.f32.mrf.mxu0  ;;  %1751 = vmatpush.bf16.msra.mxu2 %v1742_v6  ;;  %v3731_v6 = vld [vmem:[%s5049_s1 + $0x10] sm:$0x7] }
  0xe1   : > { %v639_v24 = vadd.f32 %v638_v12, %v4527_v35  ;;  %v1578_v35 = vrot.slane %v1576_v27, 1 }
  0xe2   : > { %v682_v15 = vpop.f32.mrf.mxu2 }
  0xe3   : > { %3670 = vmatmul.msk.bf16.vlgmr.msra.gmra.mxu0 %vm187_vm1, %v3667_v13  ;;  %v663_v33 = vadd.f32 %v659_v55, %v639_v24  ;;  %v1579_v44 = vor.u32 %v1578_v35, %v1574_v34  ;;  %v3703_v55 = vld [vmem:[%s4223_s26 + $0x50] sm:$0xf]  ;;  %v1907_v13 = vsel %vm191_vm0, %v3731_v6, 0  ;;  %v1846_v34 = vrot.slane %v3722_v16, 1  ;;  %v3773_v6 = vld [vmem:[%s5049_s1 + $0x38] sm:$0x7] }
  0xe4   : > { %1694 = vmatpush.bf16.msra.mxu0 %v1685_v14  ;;  %v3746_v24 = vld [vmem:[%s4223_s26 + $0x50] sm:$0xf]  ;;  %v1801_v35 = vshrl.u32 %v3722_v16, 16 }
  0xe5   : > { %v686_v42 = vadd.f32 %v682_v15, %v663_v33 }
  0xe6   : > { %v717_v19 = vpop.f32.mrf.mxu3 }
  0xe7   : > { %v719_v49 = vadd.f32 %v715_v5, %v686_v42  ;;  %v1952_v5 = vsel %vm191_vm0, %v3741_v1, 0  ;;  %v3727_v19 = vld [vmem:[%s4223_s26 + $0x48] sm:$0xf]  ;;  %v2212_v1 = vsel %vm191_vm0, %v3778_v56, 0 }
  0xe8   : > { %v760_v25 = vpop.f32.mrf.mxu1  ;;  %v640_v28 = vpop.f32.mrf.mxu0 }
  0xe9   : > { %v2086_v28 = vsel %vm191_vm0, %v3761_v0, 0 }
  0xea   : > { %v684_v31 = vpop.f32.mrf.mxu2 }
  0xeb   : > { %3700 = vmatmul.msk.bf16.vlgmr.msrb.gmra.mxu3 %vm187_vm1, %v1658_v22  ;;  %3690 = vmatmul.msk.bf16.vlgmr.msrb.gmra.mxu1 %vm187_vm1, %v1601_v23  ;;  %v1803_v23 = vshll.u32 %v3722_v16, 16 }
  0xec   : > { %1883 = vmatpush.bf16.msrb.mxu3 %v1874_v29  ;;  %1839 = vmatpush.bf16.msrb.mxu1 %v1830_v30  ;;  %v2031_v29 = vsel %vm191_vm0, %v3753_v18, 0 }
  0xee   : > { %v815_v39 = vpop.f32.mrf.mxu3 }
  0xef   : > { %3694 = vmatmul.msk.bf16.vlgmr.msrb.gmra.mxu2 %vm187_vm1, %v3691_v36  ;;  %v1805_v36 = vrot.slane %v1803_v23, 1 }
  0xf0   : > { %v762_v43 = vpop.f32.mrf.mxu1  ;;  %v737_v46 = vpop.f32.mrf.mxu0  ;;  %1860 = vmatpush.bf16.msrb.mxu2 %v1851_v40  ;;  %v3749_v40 = vld [vmem:[%s5049_s1 + $0x20] sm:$0x7] }
  0xf1   : > { %v741_v50 = vadd.f32 %v737_v46, %v719_v49  ;;  %v1806_v43 = vor.u32 %v1805_v36, %v1801_v35  ;;  %v2007_v49 = vsel %vm191_vm0, %v3749_v40, 0  ;;  %v3770_v35 = vld [vmem:[%s4223_s26 + $0x60] sm:$0xf]  ;;  %v3985_v36 = vld [vmem:[%s4223_s26 + $0x60] sm:$0x10] }
  0xf2   : > { %v793_v48 = vpop.f32.mrf.mxu2 }
  0xf3   : > { %3688 = vmatmul.msk.bf16.vlgmr.msrb.gmra.mxu0 %vm187_vm1, %v1579_v44  ;;  %v764_v61 = vadd.f32 %v760_v25, %v741_v50  ;;  %v3983_v25 = vld [vmem:[%s4223_s26 + $0x50] sm:$0x10]  ;;  %v3734_v44 = vld [vmem:[%s4223_s26 + $0x48] sm:$0xf] }
  0xf4   : > { %1820 = vmatpush.bf16.msrb.mxu0 %v1811_v47  ;;  %v4638_v31 = vor.u32 %v3983_v25, %v3746_v24  ;;  %v3791_v24 = vld [vmem:[%s5049_s1 + $0x10] sm:$0x7]  ;;  %v3785_v25 = vld [vmem:[%s5049_s1 + $0x8] sm:$0x7] }
  0xf5   : > { %v797_v3 = vadd.f32 %v793_v48, %v764_v61  ;;  %v4045_v48 = vld [vmem:[%s5050_s2] ss:$0 sm:$0xff] }
  0xf6   : > { %v817_v51 = vpop.f32.mrf.mxu3  ;;  %v1975_v50 = vshrl.u32 %v4638_v31, 16 }
  0xf7   : > { %v819_v12 = vadd.f32 %v815_v39, %v797_v3  ;;  %v1977_v39 = vshll.u32 %v4638_v31, 16 }
  0xf8   : > { %v872_v54 = vpop.f32.mrf.mxu1  ;;  %v739_v58 = vpop.f32.mrf.mxu0 }
  0xf9   : > { %v1979_v51 = vrot.slane %v1977_v39, 1  ;;  %v2252_v39 = vsel %vm191_vm0, %v3785_v25, 0 }
  0xfa   : > { %v795_v63 = vpop.f32.mrf.mxu2 }
  0xfb   : > { %3714 = vmatmul.msk.bf16.vlgmr.msra.gmra.mxu3 %vm187_vm1, %v1759_v52  ;;  %3706 = vmatmul.msk.bf16.vlgmr.msra.gmra.mxu1 %vm187_vm1, %v3703_v55  ;;  %v3735_v52 = vor.u32 %v3982_v45, %v3734_v44  ;;  %v1980_v58 = vor.u32 %v1979_v51, %v1975_v50 }
  0xfc   : > { %1994 = vmatpush.bf16.msra.mxu3 %v1985_v59  ;;  %1938 = vmatpush.bf16.msra.mxu1 %v1929_v62 }
  0xfd   : > { %v1924_v59 = vrot.slane %v3735_v52, 1  ;;  %v1899_v62 = vshll.u32 %v3735_v52, 16 }
  0xfe   : > { %v918_v4 = vpop.f32.mrf.mxu3 }
  0xff   : > { %3712 = vmatmul.msk.bf16.vlgmr.msra.gmra.mxu2 %vm187_vm1, %v1737_v2  ;;  %v2143_v2 = vsel %vm191_vm0, %v3767_v57, 0 }
 0x100   : > { %v874_v7 = vpop.f32.mrf.mxu1  ;;  %v839_v9 = vpop.f32.mrf.mxu0  ;;  %1961 = vmatpush.bf16.msra.mxu2 %v1952_v5 }
 0x101   : > { %v843_v15 = vadd.f32 %v839_v9, %v819_v12  ;;  %v1897_v7 = vshrl.u32 %v3735_v52, 16  ;;  %v3758_v9 = vld [vmem:[%s4223_s26 + $0x58] sm:$0xf]  ;;  %v2002_v52 = vrot.slane %v4638_v31, 1 }
 0x102   : > { %v894_v14 = vpop.f32.mrf.mxu2 }
 0x103   : > { %3702 = vmatmul.msk.bf16.vlgmr.msra.gmra.mxu0 %vm187_vm1, %v1680_v8  ;;  %v876_v21 = vadd.f32 %v872_v54, %v843_v15  ;;  %v1901_v8 = vrot.slane %v1899_v62, 1  ;;  %v3765_v15 = vld [vmem:[%s5049_s1 + $0x30] sm:$0x7] }
 0x104   : > { %1916 = vmatpush.bf16.msra.mxu0 %v1907_v13  ;;  %v2165_v13 = vsel %vm191_vm0, %v3773_v6, 0  ;;  %v2110_v18 = vsel %vm191_vm0, %v3765_v15, 0 }
 0x105   : > { %v898_v33 = vadd.f32 %v894_v14, %v876_v21  ;;  %v3759_v14 = vor.u32 %v3984_v10, %v3758_v9 }
 0x106   : > { %v920_v17 = vpop.f32.mrf.mxu3 }
 0x107   : > { %v922_v41 = vadd.f32 %v918_v4, %v898_v33  ;;  %v1902_v17 = vor.u32 %v1901_v8, %v1897_v7  ;;  %v2081_v23 = vrot.slane %v3759_v14, 1  ;;  %v3801_v7 = vld [vmem:[%s5049_s1 + $0x18] sm:$0x7] }
 0x108   : > { %v973_v22 = vpop.f32.mrf.mxu1  ;;  %v841_v27 = vpop.f32.mrf.mxu0  ;;  %v2353_v9 = vsel %vm191_vm0, %v3801_v7, 0 }
 0x109   : > { %v3751_v27 = vld [vmem:[%s4223_s26 + $0x58] sm:$0xf] }
 0x10a   : > { %v896_v30 = vpop.f32.mrf.mxu2 }
 0x10b   : > { %3730 = vmatmul.msk.bf16.vlgmr.msrb.gmra.mxu3 %vm187_vm1, %v3727_v19  ;;  %3724 = vmatmul.msk.bf16.vlgmr.msrb.gmra.mxu1 %vm187_vm1, %v3716_v20  ;;  %v2056_v20 = vshll.u32 %v3759_v14, 16  ;;  %v3781_v30 = vld [vmem:[%s4223_s26 + $0x50] sm:$0xf] }
 0x10c   : > { %2095 = vmatpush.bf16.msrb.mxu3 %v2086_v28  ;;  %2040 = vmatpush.bf16.msrb.mxu1 %v2031_v29  ;;  %v2054_v28 = vshrl.u32 %v3759_v14, 16 }
 0x10d   : > { %v2058_v29 = vrot.slane %v2056_v20, 1  ;;  %v3763_v20 = vld [vmem:[%s4223_s26 + $0x60] sm:$0xf] }
 0x10e   : > { %v4643_v37 = vpop.f32.mrf.mxu3 }
 0x10f   : > { %3726 = vmatmul.msk.bf16.vlgmr.msrb.gmra.mxu2 %vm187_vm1, %v1846_v34  ;;  %v3986_v34 = vld [vmem:[%s4223_s26 + $0x50] sm:$0x10]  ;;  %v2059_v45 = vor.u32 %v2058_v29, %v2054_v28  ;;  %v3825_v29 = vld [vmem:[%s5049_s1 + $0x30] sm:$0x7] }
 0x110   : > { %v975_v42 = vpop.f32.mrf.mxu1  ;;  %v951_v46 = vpop.f32.mrf.mxu0  ;;  %2073 = vmatpush.bf16.msrb.mxu2 %v2064_v38  ;;  %v2308_v38 = vsel %vm191_vm0, %v3791_v24, 0 }
 0x111   : > { %v955_v47 = vadd.f32 %v951_v46, %v922_v41  ;;  %v4699_v41 = vor.u32 %v3986_v34, %v3781_v30  ;;  %v3771_v42 = vor.u32 %v3985_v36, %v3770_v35  ;;  %v3815_v30 = vld [vmem:[%s5049_s1 + $0x28] sm:$0x7] }
 0x112   : > { %v1020_v26 = vpop.f32.mrf.mxu2 }
 0x113   : > { %v977_v53 = vadd.f32 %v973_v22, %v955_v47  ;;  %3723 = vmatmul.msk.bf16.vlgmr.msrb.gmra.mxu0 %vm187_vm1, %v1806_v43  ;;  %v1040_v21 = vadd.f32 %v4643_v37, %v1020_v26  ;;  %v3789_v43 = vld [vmem:[%s5049_s1 + $0xc] sm:$0x7]  ;;  %v2194_v26 = vld [vmem:[%s5049_s1] sm:$0x7]  ;;  %v2202_v56 = vshrl.u32 %v4699_v41, 16 }
 0x114   : > { %2016 = vmatpush.bf16.msrb.mxu0 %v2007_v49  ;;  %v2275_v47 = vsel %vm191_vm0, %v3789_v43, 0  ;;  %v2135_v49 = vshll.u32 %v3771_v42, 16  ;;  %v3806_v43 = vld [vmem:[%s4223_s26 + $0x60] sm:$0xf] }
 0x115   : > { %v982_v54 = vadd.f32 %v4045_v48, %v977_v53  ;;  %v2204_v48 = vshll.u32 %v4699_v41, 16 }
 0x116   : > { %v1041_v55 = vpop.f32.mrf.mxu3 }
 0x117   : > { %vm983_vm3 = vcmp.ge.f32.partialorder %v982_v54, 0.0  ;;  %v984_v60 = vmul.f32 0.2, %v982_v54  ;;  %v2206_v57 = vrot.slane %v2204_v48, 1 }
 0x118   : > { %v1083_v61 = vpop.f32.mrf.mxu1  ;;  %v953_v63 = vpop.f32.mrf.mxu0 }
 0x119   : > { %v985_v3 = vsel %vm983_vm3, %v982_v54, %v984_v60  ;;  %v2231_v54 = vsel %vm191_vm0, %v2194_v26, 0  ;;  %v2207_v63 = vor.u32 %v2206_v57, %v2202_v56 }
 0x11a   : > { %v986_v4 = vpack.c.bf16 %v985_v3, %v985_v3  ;;  %v1022_v5 = vpop.f32.mrf.mxu2  ;;  %v3794_v3 = vld [vmem:[%s4223_s26 + $0x58] sm:$0xf] }
 0x11b   : > { %3748 = vmatmul.msk.bf16.vlgmr.msra.gmra.mxu3 %vm187_vm1, %v1980_v58  ;;  %3738 = vmatmul.msk.bf16.vlgmr.msra.gmra.mxu1 %vm187_vm1, %v1924_v59  ;;  %v2133_v58 = vshrl.u32 %v3771_v42, 16  ;;  %v2137_v59 = vrot.slane %v2135_v49, 1  ;;  %v4046_v49 = vld [vmem:[%s5050_s2] ss:$0 sm:$0xff] }
 0x11c   : > { %2221 = vmatpush.bf16.msra.mxu3 %v2212_v1  ;;  %2152 = vmatpush.bf16.msra.mxu1 %v2143_v2  ;;  %3595 = vst [vmem:[%s4562_s4 + $0x4] sm:$0xf] %v986_v4  ;;  %v3809_v1 = vld [vmem:[%s5049_s1 + $0x20] sm:$0x7]  ;;  %v3987_v4 = vld [vmem:[%s4223_s26 + $0x58] sm:$0x10] }
 0x11d   : > { %v2138_v31 = vor.u32 %v2137_v59, %v2133_v58  ;;  %v2408_v6 = vsel %vm191_vm0, %v3809_v1, 0 }
 0x11e   : > { %v1138_v12 = vpop.f32.mrf.mxu3 }
 0x11f   : > { %3742 = vmatmul.msk.bf16.vlgmr.msra.gmra.mxu2 %vm187_vm1, %v3739_v11  ;;  %v4726_v11 = vor.u32 %v3987_v4, %v3794_v3  ;;  %v3818_v4 = vld [vmem:[%s4223_s26 + $0x68] sm:$0xf] }
 0x120   : > { %v1085_v16 = vpop.f32.mrf.mxu1  ;;  %v1060_v0 = vpop.f32.mrf.mxu0  ;;  %2174 = vmatpush.bf16.msra.mxu2 %v2165_v13  ;;  %v2160_v13 = vrot.slane %v3771_v42, 1 }
 0x121   : > { %v1064_v32 = vadd.f32 %v1060_v0, %v1040_v21  ;;  %v3797_v0 = vld [vmem:[%s5049_s1 + $0x14] sm:$0x7]  ;;  %v2298_v24 = vshrl.u32 %v4726_v11, 16 }
 0x122   : > { %v1116_v19 = vpop.f32.mrf.mxu2 }
 0x123   : > { %3736 = vmatmul.msk.bf16.vlgmr.msra.gmra.mxu0 %vm187_vm1, %v1902_v17  ;;  %v1087_v44 = vadd.f32 %v1083_v61, %v1064_v32  ;;  %v2300_v17 = vshll.u32 %v4726_v11, 16 }
 0x124   : > { %2119 = vmatpush.bf16.msra.mxu0 %v2110_v18 }
 0x125   : > { %v1120_v50 = vadd.f32 %v1116_v19, %v1087_v44  ;;  %v2302_v25 = vrot.slane %v2300_v17, 1  ;;  %v3988_v44 = vld [vmem:[%s4223_s26 + $0x60] sm:$0x10] }
 0x126   : > { %v1140_v22 = vpop.f32.mrf.mxu3 }
 0x127   : > { %v1142_v60 = vadd.f32 %v1138_v12, %v1120_v50  ;;  %v3803_v12 = vld [vmem:[%s5049_s1 + $0x1c] sm:$0x7]  ;;  %v2330_v22 = vsel %vm191_vm0, %v3797_v0, 0  ;;  %v2303_v32 = vor.u32 %v2302_v25, %v2298_v24  ;;  %v3807_v50 = vor.u32 %v3988_v44, %v3806_v43  ;;  %v3827_v0 = vld [vmem:[%s5049_s1 + $0x34] sm:$0x7] }
 0x128   : > { %v1194_v33 = vpop.f32.mrf.mxu1  ;;  %v1062_v37 = vpop.f32.mrf.mxu0  ;;  %v2386_v16 = vsel %vm191_vm0, %v3803_v12, 0  ;;  %v3991_v43 = vld [vmem:[%s4223_s26 + $0x60] sm:$0x10] }
 0x129   : > { %v2511_v37 = vsel %vm191_vm0, %v3825_v29, 0  ;;  %v2378_v57 = vshll.u32 %v3807_v50, 16 }
 0x12a   : > { %v1118_v40 = vpop.f32.mrf.mxu2 }
 0x12b   : > { %3762 = vmatmul.msk.bf16.vlgmr.msrb.gmra.mxu3 %vm187_vm1, %v2081_v23  ;;  %3754 = vmatmul.msk.bf16.vlgmr.msrb.gmra.mxu1 %vm187_vm1, %v3751_v27  ;;  %v3821_v40 = vld [vmem:[%s5049_s1 + $0x2c] sm:$0x7]  ;;  %v2380_v3 = vrot.slane %v2378_v57, 1 }
 0x12c   : > { %2317 = vmatpush.bf16.msrb.mxu3 %v2308_v38  ;;  %2261 = vmatpush.bf16.msrb.mxu1 %v2252_v39  ;;  %v2465_v38 = vsel %vm191_vm0, %v3815_v30, 0 }
 0x12e   : > { %v1240_v46 = vpop.f32.mrf.mxu3 }
 0x12f   : > { %3760 = vmatmul.msk.bf16.vlgmr.msrb.gmra.mxu2 %vm187_vm1, %v2059_v45 }
 0x130   : > { %v1196_v51 = vpop.f32.mrf.mxu1  ;;  %v1161_v53 = vpop.f32.mrf.mxu0  ;;  %2284 = vmatpush.bf16.msrb.mxu2 %v2275_v47  ;;  %v3813_v47 = vld [vmem:[%s5049_s1 + $0x24] sm:$0x7] }
 0x131   : > { %v1165_v61 = vadd.f32 %v1161_v53, %v1142_v60  ;;  %v2403_v60 = vrot.slane %v3807_v50, 1 }
 0x132   : > { %v1216_v55 = vpop.f32.mrf.mxu2 }
 0x133   : > { %3750 = vmatmul.msk.bf16.vlgmr.msrb.gmra.mxu0 %vm187_vm1, %v2002_v52  ;;  %v1198_v8 = vadd.f32 %v1194_v33, %v1165_v61  ;;  %v2247_v33 = vrot.slane %v4699_v41, 1  ;;  %v3787_v41 = vld [vmem:[%s4223_s26 + $0x58] sm:$0xf]  ;;  %v3776_v52 = vld [vmem:[%s4223_s26 + $0x50] sm:$0xf] }
 0x134   : > { %2240 = vmatpush.bf16.msrb.mxu0 %v2231_v54  ;;  %v2432_v54 = vsel %vm191_vm0, %v3813_v47, 0  ;;  %v3799_v61 = vld [vmem:[%s4223_s26 + $0x60] sm:$0xf]  ;;  %v3845_v47 = vld [vmem:[%s5049_s1 + $0x8] sm:$0x7] }
 0x135   : > { %v1220_v14 = vadd.f32 %v1216_v55, %v1198_v8 }
 0x136   : > { %v1242_v62 = vpop.f32.mrf.mxu3 }
 0x137   : > { %v1244_v21 = vadd.f32 %v1240_v46, %v1220_v14  ;;  %v2487_v46 = vsel %vm191_vm0, %v3821_v40, 0  ;;  %v2595_v62 = vld [vmem:[%s5049_s1] sm:$0x7]  ;;  %v3851_v40 = vld [vmem:[%s5049_s1 + $0x10] sm:$0x7] }
 0x138   : > { %v1295_v2 = vpop.f32.mrf.mxu1  ;;  %v1163_v5 = vpop.f32.mrf.mxu0  ;;  %v2632_v8 = vsel %vm191_vm0, %v2595_v62, 0 }
 0x139   : > { %v3989_v5 = vld [vmem:[%s4223_s26 + $0x68] sm:$0x10] }
 0x13a   : > { %v1218_v10 = vpop.f32.mrf.mxu2  ;;  %v3819_v12 = vor.u32 %v3989_v5, %v3818_v4 }
 0x13b   : > { %3783 = vmatmul.msk.bf16.vlgmr.msra.gmra.mxu3 %vm187_vm1, %v2207_v63  ;;  %3772 = vmatmul.msk.bf16.vlgmr.msra.gmra.mxu1 %vm187_vm1, %v2138_v31  ;;  %v3833_v63 = vld [vmem:[%s5049_s1 + $0x38] sm:$0x7] }
 0x13c   : > { %2417 = vmatpush.bf16.msra.mxu3 %v2408_v6  ;;  %2362 = vmatpush.bf16.msra.mxu1 %v2353_v9  ;;  %v2566_v9 = vsel %vm191_vm0, %v3833_v63, 0  ;;  %v2457_v17 = vshll.u32 %v3819_v12, 16  ;;  %v2455_v24 = vshrl.u32 %v3819_v12, 16 }
 0x13e   : > { %v1352_v15 = vpop.f32.mrf.mxu3  ;;  %v2459_v25 = vrot.slane %v2457_v17, 1 }
 0x13f   : > { %3774 = vmatmul.msk.bf16.vlgmr.msra.gmra.mxu2 %vm187_vm1, %v2160_v13  ;;  %v3838_v13 = vld [vmem:[%s5049_s1 + $0x4] sm:$0x7] }
 0x140   : > { %v1297_v18 = vpop.f32.mrf.mxu1  ;;  %v1273_v19 = vpop.f32.mrf.mxu0  ;;  %2395 = vmatpush.bf16.msra.mxu2 %v2386_v16  ;;  %v2613_v16 = vsel %vm191_vm0, %v3838_v13, 0  ;;  %v2460_v30 = vor.u32 %v2459_v25, %v2455_v24 }
 0x141   : > { %v1277_v27 = vadd.f32 %v1273_v19, %v1244_v21 }
 0x142   : > { %v1319_v23 = vpop.f32.mrf.mxu2 }
 0x143   : > { %3766 = vmatmul.msk.bf16.vlgmr.msra.gmra.mxu0 %vm187_vm1, %v3763_v20  ;;  %v1299_v34 = vadd.f32 %v1295_v2, %v1277_v27  ;;  %v2376_v2 = vshrl.u32 %v3807_v50, 16  ;;  %v2325_v20 = vrot.slane %v4726_v11, 1 }
 0x144   : > { %2339 = vmatpush.bf16.msra.mxu0 %v2330_v22  ;;  %v2544_v22 = vsel %vm191_vm0, %v3827_v0, 0 }
 0x145   : > { %v1323_v42 = vadd.f32 %v1319_v23, %v1299_v34  ;;  %v2381_v14 = vor.u32 %v2380_v3, %v2376_v2 }
 0x146   : > { %v1354_v28 = vpop.f32.mrf.mxu3 }
 0x147   : > { %v1356_v48 = vadd.f32 %v1352_v15, %v1323_v42  ;;  %v2482_v42 = vrot.slane %v3819_v12, 1 }
 0x148   : > { %v1421_v35 = vpop.f32.mrf.mxu1  ;;  %v1275_v36 = vpop.f32.mrf.mxu0 }
 0x149   : > { %v3849_v36 = vld [vmem:[%s5049_s1 + $0xc] sm:$0x7] }
 0x14a   : > { %v1321_v39 = vpop.f32.mrf.mxu2 }
 0x14b   : > { %3796 = vmatmul.msk.bf16.vlgmr.msrb.gmra.mxu3 %vm187_vm1, %v2303_v32  ;;  %3786 = vmatmul.msk.bf16.vlgmr.msrb.gmra.mxu1 %vm187_vm1, %v2247_v33  ;;  %v3857_v32 = vld [vmem:[%s5049_s1 + $0x14] sm:$0x7]  ;;  %v3823_v33 = vld [vmem:[%s4223_s26 + $0x70] sm:$0xf] }
 0x14c   : > { %2520 = vmatpush.bf16.msrb.mxu3 %v2511_v37  ;;  %2474 = vmatpush.bf16.msrb.mxu1 %v2465_v38  ;;  %v2676_v38 = vsel %vm191_vm0, %v3849_v36, 0 }
 0x14e   : > { %v1461_v45 = vpop.f32.mrf.mxu3 }
 0x14f   : > { %3790 = vmatmul.msk.bf16.vlgmr.msrb.gmra.mxu2 %vm187_vm1, %v3787_v41  ;;  %v3841_v41 = vld [vmem:[%s4223_s26 + $0x60] sm:$0xf] }
 0x150   : > { %v1423_v26 = vpop.f32.mrf.mxu1  ;;  %v1374_v51 = vpop.f32.mrf.mxu0  ;;  %2496 = vmatpush.bf16.msrb.mxu2 %v2487_v46  ;;  %v2709_v46 = vsel %vm191_vm0, %v3851_v40, 0  ;;  %v4817_v50 = vor.u32 %v3991_v43, %v3841_v41  ;;  %v3847_v40 = vld [vmem:[%s4223_s26 + $0x68] sm:$0xf]  ;;  %v3993_v41 = vld [vmem:[%s4223_s26 + $0x70] sm:$0x10] }
 0x151   : > { %v1378_v53 = vadd.f32 %v1374_v51, %v1356_v48  ;;  %v3990_v26 = vld [vmem:[%s4223_s26 + $0x70] sm:$0x10] }
 0x152   : > { %v1440_v55 = vpop.f32.mrf.mxu2  ;;  %v2603_v2 = vshrl.u32 %v4817_v50, 16 }
 0x153   : > { %v1383_v56 = vadd.f32 %v4046_v49, %v1378_v53  ;;  %3784 = vmatmul.msk.bf16.vlgmr.msrb.gmra.mxu0 %vm187_vm1, %v3776_v52  ;;  %v1441_v18 = vadd.f32 %v1440_v55, %v1421_v35  ;;  %v2731_v35 = vsel %vm191_vm0, %v3857_v32, 0  ;;  %v3830_v49 = vld [vmem:[%s4223_s26 + $0x70] sm:$0xf]  ;;  %v3811_v52 = vld [vmem:[%s4223_s26 + $0x68] sm:$0xf] }
 0x154   : > { %2441 = vmatpush.bf16.msrb.mxu0 %v2432_v54  ;;  %v2653_v54 = vsel %vm191_vm0, %v3845_v47, 0  ;;  %v4047_v32 = vld [vmem:[%s5050_s2] ss:$0 sm:$0xff] }
 0x155   : > { %vm1384_vm4 = vcmp.ge.f32.partialorder %v1383_v56, 0.0  ;;  %v1385_v58 = vmul.f32 0.2, %v1383_v56  ;;  %v1465_v27 = vadd.f32 %v1461_v45, %v1441_v18 }
 0x156   : > { %v1463_v59 = vpop.f32.mrf.mxu3 }
 0x157   : > { %v1386_v31 = vsel %vm1384_vm4, %v1383_v56, %v1385_v58  ;;  %v3831_v56 = vor.u32 %v3990_v26, %v3830_v49  ;;  %v2605_v58 = vshll.u32 %v4817_v50, 16  ;;  %v3885_v49 = vld [vmem:[%s5049_s1 + $0x30] sm:$0x7] }
 0x158   : > { %v1517_v1 = vpop.f32.mrf.mxu1  ;;  %v1387_v6 = vpack.c.bf16 %v1386_v31, %v1386_v31  ;;  %v1376_v7 = vpop.f32.mrf.mxu0 }
 0x159   : > { %v2561_v62 = vrot.slane %v3831_v56, 1  ;;  %v2607_v3 = vrot.slane %v2605_v58, 1  ;;  %v2536_v4 = vshll.u32 %v3831_v56, 16  ;;  %v2534_v13 = vshrl.u32 %v3831_v56, 16 }
 0x15a   : > { %3655 = vst [vmem:[%s4562_s4 + $0x8] sm:$0xf] %v1387_v6  ;;  %v1442_v10 = vpop.f32.mrf.mxu2 }
 0x15b   : > { %3810 = vmatmul.msk.bf16.vlgmr.msra.gmra.mxu3 %vm187_vm1, %v2403_v60  ;;  %3802 = vmatmul.msk.bf16.vlgmr.msra.gmra.mxu1 %vm187_vm1, %v3799_v61  ;;  %v3873_v60 = vld [vmem:[%s5049_s1 + $0x24] sm:$0x7]  ;;  %v3863_v61 = vld [vmem:[%s5049_s1 + $0x1c] sm:$0x7]  ;;  %v2608_v12 = vor.u32 %v2607_v3, %v2603_v2  ;;  %v3905_v2 = vld [vmem:[%s5049_s1 + $0x8] sm:$0x7] }
 0x15c   : > { %2641 = vmatpush.bf16.msra.mxu3 %v2632_v8  ;;  %2575 = vmatpush.bf16.msra.mxu1 %v2566_v9  ;;  %v2833_v6 = vsel %vm191_vm0, %v3873_v60, 0  ;;  %v2787_v7 = vsel %vm191_vm0, %v3863_v61, 0  ;;  %v3869_v9 = vld [vmem:[%s5049_s1 + $0x20] sm:$0x7] }
 0x15d   : > { %v2809_v0 = vsel %vm191_vm0, %v3869_v9, 0  ;;  %v3054_v9 = vsel %vm191_vm0, %v3905_v2, 0 }
 0x15e   : > { %v1562_v15 = vpop.f32.mrf.mxu3 }
 0x15f   : > { %3808 = vmatmul.msk.bf16.vlgmr.msra.gmra.mxu2 %vm187_vm1, %v2381_v14  ;;  %v2538_v14 = vrot.slane %v2536_v4, 1 }
 0x160   : > { %v1519_v19 = vpop.f32.mrf.mxu1  ;;  %v1484_v21 = vpop.f32.mrf.mxu0  ;;  %2622 = vmatpush.bf16.msra.mxu2 %v2613_v16  ;;  %v3992_v16 = vld [vmem:[%s4223_s26 + $0x68] sm:$0x10] }
 0x161   : > { %v1488_v28 = vadd.f32 %v1484_v21, %v1465_v27  ;;  %v3861_v19 = vld [vmem:[%s5049_s1 + $0x18] sm:$0x7] }
 0x162   : > { %v1539_v23 = vpop.f32.mrf.mxu2  ;;  %v2754_v25 = vsel %vm191_vm0, %v3861_v19, 0  ;;  %v3893_v19 = vld [vmem:[%s5049_s1 + $0x38] sm:$0x7] }
 0x163   : > { %3798 = vmatmul.msk.bf16.vlgmr.msra.gmra.mxu0 %vm187_vm1, %v2325_v20  ;;  %v1521_v37 = vadd.f32 %v1517_v1, %v1488_v28  ;;  %v3836_v1 = vld [vmem:[%s4223_s26 + $0x60] sm:$0xf] }
 0x164   : > { %2553 = vmatpush.bf16.msra.mxu0 %v2544_v22  ;;  %v2539_v22 = vor.u32 %v2538_v14, %v2534_v13  ;;  %v2996_v14 = vld [vmem:[%s5049_s1] sm:$0x7] }
 0x165   : > { %v1543_v44 = vadd.f32 %v1539_v23, %v1521_v37 }
 0x166   : > { %v1564_v29 = vpop.f32.mrf.mxu3 }
 0x167   : > { %v1566_v53 = vadd.f32 %v1562_v15, %v1543_v44  ;;  %v3854_v15 = vld [vmem:[%s4223_s26 + $0x68] sm:$0xf] }
 0x168   : > { %v1617_v11 = vpop.f32.mrf.mxu1  ;;  %v1486_v34 = vpop.f32.mrf.mxu0  ;;  %v3855_v18 = vor.u32 %v3992_v16, %v3854_v15 }
 0x169   : > { %v3881_v34 = vld [vmem:[%s5049_s1 + $0x2c] sm:$0x7] }
 0x16a   : > { %v1541_v39 = vpop.f32.mrf.mxu2  ;;  %v2701_v28 = vshll.u32 %v3855_v18, 16  ;;  %v2699_v36 = vshrl.u32 %v3855_v18, 16 }
 0x16b   : > { %3826 = vmatmul.msk.bf16.vlgmr.msrb.gmra.mxu3 %vm187_vm1, %v3823_v33  ;;  %3820 = vmatmul.msk.bf16.vlgmr.msrb.gmra.mxu1 %vm187_vm1, %v2460_v30  ;;  %v3887_v33 = vld [vmem:[%s5049_s1 + $0x34] sm:$0x7] }
 0x16c   : > { %2740 = vmatpush.bf16.msrb.mxu3 %v2731_v35  ;;  %2685 = vmatpush.bf16.msrb.mxu1 %v2676_v38  ;;  %v2726_v35 = vrot.slane %v3855_v18, 1  ;;  %v2703_v37 = vrot.slane %v2701_v28, 1  ;;  %v2945_v44 = vsel %vm191_vm0, %v3887_v33, 0 }
 0x16e   : > { %v1674_v45 = vpop.f32.mrf.mxu3 }
 0x16f   : > { %3822 = vmatmul.msk.bf16.vlgmr.msrb.gmra.mxu2 %vm187_vm1, %v2482_v42  ;;  %v3866_v42 = vld [vmem:[%s4223_s26 + $0x70] sm:$0xf] }
 0x170   : > { %v1619_v48 = vpop.f32.mrf.mxu1  ;;  %v1595_v51 = vpop.f32.mrf.mxu0  ;;  %2718 = vmatpush.bf16.msrb.mxu2 %v2709_v46 }
 0x171   : > { %v1599_v57 = vadd.f32 %v1595_v51, %v1566_v53  ;;  %v3867_v48 = vor.u32 %v3993_v41, %v3866_v42  ;;  %v2704_v51 = vor.u32 %v2703_v37, %v2699_v36  ;;  %v3921_v37 = vld [vmem:[%s5049_s1 + $0x18] sm:$0x7]  ;;  %v3996_v42 = vld [vmem:[%s4223_s26 + $0x70] sm:$0x10] }
 0x172   : > { %v1641_v55 = vpop.f32.mrf.mxu2 }
 0x173   : > { %3814 = vmatmul.msk.bf16.vlgmr.msrb.gmra.mxu0 %vm187_vm1, %v3811_v52  ;;  %v1621_v63 = vadd.f32 %v1617_v11, %v1599_v57  ;;  %v2779_v56 = vshll.u32 %v3867_v48, 16  ;;  %v3875_v57 = vld [vmem:[%s5049_s1 + $0x28] sm:$0x7]  ;;  %v2804_v16 = vrot.slane %v3867_v48, 1 }
 0x174   : > { %2662 = vmatpush.bf16.msrb.mxu0 %v2653_v54  ;;  %v2912_v54 = vsel %vm191_vm0, %v3885_v49, 0  ;;  %v2866_v61 = vsel %vm191_vm0, %v3875_v57, 0  ;;  %v3917_v49 = vld [vmem:[%s5049_s1 + $0x14] sm:$0x7]  ;;  %v3909_v57 = vld [vmem:[%s5049_s1 + $0xc] sm:$0x7] }
 0x175   : > { %v1645_v10 = vadd.f32 %v1641_v55, %v1621_v63  ;;  %v2777_v63 = vshrl.u32 %v3867_v48, 16 }
 0x176   : > { %v1676_v59 = vpop.f32.mrf.mxu3 }
 0x177   : > { %v1678_v20 = vadd.f32 %v1674_v45, %v1645_v10  ;;  %v2888_v45 = vsel %vm191_vm0, %v3881_v34, 0  ;;  %v2648_v59 = vrot.slane %v4817_v50, 1  ;;  %v3898_v50 = vld [vmem:[%s5049_s1 + $0x4] sm:$0x7] }
 0x178   : > { %v1720_v31 = vpop.f32.mrf.mxu1  ;;  %v1597_v5 = vpop.f32.mrf.mxu0  ;;  %v3014_v10 = vsel %vm191_vm0, %v3898_v50, 0 }
 0x179   : > { %v3871_v5 = vld [vmem:[%s4223_s26 + $0x78] sm:$0xf] }
 0x17a   : > { %v1643_v8 = vpop.f32.mrf.mxu2 }
 0x17b   : > { %3844 = vmatmul.msk.bf16.vlgmr.msra.gmra.mxu3 %vm187_vm1, %v3836_v1  ;;  %3834 = vmatmul.msk.bf16.vlgmr.msra.gmra.mxu1 %vm187_vm1, %v2561_v62 }
 0x17c   : > { %2842 = vmatpush.bf16.msra.mxu3 %v2833_v6  ;;  %2796 = vmatpush.bf16.msra.mxu1 %v2787_v7  ;;  %v3890_v6 = vld [vmem:[%s4223_s26 + $0x80] sm:$0xf]  ;;  %v3995_v7 = vld [vmem:[%s4223_s26 + $0x80] sm:$0x10] }
 0x17d   : > { %v4888_v13 = vor.u32 %v3995_v7, %v3890_v6 }
 0x17e   : > { %v1775_v17 = vpop.f32.mrf.mxu3 }
 0x17f   : > { %3843 = vmatmul.msk.bf16.vlgmr.msra.gmra.mxu2 %vm187_vm1, %v2608_v12  ;;  %v2937_v18 = vshll.u32 %v4888_v13, 16 }
 0x180   : > { %v1722_v21 = vpop.f32.mrf.mxu1  ;;  %v1696_v23 = vpop.f32.mrf.mxu0  ;;  %2818 = vmatpush.bf16.msra.mxu2 %v2809_v0  ;;  %v3033_v0 = vsel %vm191_vm0, %v2996_v14, 0 }
 0x181   : > { %v1700_v24 = vadd.f32 %v1696_v23, %v1678_v20  ;;  %v3994_v23 = vld [vmem:[%s4223_s26 + $0x78] sm:$0x10] }
 0x182   : > { %v1753_v27 = vpop.f32.mrf.mxu2 }
 0x183   : > { %v1724_v29 = vadd.f32 %v1720_v31, %v1700_v24  ;;  %3832 = vmatmul.msk.bf16.vlgmr.msra.gmra.mxu0 %vm187_vm1, %v2539_v22  ;;  %v2781_v31 = vrot.slane %v2779_v56, 1  ;;  %v3878_v22 = vld [vmem:[%s4223_s26 + $0x78] sm:$0xf] }
 0x184   : > { %2763 = vmatpush.bf16.msra.mxu0 %v2754_v25  ;;  %v3859_v25 = vld [vmem:[%s4223_s26 + $0x70] sm:$0xf] }
 0x185   : > { %v1757_v30 = vadd.f32 %v1753_v27, %v1724_v29  ;;  %v2782_v3 = vor.u32 %v2781_v31, %v2777_v63  ;;  %v2967_v27 = vsel %vm191_vm0, %v3893_v19, 0  ;;  %v2935_v29 = vshrl.u32 %v4888_v13, 16  ;;  %v3896_v19 = vld [vmem:[%s4223_s26 + $0x70] sm:$0xf] }
 0x186   : > { %v1777_v11 = vpop.f32.mrf.mxu3 }
 0x187   : > { %v1779_v38 = vadd.f32 %v1775_v17, %v1757_v30  ;;  %v2939_v30 = vrot.slane %v2937_v18, 1 }
 0x188   : > { %v1841_v39 = vpop.f32.mrf.mxu1  ;;  %v1698_v43 = vpop.f32.mrf.mxu0 }
 0x189   : > { %v1784_v46 = vadd.f32 %v4047_v32, %v1779_v38  ;;  %v3879_v32 = vor.u32 %v3994_v23, %v3878_v22  ;;  %v3155_v43 = vsel %vm191_vm0, %v3921_v37, 0  ;;  %v3923_v23 = vld [vmem:[%s5049_s1 + $0x1c] sm:$0x7]  ;;  %v3953_v37 = vld [vmem:[%s5049_s1 + $0x38] sm:$0x7] }
 0x18a   : > { %v1755_v47 = vpop.f32.mrf.mxu2 }
 0x18b   : > { %3858 = vmatmul.msk.bf16.vlgmr.msrb.gmra.mxu3 %vm187_vm1, %v2726_v35  ;;  %3850 = vmatmul.msk.bf16.vlgmr.msrb.gmra.mxu1 %vm187_vm1, %v3847_v40  ;;  %vm1785_vm5 = vcmp.ge.f32.partialorder %v1784_v46, 0.0  ;;  %v1786_v26 = vmul.f32 0.2, %v1784_v46  ;;  %v2940_v35 = vor.u32 %v2939_v30, %v2935_v29  ;;  %v2883_v36 = vrot.slane %v3879_v32, 1  ;;  %v3901_v40 = vld [vmem:[%s4223_s26 + $0x70] sm:$0xf] }
 0x18c   : > { %2954 = vmatpush.bf16.msrb.mxu3 %v2945_v44  ;;  %2897 = vmatpush.bf16.msrb.mxu1 %v2888_v45  ;;  %v3911_v44 = vld [vmem:[%s5049_s1 + $0x10] sm:$0x7]  ;;  %v3902_v48 = vor.u32 %v3996_v42, %v3901_v40  ;;  %v3188_v30 = vsel %vm191_vm0, %v3923_v23, 0 }
 0x18d   : > { %v1787_v52 = vsel %vm1785_vm5, %v1784_v46, %v1786_v26  ;;  %v3110_v46 = vsel %vm191_vm0, %v3911_v44, 0  ;;  %v2856_v26 = vshrl.u32 %v3879_v32, 16  ;;  %v3999_v44 = vld [vmem:[%s4223_s26 + $0x88] sm:$0x10] }
 0x18e   : > { %v1885_v53 = vpop.f32.mrf.mxu3  ;;  %v1788_v55 = vpack.c.bf16 %v1787_v52, %v1787_v52  ;;  %v3883_v52 = vld [vmem:[%s4223_s26 + $0x80] sm:$0xf]  ;;  %v3006_v56 = vshll.u32 %v3902_v48, 16  ;;  %v3004_v31 = vshrl.u32 %v3902_v48, 16 }
 0x18f   : > { %3856 = vmatmul.msk.bf16.vlgmr.msrb.gmra.mxu2 %vm187_vm1, %v2704_v51 }
 0x190   : > { %v1843_v58 = vpop.f32.mrf.mxu1  ;;  %3715 = vst [vmem:[%s4562_s4 + $0xc] sm:$0xf] %v1788_v55  ;;  %v1822_v60 = vpop.f32.mrf.mxu0  ;;  %2921 = vmatpush.bf16.msrb.mxu2 %v2912_v54  ;;  %v3132_v55 = vsel %vm191_vm0, %v3917_v49, 0 }
 0x191   : > { %v1842_v15 = vadd.f32 %v1841_v39, %v1822_v60  ;;  %v2858_v39 = vshll.u32 %v3879_v32, 16 }
 0x192   : > { %v1862_v62 = vpop.f32.mrf.mxu2 }
 0x193   : > { %3846 = vmatmul.msk.bf16.vlgmr.msrb.gmra.mxu0 %vm187_vm1, %v2648_v59  ;;  %v1866_v20 = vadd.f32 %v1862_v62, %v1842_v15  ;;  %v2860_v51 = vrot.slane %v2858_v39, 1  ;;  %v3077_v62 = vsel %vm191_vm0, %v3909_v57, 0 }
 0x194   : > { %2875 = vmatpush.bf16.msrb.mxu0 %v2866_v61 }
 0x195   : > { %v1889_v11 = vadd.f32 %v1885_v53, %v1866_v20  ;;  %v2861_v59 = vor.u32 %v2860_v51, %v2856_v26  ;;  %v3947_v51 = vld [vmem:[%s5049_s1 + $0x34] sm:$0x7] }
 0x196   : > { %v1887_v1 = vpop.f32.mrf.mxu3 }
 0x197   : > { %v3008_v1 = vrot.slane %v3006_v56, 1  ;;  %v3346_v56 = vsel %vm191_vm0, %v3947_v51, 0 }
 0x198   : > { %v1940_v4 = vpop.f32.mrf.mxu1  ;;  %v1824_v8 = vpop.f32.mrf.mxu0 }
 0x199   : > { %v3009_v6 = vor.u32 %v3008_v1, %v3004_v31 }
 0x19a   : > { %v1864_v12 = vpop.f32.mrf.mxu2 }
 0x19b   : > { %3874 = vmatmul.msk.bf16.vlgmr.msra.gmra.mxu3 %vm187_vm1, %v3871_v5  ;;  %3868 = vmatmul.msk.bf16.vlgmr.msra.gmra.mxu1 %vm187_vm1, %v2782_v3  ;;  %v3935_v3 = vld [vmem:[%s5049_s1 + $0x28] sm:$0x7]  ;;  %v3049_v5 = vrot.slane %v3902_v48, 1 }
 0x19c   : > { %3063 = vmatpush.bf16.msra.mxu3 %v3054_v9  ;;  %3023 = vmatpush.bf16.msra.mxu1 %v3014_v10  ;;  %v3914_v9 = vld [vmem:[%s4223_s26 + $0x78] sm:$0xf]  ;;  %v3997_v10 = vld [vmem:[%s4223_s26 + $0x78] sm:$0x10]  ;;  %v3267_v14 = vsel %vm191_vm0, %v3935_v3, 0 }
 0x19e   : > { %v1996_v17 = vpop.f32.mrf.mxu3 }
 0x19f   : > { %3870 = vmatmul.msk.bf16.vlgmr.msra.gmra.mxu2 %vm187_vm1, %v2804_v16 }
 0x1a0   : > { %v1942_v21 = vpop.f32.mrf.mxu1  ;;  %v1918_v24 = vpop.f32.mrf.mxu0  ;;  %3042 = vmatpush.bf16.msra.mxu2 %v3033_v0  ;;  %v3933_v0 = vld [vmem:[%s5049_s1 + $0x24] sm:$0x7] }
 0x1a1   : > { %v1922_v33 = vadd.f32 %v1918_v24, %v1889_v11  ;;  %v3234_v21 = vsel %vm191_vm0, %v3933_v0, 0  ;;  %v3950_v0 = vld [vmem:[%s4223_s26 + $0x90] sm:$0xf] }
 0x1a2   : > { %v1963_v28 = vpop.f32.mrf.mxu2 }
 0x1a3   : > { %3862 = vmatmul.msk.bf16.vlgmr.msra.gmra.mxu0 %vm187_vm1, %v3859_v25  ;;  %v1944_v45 = vadd.f32 %v1940_v4, %v1922_v33  ;;  %v3929_v4 = vld [vmem:[%s5049_s1 + $0x20] sm:$0x7] }
 0x1a4   : > { %2976 = vmatpush.bf16.msra.mxu0 %v2967_v27  ;;  %v3210_v15 = vsel %vm191_vm0, %v3929_v4, 0  ;;  %v2962_v27 = vrot.slane %v4888_v13, 1 }
 0x1a5   : > { %v1967_v53 = vadd.f32 %v1963_v28, %v1944_v45 }
 0x1a6   : > { %v1998_v34 = vpop.f32.mrf.mxu3 }
 0x1a7   : > { %v2000_v61 = vadd.f32 %v1996_v17, %v1967_v53  ;;  %v3915_v17 = vor.u32 %v3997_v10, %v3914_v9 }
 0x1a8   : > { %v2042_v38 = vpop.f32.mrf.mxu1  ;;  %v1920_v41 = vpop.f32.mrf.mxu0 }
 0x1a9   : > { %v3102_v22 = vshll.u32 %v3915_v17, 16  ;;  %v3100_v11 = vshrl.u32 %v3915_v17, 16  ;;  %v3919_v41 = vld [vmem:[%s4223_s26 + $0x80] sm:$0xf]  ;;  %v3127_v53 = vrot.slane %v3915_v17, 1 }
 0x1aa   : > { %v1965_v47 = vpop.f32.mrf.mxu2  ;;  %v3931_v17 = vld [vmem:[%s4223_s26 + $0x88] sm:$0xf] }
 0x1ab   : > { %3892 = vmatmul.msk.bf16.vlgmr.msrb.gmra.mxu3 %vm187_vm1, %v2940_v35  ;;  %3882 = vmatmul.msk.bf16.vlgmr.msrb.gmra.mxu1 %vm187_vm1, %v2883_v36  ;;  %v3104_v33 = vrot.slane %v3102_v22, 1  ;;  %v4048_v35 = vld [vmem:[%s5050_s2] ss:$0 sm:$0xff] }
 0x1ac   : > { %3164 = vmatpush.bf16.msrb.mxu3 %v3155_v43  ;;  %3119 = vmatpush.bf16.msrb.mxu1 %v3110_v46  ;;  %v3938_v43 = vld [vmem:[%s4223_s26 + $0x88] sm:$0xf]  ;;  %v3368_v46 = vsel %vm191_vm0, %v3953_v37, 0 }
 0x1ad   : > { %v3105_v39 = vor.u32 %v3104_v33, %v3100_v11  ;;  %v4970_v26 = vor.u32 %v3999_v44, %v3938_v43  ;;  %v3943_v33 = vld [vmem:[%s4223_s26 + $0x90] sm:$0xf] }
 0x1ae   : > { %v2097_v54 = vpop.f32.mrf.mxu3 }
 0x1af   : > { %3886 = vmatmul.msk.bf16.vlgmr.msrb.gmra.mxu2 %vm187_vm1, %v3883_v52  ;;  %v3259_v57 = vshll.u32 %v4970_v26, 16 }
 0x1b0   : > { %v2044_v58 = vpop.f32.mrf.mxu1  ;;  %v2018_v60 = vpop.f32.mrf.mxu0  ;;  %3141 = vmatpush.bf16.msrb.mxu2 %v3132_v55 }
 0x1b1   : > { %v2022_v2 = vadd.f32 %v2018_v60, %v2000_v61  ;;  %v3941_v58 = vld [vmem:[%s5049_s1 + $0x2c] sm:$0x7]  ;;  %v3926_v60 = vld [vmem:[%s4223_s26 + $0x80] sm:$0xf]  ;;  %v3998_v61 = vld [vmem:[%s4223_s26 + $0x80] sm:$0x10] }
 0x1b2   : > { %v2075_v63 = vpop.f32.mrf.mxu2  ;;  %v3289_v31 = vsel %vm191_vm0, %v3941_v58, 0  ;;  %v3927_v3 = vor.u32 %v3998_v61, %v3926_v60 }
 0x1b3   : > { %3880 = vmatmul.msk.bf16.vlgmr.msrb.gmra.mxu0 %vm187_vm1, %v2861_v59  ;;  %v2046_v7 = vadd.f32 %v2042_v38, %v2022_v2  ;;  %v3945_v38 = vld [vmem:[%s5049_s1 + $0x30] sm:$0x7]  ;;  %v3257_v2 = vshrl.u32 %v4970_v26, 16 }
 0x1b4   : > { %3086 = vmatpush.bf16.msrb.mxu0 %v3077_v62  ;;  %v3313_v47 = vsel %vm191_vm0, %v3945_v38, 0  ;;  %v3180_v9 = vshll.u32 %v3927_v3, 16 }
 0x1b5   : > { %v2079_v18 = vadd.f32 %v2075_v63, %v2046_v7  ;;  %v3907_v63 = vld [vmem:[%s4223_s26 + $0x78] sm:$0xf] }
 0x1b6   : > { %v2099_v50 = vpop.f32.mrf.mxu3 }
 0x1b7   : > { %v2101_v24 = vadd.f32 %v2097_v54, %v2079_v18  ;;  %v3261_v50 = vrot.slane %v3259_v57, 1  ;;  %v4000_v18 = vld [vmem:[%s4223_s26 + $0x90] sm:$0x10]  ;;  %s4072_s26 = scalar_lea.hbm %s5051_s3, 64 }
 0x1b8   : > { %v2154_v8 = vpop.f32.mrf.mxu1  ;;  %v2020_v12 = vpop.f32.mrf.mxu0  ;;  %v3951_v23 = vor.u32 %v4000_v18, %v3950_v0  ;;  %p4074_p1 = scmp.lt.s32.totalorder %s4072_s26, %s4068_s17 }
 0x1ba   : > { %v2077_v16 = vpop.f32.mrf.mxu2  ;;  %p4075_p2 = por %p4074_p1, %p4073_p0 }
 0x1bb   : > { %3906 = vmatmul.msk.bf16.vlgmr.msra.gmra.mxu3 %vm187_vm1, %v3049_v5  ;;  %3903 = vmatmul.msk.bf16.vlgmr.msra.gmra.mxu1 %vm187_vm1, %v3009_v6  ;;  %v3262_v5 = vor.u32 %v3261_v50, %v3257_v2  ;;  %v3205_v6 = vrot.slane %v3927_v3, 1  ;;  %v3182_v16 = vrot.slane %v3180_v9, 1 }
 0x1bc   : > { %3276 = vmatpush.bf16.msra.mxu3 %v3267_v14  ;;  %3219 = vmatpush.bf16.msra.mxu1 %v3210_v15  ;;  %v3178_v15 = vshrl.u32 %v3927_v3, 16  ;;  %p4076_p3 = pnand %p4075_p2, %p4071_p13 }
 0x1be   : > { %v4944_v20 = vpop.f32.mrf.mxu3  ;;  %v3183_v22 = vor.u32 %v3182_v16, %v3178_v15 }
 0x1bf   : > { %3904 = vmatmul.msk.bf16.vlgmr.msra.gmra.mxu2 %vm187_vm1, %v3896_v19 }
 0x1c0   : > { %v2156_v25 = vpop.f32.mrf.mxu1  ;;  %v2121_v28 = vpop.f32.mrf.mxu0  ;;  %3243 = vmatpush.bf16.msra.mxu2 %v3234_v21 }
 0x1c1   : > { %v2125_v29 = vadd.f32 %v2121_v28, %v2101_v24  ;;  %v3338_v28 = vshll.u32 %v3951_v23, 16 }
 0x1c2   : > { %v2176_v32 = vpop.f32.mrf.mxu2 }
 0x1c3   : > { %v2158_v34 = vadd.f32 %v2154_v8, %v2125_v29  ;;  %3894 = vmatmul.msk.bf16.vlgmr.msra.gmra.mxu0 %vm187_vm1, %v2962_v27 }
 0x1c4   : > { %3197 = vmatpush.bf16.msra.mxu0 %v3188_v30 }
 0x1c5   : > { %v2180_v13 = vadd.f32 %v2176_v32, %v2158_v34  ;;  %v3363_v32 = vrot.slane %v3951_v23, 1  ;;  %v3336_v34 = vshrl.u32 %v3951_v23, 16 }
 0x1c6   : > { %v2225_v36 = vpop.f32.mrf.mxu3 }
 0x1c7   : > { %v2185_v40 = vadd.f32 %v4048_v35, %v2180_v13  ;;  %v3340_v35 = vrot.slane %v3338_v28, 1 }
 0x1c8   : > { %v2263_v42 = vpop.f32.mrf.mxu1  ;;  %v2123_v45 = vpop.f32.mrf.mxu0 }
 0x1c9   : > { %vm2186_vm6 = vcmp.ge.f32.partialorder %v2185_v40, 0.0  ;;  %v2187_v48 = vmul.f32 0.2, %v2185_v40  ;;  %v3341_v38 = vor.u32 %v3340_v35, %v3336_v34 }
 0x1ca   : > { %v2178_v49 = vpop.f32.mrf.mxu2 }
 0x1cb   : > { %3922 = vmatmul.msk.bf16.vlgmr.msrb.gmra.mxu3 %vm187_vm1, %v3919_v41  ;;  %3916 = vmatmul.msk.bf16.vlgmr.msrb.gmra.mxu1 %vm187_vm1, %v3105_v39  ;;  %v2188_v52 = vsel %vm2186_vm6, %v2185_v40, %v2187_v48  ;;  %v3284_v41 = vrot.slane %v4970_v26, 1  ;;  %v4049_v26 = vld [vmem:[%s5050_s2] ss:$0 sm:$0xff] }
 0x1cc   : > { %3377 = vmatpush.bf16.msrb.mxu3 %v3368_v46  ;;  %3322 = vmatpush.bf16.msrb.mxu1 %v3313_v47  ;;  %v2189_v54 = vpack.c.bf16 %v2188_v52, %v2188_v52 }
 0x1ce   : > { %v2319_v55 = vpop.f32.mrf.mxu3  ;;  %3775 = vst [vmem:[%s4562_s4 + $0x10] sm:$0xf] %v2189_v54 }
 0x1cf   : > { %3918 = vmatmul.msk.bf16.vlgmr.msrb.gmra.mxu2 %vm187_vm1, %v3127_v53 }
 0x1d0   : > { %v2265_v59 = vpop.f32.mrf.mxu1  ;;  %v2242_v62 = vpop.f32.mrf.mxu0  ;;  %3355 = vmatpush.bf16.msrb.mxu2 %v3346_v56 }
 0x1d1   : > { %v2243_v7 = vadd.f32 %v2242_v62, %v4944_v20 }
 0x1d2   : > { %v2286_v1 = vpop.f32.mrf.mxu2 }
 0x1d3   : > { %3910 = vmatmul.msk.bf16.vlgmr.msrb.gmra.mxu0 %vm187_vm1, %v3907_v63  ;;  %v2267_v14 = vadd.f32 %v2263_v42, %v2243_v7 }
 0x1d4   : > { %3298 = vmatpush.bf16.msrb.mxu0 %v3289_v31 }
 0x1d5   : > { %v2290_v21 = vadd.f32 %v2286_v1, %v2267_v14 }
 0x1d6   : > { %v2321_v4 = vpop.f32.mrf.mxu3 }
 0x1d7   : > { %v2323_v27 = vadd.f32 %v2319_v55, %v2290_v21 }
 0x1d8   : > { %v2364_v8 = vpop.f32.mrf.mxu1  ;;  %v2244_v10 = vpop.f32.mrf.mxu0 }
 0x1da   : > { %v2288_v12 = vpop.f32.mrf.mxu2 }
 0x1db   : > { %3940 = vmatmul.msk.bf16.vlgmr.msra.gmra.mxu3 %vm187_vm1, %v3262_v5  ;;  %3930 = vmatmul.msk.bf16.vlgmr.msra.gmra.mxu1 %vm187_vm1, %v3205_v6 }
 0x1de   : > { %v2419_v19 = vpop.f32.mrf.mxu3 }
 0x1df   : > { %3934 = vmatmul.msk.bf16.vlgmr.msra.gmra.mxu2 %vm187_vm1, %v3931_v17 }
 0x1e0   : > { %v2366_v20 = vpop.f32.mrf.mxu1  ;;  %v2341_v24 = vpop.f32.mrf.mxu0 }
 0x1e1   : > { %v2345_v29 = vadd.f32 %v2341_v24, %v2323_v27 }
 0x1e2   : > { %v2397_v25 = vpop.f32.mrf.mxu2 }
 0x1e3   : > { %3928 = vmatmul.msk.bf16.vlgmr.msra.gmra.mxu0 %vm187_vm1, %v3183_v22  ;;  %v2368_v36 = vadd.f32 %v2364_v8, %v2345_v29 }
 0x1e5   : > { %v2401_v39 = vadd.f32 %v2397_v25, %v2368_v36 }
 0x1e6   : > { %v2421_v30 = vpop.f32.mrf.mxu3 }
 0x1e7   : > { %v2423_v44 = vadd.f32 %v2419_v19, %v2401_v39 }
 0x1e8   : > { %v2476_v11 = vpop.f32.mrf.mxu1  ;;  %v2343_v13 = vpop.f32.mrf.mxu0 }
 0x1ea   : > { %v2399_v37 = vpop.f32.mrf.mxu2 }
 0x1eb   : > { %3954 = vmatmul.msk.bf16.vlgmr.msrb.gmra.mxu3 %vm187_vm1, %v3363_v32  ;;  %3946 = vmatmul.msk.bf16.vlgmr.msrb.gmra.mxu1 %vm187_vm1, %v3943_v33 }
 0x1ee   : > { %v2522_v40 = vpop.f32.mrf.mxu3 }
 0x1ef   : > { %3952 = vmatmul.msk.bf16.vlgmr.msrb.gmra.mxu2 %vm187_vm1, %v3341_v38 }
 0x1f0   : > { %v2478_v42 = vpop.f32.mrf.mxu1  ;;  %v2443_v43 = vpop.f32.mrf.mxu0 }
 0x1f1   : > { %v2447_v46 = vadd.f32 %v2443_v43, %v2423_v44  ;;  %v4050_v43 = vld [vmem:[%s5050_s2] ss:$0 sm:$0xff] }
 0x1f2   : > { %v2498_v45 = vpop.f32.mrf.mxu2 }
 0x1f3   : > { %3942 = vmatmul.msk.bf16.vlgmr.msrb.gmra.mxu0 %vm187_vm1, %v3284_v41  ;;  %v2480_v48 = vadd.f32 %v2476_v11, %v2447_v46 }
 0x1f5   : > { %v2502_v53 = vadd.f32 %v2498_v45, %v2480_v48 }
 0x1f6   : > { %v2524_v47 = vpop.f32.mrf.mxu3 }
 0x1f7   : > { %v2526_v55 = vadd.f32 %v2522_v40, %v2502_v53 }
 0x1f8   : > { %v2577_v49 = vpop.f32.mrf.mxu1  ;;  %v2445_v51 = vpop.f32.mrf.mxu0 }
 0x1fa   : > { %v2500_v52 = vpop.f32.mrf.mxu2 }
 0x1fe   : > { %v2643_v54 = vpop.f32.mrf.mxu3 }
 0x200   : > { %v2579_v56 = vpop.f32.mrf.mxu1  ;;  %v2555_v57 = vpop.f32.mrf.mxu0 }
 0x201   : > { %v2559_v58 = vadd.f32 %v2555_v57, %v2526_v55 }
 0x202   : > { %v2624_v59 = vpop.f32.mrf.mxu2 }
 0x203   : > { %v2581_v60 = vadd.f32 %v2577_v49, %v2559_v58  ;;  %v2644_v8 = vadd.f32 %v2643_v54, %v2624_v59 }
 0x205   : > { %v2586_v61 = vadd.f32 %v4049_v26, %v2581_v60 }
 0x206   : > { %v2645_v62 = vpop.f32.mrf.mxu3 }
 0x207   : > { %vm2587_vm7 = vcmp.ge.f32.partialorder %v2586_v61, 0.0  ;;  %v2588_v63 = vmul.f32 0.2, %v2586_v61 }
 0x208   : > { %v2687_v31 = vpop.f32.mrf.mxu1  ;;  %v2557_v1 = vpop.f32.mrf.mxu0 }
 0x209   : > { %v2589_v2 = vsel %vm2587_vm7, %v2586_v61, %v2588_v63 }
 0x20a   : > { %v2590_v50 = vpack.c.bf16 %v2589_v2, %v2589_v2  ;;  %v2626_v3 = vpop.f32.mrf.mxu2 }
 0x20c   : > { %3835 = vst [vmem:[%s4562_s4 + $0x14] sm:$0xf] %v2590_v50 }
 0x20e   : > { %v2742_v4 = vpop.f32.mrf.mxu3 }
 0x210   : > { %v2689_v5 = vpop.f32.mrf.mxu1  ;;  %v2664_v6 = vpop.f32.mrf.mxu0 }
 0x211   : > { %v2668_v10 = vadd.f32 %v2664_v6, %v2644_v8 }
 0x212   : > { %v2720_v7 = vpop.f32.mrf.mxu2 }
 0x213   : > { %v2691_v16 = vadd.f32 %v2687_v31, %v2668_v10 }
 0x215   : > { %v2724_v0 = vadd.f32 %v2720_v7, %v2691_v16 }
 0x216   : > { %v2744_v9 = vpop.f32.mrf.mxu3 }
 0x217   : > { %v2746_v20 = vadd.f32 %v2742_v4, %v2724_v0 }
 0x218   : > { %v2798_v12 = vpop.f32.mrf.mxu1  ;;  %v2666_v14 = vpop.f32.mrf.mxu0 }
 0x21a   : > { %v2722_v15 = vpop.f32.mrf.mxu2 }
 0x21e   : > { %v2844_v17 = vpop.f32.mrf.mxu3 }
 0x220   : > { %v2800_v18 = vpop.f32.mrf.mxu1  ;;  %v2765_v19 = vpop.f32.mrf.mxu0 }
 0x221   : > { %v2769_v22 = vadd.f32 %v2765_v19, %v2746_v20 }
 0x222   : > { %v2820_v21 = vpop.f32.mrf.mxu2 }
 0x223   : > { %v2802_v27 = vadd.f32 %v2798_v12, %v2769_v22 }
 0x225   : > { %v2824_v29 = vadd.f32 %v2820_v21, %v2802_v27 }
 0x226   : > { %v2846_v23 = vpop.f32.mrf.mxu3 }
 0x227   : > { %v2848_v33 = vadd.f32 %v2844_v17, %v2824_v29 }
 0x228   : > { %v2899_v24 = vpop.f32.mrf.mxu1  ;;  %v2767_v25 = vpop.f32.mrf.mxu0 }
 0x229   : > { %v4051_v25 = vld [vmem:[%s5050_s2] ss:$0 sm:$0xff] }
 0x22a   : > { %v2822_v28 = vpop.f32.mrf.mxu2 }
 0x22e   : > { %v2956_v30 = vpop.f32.mrf.mxu3 }
 0x230   : > { %v2901_v32 = vpop.f32.mrf.mxu1  ;;  %v2877_v11 = vpop.f32.mrf.mxu0 }
 0x231   : > { %v2881_v35 = vadd.f32 %v2877_v11, %v2848_v33 }
 0x232   : > { %v2923_v34 = vpop.f32.mrf.mxu2 }
 0x233   : > { %v2903_v36 = vadd.f32 %v2899_v24, %v2881_v35 }
 0x235   : > { %v2927_v40 = vadd.f32 %v2923_v34, %v2903_v36 }
 0x236   : > { %v2958_v13 = vpop.f32.mrf.mxu3 }
 0x237   : > { %v2960_v41 = vadd.f32 %v2956_v30, %v2927_v40 }
 0x238   : > { %v3025_v37 = vpop.f32.mrf.mxu1  ;;  %v2879_v38 = vpop.f32.mrf.mxu0 }
 0x23a   : > { %v2925_v39 = vpop.f32.mrf.mxu2 }
 0x23e   : > { %v3065_v42 = vpop.f32.mrf.mxu3 }
 0x240   : > { %v3027_v44 = vpop.f32.mrf.mxu1  ;;  %v2978_v45 = vpop.f32.mrf.mxu0 }
 0x241   : > { %v2982_v46 = vadd.f32 %v2978_v45, %v2960_v41 }
 0x242   : > { %v3044_v47 = vpop.f32.mrf.mxu2 }
 0x243   : > { %v2987_v48 = vadd.f32 %v4050_v43, %v2982_v46  ;;  %v3045_v58 = vadd.f32 %v3044_v47, %v3025_v37 }
 0x245   : > { %vm2988_vm8 = vcmp.ge.f32.partialorder %v2987_v48, 0.0  ;;  %v2989_v49 = vmul.f32 0.2, %v2987_v48  ;;  %v3069_v61 = vadd.f32 %v3065_v42, %v3045_v58 }
 0x246   : > { %v3067_v51 = vpop.f32.mrf.mxu3 }
 0x247   : > { %v2990_v52 = vsel %vm2988_vm8, %v2987_v48, %v2989_v49 }
 0x248   : > { %v3121_v53 = vpop.f32.mrf.mxu1  ;;  %v2991_v54 = vpack.c.bf16 %v2990_v52, %v2990_v52  ;;  %v2980_v55 = vpop.f32.mrf.mxu0 }
 0x24a   : > { %3895 = vst [vmem:[%s4562_s4 + $0x18] sm:$0xf] %v2991_v54  ;;  %v3046_v56 = vpop.f32.mrf.mxu2 }
 0x24e   : > { %v3166_v57 = vpop.f32.mrf.mxu3 }
 0x250   : > { %v3123_v26 = vpop.f32.mrf.mxu1  ;;  %v3088_v59 = vpop.f32.mrf.mxu0 }
 0x251   : > { %v3092_v62 = vadd.f32 %v3088_v59, %v3069_v61 }
 0x252   : > { %v3143_v60 = vpop.f32.mrf.mxu2 }
 0x253   : > { %v3125_v2 = vadd.f32 %v3121_v53, %v3092_v62 }
 0x255   : > { %v3147_v3 = vadd.f32 %v3143_v60, %v3125_v2 }
 0x256   : > { %v3168_v63 = vpop.f32.mrf.mxu3 }
 0x257   : > { %v3170_v7 = vadd.f32 %v3166_v57, %v3147_v3 }
 0x258   : > { %v3221_v31 = vpop.f32.mrf.mxu1  ;;  %v3090_v1 = vpop.f32.mrf.mxu0 }
 0x25a   : > { %v3145_v50 = vpop.f32.mrf.mxu2 }
 0x25e   : > { %v3278_v4 = vpop.f32.mrf.mxu3 }
 0x260   : > { %v3223_v5 = vpop.f32.mrf.mxu1  ;;  %v3199_v6 = vpop.f32.mrf.mxu0 }
 0x261   : > { %v3203_v9 = vadd.f32 %v3199_v6, %v3170_v7 }
 0x262   : > { %v3245_v8 = vpop.f32.mrf.mxu2 }
 0x263   : > { %v3225_v12 = vadd.f32 %v3221_v31, %v3203_v9 }
 0x265   : > { %v3249_v17 = vadd.f32 %v3245_v8, %v3225_v12 }
 0x266   : > { %v3280_v10 = vpop.f32.mrf.mxu3 }
 0x267   : > { %v3282_v18 = vadd.f32 %v3278_v4, %v3249_v17 }
 0x268   : > { %v3324_v14 = vpop.f32.mrf.mxu1  ;;  %v3201_v15 = vpop.f32.mrf.mxu0 }
 0x26a   : > { %v3247_v16 = vpop.f32.mrf.mxu2 }
 0x26e   : > { %v3379_v0 = vpop.f32.mrf.mxu3 }
 0x270   : > { %v3326_v19 = vpop.f32.mrf.mxu1  ;;  %v3300_v21 = vpop.f32.mrf.mxu0 }
 0x271   : > { %v3304_v20 = vadd.f32 %v3300_v21, %v3282_v18 }
 0x272   : > { %v3357_v22 = vpop.f32.mrf.mxu2 }
 0x273   : > { %v3328_v23 = vadd.f32 %v3324_v14, %v3304_v20 }
 0x275   : > { %v3361_v24 = vadd.f32 %v3357_v22, %v3328_v23 }
 0x276   : > { %v3381_v27 = vpop.f32.mrf.mxu3 }
 0x277   : > { %v3383_v28 = vadd.f32 %v3379_v0, %v3361_v24 }
 0x278   : > { %v3302_v29 = vpop.f32.mrf.mxu0 }
 0x279   : > { %v3388_v30 = vadd.f32 %v4051_v25, %v3383_v28 }
 0x27a   : > { %v3359_v32 = vpop.f32.mrf.mxu2 }
 0x27b   : > { %vm3389_vm9 = vcmp.ge.f32.partialorder %v3388_v30, 0.0  ;;  %v3390_v11 = vmul.f32 0.2, %v3388_v30 }
 0x27d   : > { %v3391_v33 = vsel %vm3389_vm9, %v3388_v30, %v3390_v11 }
 0x27e   : > { %v3392_v34 = vpack.c.bf16 %v3391_v33, %v3391_v33 }
 0x280   : > { %3955 = vst [vmem:[%s4562_s4 + $0x1c] sm:$0xf] %v3392_v34 }
 0x281   : > { %4079 = shalt.err (!%p4076_p3)
}
 0x282   : > { %s4116_s19 = smov 64   ;;  %s4117_s4 = smov 4  }
 0x283   : > { %4003 = dma.vmem_to_hbm [thread:$0]  (%p4176_p5), %s3409_s9, 512, %s3411_s10, %s3396_s16, %s4116_s19, %s4116_s19, %s4117_s4  }
 0x284 PF: > { %p4009_p4 = scmp.ge.s32.totalorder %s4114_s15, 2  ;;  %s3425_s28 = sand.u32 1, %s4102_s12  }
 0x285   : > { %s3426_s29 = scalar_lea.sflag [#allocation3], %s3425_s28 }
 0x286   : > { %p4006_p7 = pnand %p4009_p4, %p4180_p6 }
 0x288   : > { %p4007_p8 = pneg %p4006_p7 }
 0x28a   : > { %4097 = dma.done.wait (%p4007_p8), %s3426_s29, 512  }
 0x28b   : > { %4099 = vsyncadd (%p4007_p8), %s3426_s29, 4294966784  ;;  %p13_p9 = scmp.ge.s32.totalorder %s4163_s18, 4   ;;  %s5054_s12 = smov %s4106_s13 }
 0x28c   : > { %s5055_s13 = smov %s4110_s14  ;;  %s5056_s14 = smov %s4174_s21 }
 0x28d   : > { %s5057_s15 = smov %s4163_s18  ;;  %15 = sbr.rel (!%p13_p9) target bundleno = 3 (0x3), region = 106 }
 0x292   :  { %3432 = vsyncpa [#allocation3], 1 }
 0x293   :  { %3434 = vsyncpa [#allocation3 + $0x1], 1 }

</bundles_post_ra>
